<compile_context>
chip_gen: v7x
topology: tpu7x:2x2x1
jax: 0.10.0
libtpu: 0.0.40
codegen_flags: <defaults>
</compile_context>

<pallas_src>
import functools
import math

import jax
import jax.numpy as jnp
from jax.experimental import pallas as pl
from jax.experimental.pallas import tpu as pltpu

# ----------------- small config (scaled down from 768/12/12/3072) -----------------
VOCAB = 128        # vocab_size
MAX_POS = 32       # max_position_embeddings
TYPE_VOCAB = 2     # token_type vocab
H = 32             # hidden_size
NH = 4             # num_attention_heads
DH = H // NH       # head dim
INTER = 64         # intermediate_size
L = 2              # num_hidden_layers
B = 2              # batch
S = 8              # sequence length
NUM_LABELS = (2, 3)
LN_EPS = 1e-12
PAD_OUT = 128      # lane-dense logits slab width

VMEM = pl.BlockSpec(memory_space=pltpu.MemorySpace.VMEM)

# ----------------------- slab row layouts (static, module-level) --------------------
# slab_h: every parameter whose last dim is H
OFF_WORD = 0                        # (VOCAB, H) word embedding table
OFF_WO = OFF_WORD + VOCAB           # L*NH blocks of (DH, H): out-proj rows of head (l,h)
OFF_W2 = OFF_WO + L * NH * DH       # L blocks of (INTER, H): FFN down-proj
OFF_WP = OFF_W2 + L * INTER         # (H, H) pooler dense
OFF_WG2 = OFF_WP + H                # (H, H) bert_gate second linear
VEC_POS = OFF_WG2 + H               # S rows: position + token_type(0) embedding
VEC_ELN_G = VEC_POS + S
VEC_ELN_B = VEC_ELN_G + 1
VEC_BP = VEC_ELN_B + 1
VEC_WG1 = VEC_BP + 1
VEC_BG1 = VEC_WG1 + 1
VEC_BG2 = VEC_BG1 + 1
VEC_LAYER = VEC_BG2 + 1             # 6 rows per layer: bo, ln1_g, ln1_b, b2, ln2_g, ln2_b
NROWS_H = VEC_LAYER + 6 * L

# slab_d: per-head Q/K/V projection blocks (H, DH) + per-head bias rows (1, DH)
OFF_BQKV = L * 3 * NH * H
NROWS_D = OFF_BQKV + L * 3 * NH


def _qkv_woff(layer, t, head):      # t: 0=q, 1=k, 2=v
    return ((layer * 3 + t) * NH + head) * H


def _qkv_boff(layer, t, head):
    return OFF_BQKV + (layer * 3 + t) * NH + head


# slab_i: last dim INTER (FFN up-proj weights + biases)
OFF_B1 = L * H
NROWS_I = OFF_B1 + L

# slab_c: last dim PAD_OUT (lane-dense classifier weights / biases)
OFF_W0A, OFF_W0B, OFF_W1C = 0, H, 2 * H
ROW_B0, ROW_B1C = 3 * H, 3 * H + 1
NROWS_C = 3 * H + 2


# --------------------------------- kernel helpers ----------------------------------
def _ln(x, g, b):
    """LayerNorm over the last (lane) dim, biased variance, eps=1e-12 (BERT)."""
    mu = jnp.mean(x, axis=-1, keepdims=True)
    var = jnp.mean((x - mu) ** 2, axis=-1, keepdims=True)
    return (x - mu) * jax.lax.rsqrt(var + LN_EPS) * g + b


def _gelu(x):
    # TODO(synk): reference BERT uses exact erf-based GELU; tanh approximation used
    # here for Mosaic-safe elementwise lowering.
    return 0.5 * x * (1.0 + jnp.tanh(0.7978845608028654 * (x + 0.044715 * x * x * x)))


# ----------------------------------- fused kernel -----------------------------------
def bert_multitask_kernel(ids_ref, tf_ref, sh_ref, sd_ref, si_ref, sc_ref, o_ref, *,
                          batch, seq, nheads, dhead, hidden, inter, nlayers, out_rows):
    nb = 2 * batch                      # [input_ids1; input_ids2] encoded in one batch
    n = nb * seq

    # ---- embeddings: word gather as one-hot matmul on the idle MXU, + pos/type, LN ----
    ids = ids_ref[...]                                               # (n, 1) int32
    onehot = (ids == jax.lax.broadcasted_iota(jnp.int32, (n, VOCAB), 1)
              ).astype(jnp.float32)                                  # (n, VOCAB)
    word = jnp.dot(onehot, sh_ref[OFF_WORD:OFF_WORD + VOCAB, :],
                   preferred_element_type=jnp.float32)               # (n, H)
    pos_type = sh_ref[VEC_POS:VEC_POS + seq, :]                      # (S, H)
    x = (word.reshape(nb, seq, hidden) + pos_type[None, :, :]).reshape(n, hidden)
    x = _ln(x, sh_ref[VEC_ELN_G:VEC_ELN_G + 1, :], sh_ref[VEC_ELN_B:VEC_ELN_B + 1, :])

    # ---- encoder layers (static unroll; all weights stay VMEM-resident at this size) ----
    for l in range(nlayers):
        vl = VEC_LAYER + 6 * l
        bo = sh_ref[vl + 0:vl + 1, :]
        ln1_g = sh_ref[vl + 1:vl + 2, :]
        ln1_b = sh_ref[vl + 2:vl + 3, :]
        b2 = sh_ref[vl + 3:vl + 4, :]
        ln2_g = sh_ref[vl + 4:vl + 5, :]
        ln2_b = sh_ref[vl + 5:vl + 6, :]

        # Multi-head self-attention. Per-head Q/K/V matmuls from pre-split weight
        # blocks (head selection = static row offset, no lane slices) and per-head
        # output-projection accumulation (no head concat). Q weight/bias pre-scaled
        # by 1/sqrt(DH) at init. No attention mask (attention_mask=None reference).
        attn = bo                                                    # (1, H), broadcasts
        for h in range(nheads):
            qo, ko, vo = (_qkv_woff(l, 0, h), _qkv_woff(l, 1, h), _qkv_woff(l, 2, h))
            qb, kb, vb = (_qkv_boff(l, 0, h), _qkv_boff(l, 1, h), _qkv_boff(l, 2, h))
            qw = sd_ref[qo:qo + hidden, :]                           # (H, DH)
            kw = sd_ref[ko:ko + hidden, :]
            vw = sd_ref[vo:vo + hidden, :]
            qbias = sd_ref[qb:qb + 1, :]                             # (1, DH)
            kbias = sd_ref[kb:kb + 1, :]
            vbias = sd_ref[vb:vb + 1, :]
            qh = (jnp.dot(x, qw, preferred_element_type=jnp.float32)
                  + qbias).reshape(nb, seq, dhead)
            kh = (jnp.dot(x, kw, preferred_element_type=jnp.float32)
                  + kbias).reshape(nb, seq, dhead)
            vh = (jnp.dot(x, vw, preferred_element_type=jnp.float32)
                  + vbias).reshape(nb, seq, dhead)
            s = jnp.einsum("bqd,bkd->bqk", qh, kh,
                           preferred_element_type=jnp.float32)       # (nb, S, S)
            s = s - jnp.max(s, axis=-1, keepdims=True)               # stable softmax
            e = jnp.exp(s)
            p = e * pl.reciprocal(jnp.sum(e, axis=-1, keepdims=True), approx=True)
            ctx = jnp.einsum("bqk,bkd->bqd", p, vh,
                             preferred_element_type=jnp.float32)     # (nb, S, DH)
            wo_off = OFF_WO + (l * nheads + h) * dhead
            wo_h = sh_ref[wo_off:wo_off + dhead, :]                  # (DH, H)
            attn = attn + jnp.dot(ctx.reshape(n, dhead), wo_h,
                                  preferred_element_type=jnp.float32)
        h1 = _ln(x + attn, ln1_g, ln1_b)

        # FFN: GELU(x @ w1 + b1) @ w2 + b2, residual + LN
        w1_l = si_ref[l * hidden:(l + 1) * hidden, :]                # (H, INTER)
        b1_l = si_ref[OFF_B1 + l:OFF_B1 + l + 1, :]                  # (1, INTER)
        w2_l = sh_ref[OFF_W2 + l * inter:OFF_W2 + (l + 1) * inter, :]  # (INTER, H)
        ff = _gelu(jnp.dot(h1, w1_l, preferred_element_type=jnp.float32) + b1_l)
        ff = jnp.dot(ff, w2_l, preferred_element_type=jnp.float32) + b2
        x = _ln(h1 + ff, ln2_g, ln2_b)

    # ---- CLS pooler(tanh): CLS rows picked with a one-hot selection matmul ----
    rows = jax.lax.broadcasted_iota(jnp.int32, (nb, n), 0)
    cols = jax.lax.broadcasted_iota(jnp.int32, (nb, n), 1)
    sel = (cols == rows * seq).astype(jnp.float32)                   # (nb, n)
    cls = jnp.dot(sel, x, preferred_element_type=jnp.float32)        # (nb, H)
    wp = sh_ref[OFF_WP:OFF_WP + hidden, :]
    bp = sh_ref[VEC_BP:VEC_BP + 1, :]
    pooled = jnp.tanh(jnp.dot(cls, wp, preferred_element_type=jnp.float32) + bp)
    # hidden dropout is identity (deterministic inference / eval mode)

    # ---- bert_gate: Linear(1,H) -> ReLU -> Linear(H,H) -> Sigmoid ----
    tf = tf_ref[...]                                                 # (B, 1)
    wg1 = sh_ref[VEC_WG1:VEC_WG1 + 1, :]
    bg1 = sh_ref[VEC_BG1:VEC_BG1 + 1, :]
    bg2 = sh_ref[VEC_BG2:VEC_BG2 + 1, :]
    wg2 = sh_ref[OFF_WG2:OFF_WG2 + hidden, :]
    gh = jnp.maximum(tf * wg1 + bg1, 0.0)                            # (B, H)
    gate = jax.nn.sigmoid(jnp.dot(gh, wg2, preferred_element_type=jnp.float32) + bg2)
    g2 = 2.0 * gate
    o1 = g2 * pooled[0:batch, :]                 # 2*gate*pool(ids1): shared by both tasks
    o2 = g2 * pooled[batch:2 * batch, :]         # 2*gate*pool(ids2): fakenews only

    # ---- classifiers (lane-dense 128-wide weights; one (out_rows, 128) store) ----
    w0a = sc_ref[OFF_W0A:OFF_W0A + hidden, :]
    w0b = sc_ref[OFF_W0B:OFF_W0B + hidden, :]
    w1c = sc_ref[OFF_W1C:OFF_W1C + hidden, :]
    b0 = sc_ref[ROW_B0:ROW_B0 + 1, :]
    b1c = sc_ref[ROW_B1C:ROW_B1C + 1, :]
    logits_fake = (jnp.dot(o1, w0a, preferred_element_type=jnp.float32)
                   + jnp.dot(o2, w0b, preferred_element_type=jnp.float32) + b0)
    logits_sent = jnp.dot(o1, w1c, preferred_element_type=jnp.float32) + b1c
    pieces = [logits_fake, logits_sent]
    if out_rows > 2 * batch:
        pieces.append(jnp.zeros((out_rows - 2 * batch, PAD_OUT), jnp.float32))
    o_ref[...] = jnp.concatenate(pieces, axis=0)


# ------------------------------------ wrappers --------------------------------------
def bert_multitask_forward(task_features, input_ids1, input_ids2, params):
    """One fused pallas_call producing both task heads' logits.

    Encodes [input_ids1; input_ids2] as a single (2B, S) batch; classifier0
    (fakenews) uses both pooled halves, classifier1 (sentimental) uses the first.
    """
    bsz, sq = input_ids1.shape
    ids = jnp.concatenate([input_ids1, input_ids2], axis=0)
    ids = ids.reshape(2 * bsz * sq, 1).astype(jnp.int32)
    out_rows = max(8, ((2 * bsz + 7) // 8) * 8)                      # full sublane tile
    kern = functools.partial(
        bert_multitask_kernel, batch=bsz, seq=sq, nheads=NH, dhead=DH,
        hidden=H, inter=INTER, nlayers=L, out_rows=out_rows)
    out = pl.pallas_call(
        kern,
        out_shape=jax.ShapeDtypeStruct((out_rows, PAD_OUT), jnp.float32),
        in_specs=[VMEM] * 6,
        out_specs=VMEM,
    )(ids, task_features.astype(jnp.float32), params["slab_h"], params["slab_d"],
      params["slab_i"], params["slab_c"])
    return out[:bsz, :NUM_LABELS[0]], out[bsz:2 * bsz, :NUM_LABELS[1]]


def bert_for_sequence_classification(task, task_features, input_ids1, input_ids2, params):
    """Per-task API matching the PyTorch forward(task, ...). Both tasks route through
    the single fused kernel (a 'sentimental'-only call still encodes input_ids2; the
    result is identical, only redundant compute at these tiny shapes)."""
    logits_fake, logits_sent = bert_multitask_forward(
        task_features, input_ids1, input_ids2, params)
    if task == "fakenews":
        return logits_fake
    if task == "sentimental":
        return logits_sent
    raise ValueError(task)


# --------------------------------- parameter init -----------------------------------
def init_params(key):
    it = iter(jax.random.split(key, 32))

    def nrm(shape, std=0.02):
        return (std * jax.random.normal(next(it), shape)).astype(jnp.float32)

    def zeros(shape):
        return jnp.zeros(shape, jnp.float32)

    def ones(shape):
        return jnp.ones(shape, jnp.float32)

    # ---- logical weights (deterministic synthetic init; biases zero, LN gamma=1) ----
    word_emb = nrm((VOCAB, H))
    pos_emb = nrm((MAX_POS, H))
    type_emb = nrm((TYPE_VOCAB, H))
    emb_ln_g, emb_ln_b = ones((1, H)), zeros((1, H))

    wq, wk, wv = nrm((L, H, H)), nrm((L, H, H)), nrm((L, H, H))
    bq, bk, bv = zeros((L, H)), zeros((L, H)), zeros((L, H))
    wo, bo = nrm((L, H, H)), zeros((L, H))
    ln1_g, ln1_b = ones((L, H)), zeros((L, H))
    w1, b1 = nrm((L, H, INTER)), zeros((L, INTER))
    w2, b2 = nrm((L, INTER, H)), zeros((L, H))
    ln2_g, ln2_b = ones((L, H)), zeros((L, H))

    wp, bp = nrm((H, H)), zeros((1, H))
    wg1, bg1 = nrm((1, H)), zeros((1, H))       # bert_gate Linear(1, H)
    wg2, bg2 = nrm((H, H)), zeros((1, H))       # bert_gate Linear(H, H)
    w0, b0 = nrm((2 * H, NUM_LABELS[0])), zeros((1, NUM_LABELS[0]))
    w1c, b1c = nrm((H, NUM_LABELS[1])), zeros((1, NUM_LABELS[1]))

    inv_sqrt_dh = 1.0 / math.sqrt(DH)           # fold softmax scale into Q projection

    # ---- slab_h: last dim H ----
    wo_rows = wo.reshape(L * NH * DH, H)        # head (l,h) -> rows (l*NH+h)*DH .. +DH
    w2_rows = w2.reshape(L * INTER, H)
    pos_type = pos_emb[:S] + type_emb[0][None, :]          # token_type_ids == 0
    layer_rows = jnp.stack([bo, ln1_g, ln1_b, b2, ln2_g, ln2_b],
                           axis=1).reshape(6 * L, H)
    slab_h = jnp.concatenate(
        [word_emb, wo_rows, w2_rows, wp, wg2, pos_type,
         emb_ln_g, emb_ln_b, bp, wg1, bg1, bg2, layer_rows], axis=0)

    # ---- slab_d: last dim DH (per-head Q/K/V projection blocks + bias rows) ----
    def heads(w):                               # (L, H, H) -> (L, NH, H, DH)
        return w.reshape(L, H, NH, DH).transpose(0, 2, 1, 3)

    qkv_blocks = jnp.stack([heads(wq * inv_sqrt_dh), heads(wk), heads(wv)],
                           axis=1).reshape(L * 3 * NH * H, DH)
    qkv_bias = jnp.stack([bq.reshape(L, NH, DH) * inv_sqrt_dh,
                          bk.reshape(L, NH, DH),
                          bv.reshape(L, NH, DH)], axis=1).reshape(L * 3 * NH, DH)
    slab_d = jnp.concatenate([qkv_blocks, qkv_bias], axis=0)

    # ---- slab_i: last dim INTER ----
    slab_i = jnp.concatenate([w1.reshape(L * H, INTER), b1], axis=0)

    # ---- slab_c: last dim PAD_OUT (lane-dense classifier weights/biases) ----
    def pad_out(w):
        return jnp.pad(w, ((0, 0), (0, PAD_OUT - w.shape[1])))

    slab_c = jnp.concatenate(
        [pad_out(w0[:H]), pad_out(w0[H:]), pad_out(w1c), pad_out(b0), pad_out(b1c)],
        axis=0)

    assert slab_h.shape == (NROWS_H, H)
    assert slab_d.shape == (NROWS_D, DH)
    assert slab_i.shape == (NROWS_I, INTER)
    assert slab_c.shape == (NROWS_C, PAD_OUT)
    return {"slab_h": slab_h, "slab_d": slab_d, "slab_i": slab_i, "slab_c": slab_c}


# --------------------------------------- main ----------------------------------------
if __name__ == "__main__":
    key = jax.random.PRNGKey(0)
    pkey, k1, k2, k3 = jax.random.split(key, 4)
    params = init_params(pkey)

    input_ids1 = jax.random.randint(k1, (B, S), 0, VOCAB, dtype=jnp.int32)
    input_ids2 = jax.random.randint(k2, (B, S), 0, VOCAB, dtype=jnp.int32)
    task_features = jax.random.normal(k3, (B, 1), dtype=jnp.float32)

    # Both task heads from a single fused kernel launch; the per-task API
    # bert_for_sequence_classification(task, ...) routes through the same call.
    logits_fake, logits_sent = bert_multitask_forward(
        task_features, input_ids1, input_ids2, params)
    jax.block_until_ready((logits_fake, logits_sent))

    assert logits_fake.shape == (B, NUM_LABELS[0])
    assert logits_sent.shape == (B, NUM_LABELS[1])
    assert bool(jnp.all(jnp.isfinite(logits_fake)))
    assert bool(jnp.all(jnp.isfinite(logits_sent)))
    print("KERNEL_OK")
</pallas_src>

<mosaic_0001>
module attributes {stable_mosaic.version = 11 : i64} {
  func.func @bert_multitask_kernel(%arg0: memref<32x1xi32, #tpu.memory_space<vmem>>, %arg1: memref<2x1xf32, #tpu.memory_space<vmem>>, %arg2: memref<410x32xf32, #tpu.memory_space<vmem>>, %arg3: memref<792x8xf32, #tpu.memory_space<vmem>>, %arg4: memref<66x64xf32, #tpu.memory_space<vmem>>, %arg5: memref<98x128xf32, #tpu.memory_space<vmem>>, %arg6: memref<8x128xf32, #tpu.memory_space<vmem>>) attributes {dimension_semantics = [], scalar_prefetch = 0 : i64, scratch_operands = 0 : i64, tpu.core_type = #tpu.core_type<tc>} {
    %c0 = arith.constant 0 : index
    %c0_0 = arith.constant 0 : index
    %0 = vector.load %arg0[%c0, %c0_0] : memref<32x1xi32, #tpu.memory_space<vmem>>, vector<32x1xi32>
    %1 = tpu.iota {dimensions = array<i32: 1>} : vector<32x128xi32>
    %2 = vector.broadcast %0 : vector<32x1xi32> to vector<32x128xi32>
    %3 = arith.cmpi eq, %2, %1 : vector<32x128xi32>
    %4 = arith.extui %3 : vector<32x128xi1> to vector<32x128xi32>
    %5 = arith.sitofp %4 : vector<32x128xi32> to vector<32x128xf32>
    %c0_1 = arith.constant 0 : index
    %c0_2 = arith.constant 0 : index
    %6 = vector.load %arg2[%c0_1, %c0_2] : memref<410x32xf32, #tpu.memory_space<vmem>>, vector<128x32xf32>
    %cst = arith.constant dense<0.000000e+00> : vector<32x32xf32>
    %7 = tpu.matmul %5, %6, %cst {dimension_numbers = #tpu.dot_dimension_numbers<[1], [0], [0], [1], [0, 0, 1, 1], [], []>} : vector<32x128xf32>, vector<128x32xf32>, vector<32x32xf32> -> vector<32x32xf32>
    %c384 = arith.constant 384 : index
    %c0_3 = arith.constant 0 : index
    %8 = vector.load %arg2[%c384, %c0_3] : memref<410x32xf32, #tpu.memory_space<vmem>>, vector<8x32xf32>
    %9 = vector.shape_cast %7 : vector<32x32xf32> to vector<4x8x32xf32>
    %10 = vector.shape_cast %8 : vector<8x32xf32> to vector<1x8x32xf32>
    %11 = vector.broadcast %10 : vector<1x8x32xf32> to vector<4x8x32xf32>
    %12 = arith.addf %9, %11 : vector<4x8x32xf32>
    %13 = vector.shape_cast %12 : vector<4x8x32xf32> to vector<32x32xf32>
    %c392 = arith.constant 392 : index
    %c0_4 = arith.constant 0 : index
    %14 = vector.load %arg2[%c392, %c0_4] : memref<410x32xf32, #tpu.memory_space<vmem>>, vector<1x32xf32>
    %c393 = arith.constant 393 : index
    %c0_5 = arith.constant 0 : index
    %15 = vector.load %arg2[%c393, %c0_5] : memref<410x32xf32, #tpu.memory_space<vmem>>, vector<1x32xf32>
    %cst_6 = arith.constant dense<0.000000e+00> : vector<32xf32>
    %16 = vector.multi_reduction <add>, %13, %cst_6 [1] : vector<32x32xf32> to vector<32xf32>
    %17 = vector.shape_cast %16 : vector<32xf32> to vector<32x1xf32>
    %cst_7 = arith.constant 3.200000e+01 : f32
    %18 = vector.broadcast %cst_7 : f32 to vector<32x1xf32>
    %19 = arith.divf %17, %18 : vector<32x1xf32>
    %20 = vector.broadcast %19 : vector<32x1xf32> to vector<32x32xf32>
    %21 = arith.subf %13, %20 : vector<32x32xf32>
    %22 = arith.mulf %21, %21 : vector<32x32xf32>
    %cst_8 = arith.constant dense<0.000000e+00> : vector<32xf32>
    %23 = vector.multi_reduction <add>, %22, %cst_8 [1] : vector<32x32xf32> to vector<32xf32>
    %24 = vector.shape_cast %23 : vector<32xf32> to vector<32x1xf32>
    %cst_9 = arith.constant 3.200000e+01 : f32
    %25 = vector.broadcast %cst_9 : f32 to vector<32x1xf32>
    %26 = arith.divf %24, %25 : vector<32x1xf32>
    %27 = vector.broadcast %19 : vector<32x1xf32> to vector<32x32xf32>
    %28 = arith.subf %13, %27 : vector<32x32xf32>
    %cst_10 = arith.constant 9.99999996E-13 : f32
    %29 = vector.broadcast %cst_10 : f32 to vector<32x1xf32>
    %30 = arith.addf %26, %29 : vector<32x1xf32>
    %31 = math.rsqrt %30 : vector<32x1xf32>
    %32 = vector.broadcast %31 : vector<32x1xf32> to vector<32x32xf32>
    %33 = arith.mulf %28, %32 : vector<32x32xf32>
    %34 = vector.broadcast %14 : vector<1x32xf32> to vector<32x32xf32>
    %35 = arith.mulf %33, %34 : vector<32x32xf32>
    %36 = vector.broadcast %15 : vector<1x32xf32> to vector<32x32xf32>
    %37 = arith.addf %35, %36 : vector<32x32xf32>
    %c398 = arith.constant 398 : index
    %c0_11 = arith.constant 0 : index
    %38 = vector.load %arg2[%c398, %c0_11] : memref<410x32xf32, #tpu.memory_space<vmem>>, vector<1x32xf32>
    %c399 = arith.constant 399 : index
    %c0_12 = arith.constant 0 : index
    %39 = vector.load %arg2[%c399, %c0_12] : memref<410x32xf32, #tpu.memory_space<vmem>>, vector<1x32xf32>
    %c400 = arith.constant 400 : index
    %c0_13 = arith.constant 0 : index
    %40 = vector.load %arg2[%c400, %c0_13] : memref<410x32xf32, #tpu.memory_space<vmem>>, vector<1x32xf32>
    %c401 = arith.constant 401 : index
    %c0_14 = arith.constant 0 : index
    %41 = vector.load %arg2[%c401, %c0_14] : memref<410x32xf32, #tpu.memory_space<vmem>>, vector<1x32xf32>
    %c402 = arith.constant 402 : index
    %c0_15 = arith.constant 0 : index
    %42 = vector.load %arg2[%c402, %c0_15] : memref<410x32xf32, #tpu.memory_space<vmem>>, vector<1x32xf32>
    %c403 = arith.constant 403 : index
    %c0_16 = arith.constant 0 : index
    %43 = vector.load %arg2[%c403, %c0_16] : memref<410x32xf32, #tpu.memory_space<vmem>>, vector<1x32xf32>
    %c0_17 = arith.constant 0 : index
    %c0_18 = arith.constant 0 : index
    %44 = vector.load %arg3[%c0_17, %c0_18] : memref<792x8xf32, #tpu.memory_space<vmem>>, vector<32x8xf32>
    %c128 = arith.constant 128 : index
    %c0_19 = arith.constant 0 : index
    %45 = vector.load %arg3[%c128, %c0_19] : memref<792x8xf32, #tpu.memory_space<vmem>>, vector<32x8xf32>
    %c256 = arith.constant 256 : index
    %c0_20 = arith.constant 0 : index
    %46 = vector.load %arg3[%c256, %c0_20] : memref<792x8xf32, #tpu.memory_space<vmem>>, vector<32x8xf32>
    %c768 = arith.constant 768 : index
    %c0_21 = arith.constant 0 : index
    %47 = vector.load %arg3[%c768, %c0_21] : memref<792x8xf32, #tpu.memory_space<vmem>>, vector<1x8xf32>
    %c772 = arith.constant 772 : index
    %c0_22 = arith.constant 0 : index
    %48 = vector.load %arg3[%c772, %c0_22] : memref<792x8xf32, #tpu.memory_space<vmem>>, vector<1x8xf32>
    %c776 = arith.constant 776 : index
    %c0_23 = arith.constant 0 : index
    %49 = vector.load %arg3[%c776, %c0_23] : memref<792x8xf32, #tpu.memory_space<vmem>>, vector<1x8xf32>
    %cst_24 = arith.constant dense<0.000000e+00> : vector<32x8xf32>
    %50 = tpu.matmul %37, %44, %cst_24 {dimension_numbers = #tpu.dot_dimension_numbers<[1], [0], [0], [1], [0, 0, 1, 1], [], []>} : vector<32x32xf32>, vector<32x8xf32>, vector<32x8xf32> -> vector<32x8xf32>
    %51 = vector.broadcast %47 : vector<1x8xf32> to vector<32x8xf32>
    %52 = arith.addf %50, %51 : vector<32x8xf32>
    %53 = vector.shape_cast %52 : vector<32x8xf32> to vector<4x8x8xf32>
    %cst_25 = arith.constant dense<0.000000e+00> : vector<32x8xf32>
    %54 = tpu.matmul %37, %45, %cst_25 {dimension_numbers = #tpu.dot_dimension_numbers<[1], [0], [0], [1], [0, 0, 1, 1], [], []>} : vector<32x32xf32>, vector<32x8xf32>, vector<32x8xf32> -> vector<32x8xf32>
    %55 = vector.broadcast %48 : vector<1x8xf32> to vector<32x8xf32>
    %56 = arith.addf %54, %55 : vector<32x8xf32>
    %57 = vector.shape_cast %56 : vector<32x8xf32> to vector<4x8x8xf32>
    %cst_26 = arith.constant dense<0.000000e+00> : vector<32x8xf32>
    %58 = tpu.matmul %37, %46, %cst_26 {dimension_numbers = #tpu.dot_dimension_numbers<[1], [0], [0], [1], [0, 0, 1, 1], [], []>} : vector<32x32xf32>, vector<32x8xf32>, vector<32x8xf32> -> vector<32x8xf32>
    %59 = vector.broadcast %49 : vector<1x8xf32> to vector<32x8xf32>
    %60 = arith.addf %58, %59 : vector<32x8xf32>
    %61 = vector.shape_cast %60 : vector<32x8xf32> to vector<4x8x8xf32>
    "tpu.trace_start"() <{level = 10 : i32, message = "bqd,bkd->bqk"}> : () -> ()
    %cst_27 = arith.constant dense<0.000000e+00> : vector<4x8x8xf32>
    %62 = tpu.matmul %53, %57, %cst_27 {dimension_numbers = #tpu.dot_dimension_numbers<[2], [2], [1], [1], [0, 0, 0, 1, 1, 1], [0], [0]>} : vector<4x8x8xf32>, vector<4x8x8xf32>, vector<4x8x8xf32> -> vector<4x8x8xf32>
    "tpu.trace_stop"() : () -> ()
    %cst_28 = arith.constant dense<0xFF800000> : vector<4x8xf32>
    %63 = vector.multi_reduction <maximumf>, %62, %cst_28 [2] : vector<4x8x8xf32> to vector<4x8xf32>
    %64 = vector.shape_cast %63 : vector<4x8xf32> to vector<4x8x1xf32>
    %65 = vector.broadcast %64 : vector<4x8x1xf32> to vector<4x8x8xf32>
    %66 = arith.subf %62, %65 : vector<4x8x8xf32>
    %67 = math.exp %66 : vector<4x8x8xf32>
    %cst_29 = arith.constant dense<0.000000e+00> : vector<4x8xf32>
    %68 = vector.multi_reduction <add>, %67, %cst_29 [2] : vector<4x8x8xf32> to vector<4x8xf32>
    %69 = vector.shape_cast %68 : vector<4x8xf32> to vector<4x8x1xf32>
    %70 = tpu.reciprocal %69 {approx = true} : vector<4x8x1xf32> -> vector<4x8x1xf32>
    %71 = vector.broadcast %70 : vector<4x8x1xf32> to vector<4x8x8xf32>
    %72 = arith.mulf %67, %71 : vector<4x8x8xf32>
    "tpu.trace_start"() <{level = 10 : i32, message = "bqk,bkd->bqd"}> : () -> ()
    %cst_30 = arith.constant dense<0.000000e+00> : vector<4x8x8xf32>
    %73 = tpu.matmul %72, %61, %cst_30 {dimension_numbers = #tpu.dot_dimension_numbers<[2], [1], [1], [2], [0, 0, 0, 1, 1, 2], [0], [0]>} : vector<4x8x8xf32>, vector<4x8x8xf32>, vector<4x8x8xf32> -> vector<4x8x8xf32>
    "tpu.trace_stop"() : () -> ()
    %c128_31 = arith.constant 128 : index
    %c0_32 = arith.constant 0 : index
    %74 = vector.load %arg2[%c128_31, %c0_32] : memref<410x32xf32, #tpu.memory_space<vmem>>, vector<8x32xf32>
    %75 = vector.shape_cast %73 : vector<4x8x8xf32> to vector<32x8xf32>
    %cst_33 = arith.constant dense<0.000000e+00> : vector<32x32xf32>
    %76 = tpu.matmul %75, %74, %cst_33 {dimension_numbers = #tpu.dot_dimension_numbers<[1], [0], [0], [1], [0, 0, 1, 1], [], []>} : vector<32x8xf32>, vector<8x32xf32>, vector<32x32xf32> -> vector<32x32xf32>
    %77 = vector.broadcast %38 : vector<1x32xf32> to vector<32x32xf32>
    %78 = arith.addf %77, %76 : vector<32x32xf32>
    %c32 = arith.constant 32 : index
    %c0_34 = arith.constant 0 : index
    %79 = vector.load %arg3[%c32, %c0_34] : memref<792x8xf32, #tpu.memory_space<vmem>>, vector<32x8xf32>
    %c160 = arith.constant 160 : index
    %c0_35 = arith.constant 0 : index
    %80 = vector.load %arg3[%c160, %c0_35] : memref<792x8xf32, #tpu.memory_space<vmem>>, vector<32x8xf32>
    %c288 = arith.constant 288 : index
    %c0_36 = arith.constant 0 : index
    %81 = vector.load %arg3[%c288, %c0_36] : memref<792x8xf32, #tpu.memory_space<vmem>>, vector<32x8xf32>
    %c769 = arith.constant 769 : index
    %c0_37 = arith.constant 0 : index
    %82 = vector.load %arg3[%c769, %c0_37] : memref<792x8xf32, #tpu.memory_space<vmem>>, vector<1x8xf32>
    %c773 = arith.constant 773 : index
    %c0_38 = arith.constant 0 : index
    %83 = vector.load %arg3[%c773, %c0_38] : memref<792x8xf32, #tpu.memory_space<vmem>>, vector<1x8xf32>
    %c777 = arith.constant 777 : index
    %c0_39 = arith.constant 0 : index
    %84 = vector.load %arg3[%c777, %c0_39] : memref<792x8xf32, #tpu.memory_space<vmem>>, vector<1x8xf32>
    %cst_40 = arith.constant dense<0.000000e+00> : vector<32x8xf32>
    %85 = tpu.matmul %37, %79, %cst_40 {dimension_numbers = #tpu.dot_dimension_numbers<[1], [0], [0], [1], [0, 0, 1, 1], [], []>} : vector<32x32xf32>, vector<32x8xf32>, vector<32x8xf32> -> vector<32x8xf32>
    %86 = vector.broadcast %82 : vector<1x8xf32> to vector<32x8xf32>
    %87 = arith.addf %85, %86 : vector<32x8xf32>
    %88 = vector.shape_cast %87 : vector<32x8xf32> to vector<4x8x8xf32>
    %cst_41 = arith.constant dense<0.000000e+00> : vector<32x8xf32>
    %89 = tpu.matmul %37, %80, %cst_41 {dimension_numbers = #tpu.dot_dimension_numbers<[1], [0], [0], [1], [0, 0, 1, 1], [], []>} : vector<32x32xf32>, vector<32x8xf32>, vector<32x8xf32> -> vector<32x8xf32>
    %90 = vector.broadcast %83 : vector<1x8xf32> to vector<32x8xf32>
    %91 = arith.addf %89, %90 : vector<32x8xf32>
    %92 = vector.shape_cast %91 : vector<32x8xf32> to vector<4x8x8xf32>
    %cst_42 = arith.constant dense<0.000000e+00> : vector<32x8xf32>
    %93 = tpu.matmul %37, %81, %cst_42 {dimension_numbers = #tpu.dot_dimension_numbers<[1], [0], [0], [1], [0, 0, 1, 1], [], []>} : vector<32x32xf32>, vector<32x8xf32>, vector<32x8xf32> -> vector<32x8xf32>
    %94 = vector.broadcast %84 : vector<1x8xf32> to vector<32x8xf32>
    %95 = arith.addf %93, %94 : vector<32x8xf32>
    %96 = vector.shape_cast %95 : vector<32x8xf32> to vector<4x8x8xf32>
    "tpu.trace_start"() <{level = 10 : i32, message = "bqd,bkd->bqk"}> : () -> ()
    %cst_43 = arith.constant dense<0.000000e+00> : vector<4x8x8xf32>
    %97 = tpu.matmul %88, %92, %cst_43 {dimension_numbers = #tpu.dot_dimension_numbers<[2], [2], [1], [1], [0, 0, 0, 1, 1, 1], [0], [0]>} : vector<4x8x8xf32>, vector<4x8x8xf32>, vector<4x8x8xf32> -> vector<4x8x8xf32>
    "tpu.trace_stop"() : () -> ()
    %cst_44 = arith.constant dense<0xFF800000> : vector<4x8xf32>
    %98 = vector.multi_reduction <maximumf>, %97, %cst_44 [2] : vector<4x8x8xf32> to vector<4x8xf32>
    %99 = vector.shape_cast %98 : vector<4x8xf32> to vector<4x8x1xf32>
    %100 = vector.broadcast %99 : vector<4x8x1xf32> to vector<4x8x8xf32>
    %101 = arith.subf %97, %100 : vector<4x8x8xf32>
    %102 = math.exp %101 : vector<4x8x8xf32>
    %cst_45 = arith.constant dense<0.000000e+00> : vector<4x8xf32>
    %103 = vector.multi_reduction <add>, %102, %cst_45 [2] : vector<4x8x8xf32> to vector<4x8xf32>
    %104 = vector.shape_cast %103 : vector<4x8xf32> to vector<4x8x1xf32>
    %105 = tpu.reciprocal %104 {approx = true} : vector<4x8x1xf32> -> vector<4x8x1xf32>
    %106 = vector.broadcast %105 : vector<4x8x1xf32> to vector<4x8x8xf32>
    %107 = arith.mulf %102, %106 : vector<4x8x8xf32>
    "tpu.trace_start"() <{level = 10 : i32, message = "bqk,bkd->bqd"}> : () -> ()
    %cst_46 = arith.constant dense<0.000000e+00> : vector<4x8x8xf32>
    %108 = tpu.matmul %107, %96, %cst_46 {dimension_numbers = #tpu.dot_dimension_numbers<[2], [1], [1], [2], [0, 0, 0, 1, 1, 2], [0], [0]>} : vector<4x8x8xf32>, vector<4x8x8xf32>, vector<4x8x8xf32> -> vector<4x8x8xf32>
    "tpu.trace_stop"() : () -> ()
    %c136 = arith.constant 136 : index
    %c0_47 = arith.constant 0 : index
    %109 = vector.load %arg2[%c136, %c0_47] : memref<410x32xf32, #tpu.memory_space<vmem>>, vector<8x32xf32>
    %110 = vector.shape_cast %108 : vector<4x8x8xf32> to vector<32x8xf32>
    %cst_48 = arith.constant dense<0.000000e+00> : vector<32x32xf32>
    %111 = tpu.matmul %110, %109, %cst_48 {dimension_numbers = #tpu.dot_dimension_numbers<[1], [0], [0], [1], [0, 0, 1, 1], [], []>} : vector<32x8xf32>, vector<8x32xf32>, vector<32x32xf32> -> vector<32x32xf32>
    %112 = arith.addf %78, %111 : vector<32x32xf32>
    %c64 = arith.constant 64 : index
    %c0_49 = arith.constant 0 : index
    %113 = vector.load %arg3[%c64, %c0_49] : memref<792x8xf32, #tpu.memory_space<vmem>>, vector<32x8xf32>
    %c192 = arith.constant 192 : index
    %c0_50 = arith.constant 0 : index
    %114 = vector.load %arg3[%c192, %c0_50] : memref<792x8xf32, #tpu.memory_space<vmem>>, vector<32x8xf32>
    %c320 = arith.constant 320 : index
    %c0_51 = arith.constant 0 : index
    %115 = vector.load %arg3[%c320, %c0_51] : memref<792x8xf32, #tpu.memory_space<vmem>>, vector<32x8xf32>
    %c770 = arith.constant 770 : index
    %c0_52 = arith.constant 0 : index
    %116 = vector.load %arg3[%c770, %c0_52] : memref<792x8xf32, #tpu.memory_space<vmem>>, vector<1x8xf32>
    %c774 = arith.constant 774 : index
    %c0_53 = arith.constant 0 : index
    %117 = vector.load %arg3[%c774, %c0_53] : memref<792x8xf32, #tpu.memory_space<vmem>>, vector<1x8xf32>
    %c778 = arith.constant 778 : index
    %c0_54 = arith.constant 0 : index
    %118 = vector.load %arg3[%c778, %c0_54] : memref<792x8xf32, #tpu.memory_space<vmem>>, vector<1x8xf32>
    %cst_55 = arith.constant dense<0.000000e+00> : vector<32x8xf32>
    %119 = tpu.matmul %37, %113, %cst_55 {dimension_numbers = #tpu.dot_dimension_numbers<[1], [0], [0], [1], [0, 0, 1, 1], [], []>} : vector<32x32xf32>, vector<32x8xf32>, vector<32x8xf32> -> vector<32x8xf32>
    %120 = vector.broadcast %116 : vector<1x8xf32> to vector<32x8xf32>
    %121 = arith.addf %119, %120 : vector<32x8xf32>
    %122 = vector.shape_cast %121 : vector<32x8xf32> to vector<4x8x8xf32>
    %cst_56 = arith.constant dense<0.000000e+00> : vector<32x8xf32>
    %123 = tpu.matmul %37, %114, %cst_56 {dimension_numbers = #tpu.dot_dimension_numbers<[1], [0], [0], [1], [0, 0, 1, 1], [], []>} : vector<32x32xf32>, vector<32x8xf32>, vector<32x8xf32> -> vector<32x8xf32>
    %124 = vector.broadcast %117 : vector<1x8xf32> to vector<32x8xf32>
    %125 = arith.addf %123, %124 : vector<32x8xf32>
    %126 = vector.shape_cast %125 : vector<32x8xf32> to vector<4x8x8xf32>
    %cst_57 = arith.constant dense<0.000000e+00> : vector<32x8xf32>
    %127 = tpu.matmul %37, %115, %cst_57 {dimension_numbers = #tpu.dot_dimension_numbers<[1], [0], [0], [1], [0, 0, 1, 1], [], []>} : vector<32x32xf32>, vector<32x8xf32>, vector<32x8xf32> -> vector<32x8xf32>
    %128 = vector.broadcast %118 : vector<1x8xf32> to vector<32x8xf32>
    %129 = arith.addf %127, %128 : vector<32x8xf32>
    %130 = vector.shape_cast %129 : vector<32x8xf32> to vector<4x8x8xf32>
    "tpu.trace_start"() <{level = 10 : i32, message = "bqd,bkd->bqk"}> : () -> ()
    %cst_58 = arith.constant dense<0.000000e+00> : vector<4x8x8xf32>
    %131 = tpu.matmul %122, %126, %cst_58 {dimension_numbers = #tpu.dot_dimension_numbers<[2], [2], [1], [1], [0, 0, 0, 1, 1, 1], [0], [0]>} : vector<4x8x8xf32>, vector<4x8x8xf32>, vector<4x8x8xf32> -> vector<4x8x8xf32>
    "tpu.trace_stop"() : () -> ()
    %cst_59 = arith.constant dense<0xFF800000> : vector<4x8xf32>
    %132 = vector.multi_reduction <maximumf>, %131, %cst_59 [2] : vector<4x8x8xf32> to vector<4x8xf32>
    %133 = vector.shape_cast %132 : vector<4x8xf32> to vector<4x8x1xf32>
    %134 = vector.broadcast %133 : vector<4x8x1xf32> to vector<4x8x8xf32>
    %135 = arith.subf %131, %134 : vector<4x8x8xf32>
    %136 = math.exp %135 : vector<4x8x8xf32>
    %cst_60 = arith.constant dense<0.000000e+00> : vector<4x8xf32>
    %137 = vector.multi_reduction <add>, %136, %cst_60 [2] : vector<4x8x8xf32> to vector<4x8xf32>
    %138 = vector.shape_cast %137 : vector<4x8xf32> to vector<4x8x1xf32>
    %139 = tpu.reciprocal %138 {approx = true} : vector<4x8x1xf32> -> vector<4x8x1xf32>
    %140 = vector.broadcast %139 : vector<4x8x1xf32> to vector<4x8x8xf32>
    %141 = arith.mulf %136, %140 : vector<4x8x8xf32>
    "tpu.trace_start"() <{level = 10 : i32, message = "bqk,bkd->bqd"}> : () -> ()
    %cst_61 = arith.constant dense<0.000000e+00> : vector<4x8x8xf32>
    %142 = tpu.matmul %141, %130, %cst_61 {dimension_numbers = #tpu.dot_dimension_numbers<[2], [1], [1], [2], [0, 0, 0, 1, 1, 2], [0], [0]>} : vector<4x8x8xf32>, vector<4x8x8xf32>, vector<4x8x8xf32> -> vector<4x8x8xf32>
    "tpu.trace_stop"() : () -> ()
    %c144 = arith.constant 144 : index
    %c0_62 = arith.constant 0 : index
    %143 = vector.load %arg2[%c144, %c0_62] : memref<410x32xf32, #tpu.memory_space<vmem>>, vector<8x32xf32>
    %144 = vector.shape_cast %142 : vector<4x8x8xf32> to vector<32x8xf32>
    %cst_63 = arith.constant dense<0.000000e+00> : vector<32x32xf32>
    %145 = tpu.matmul %144, %143, %cst_63 {dimension_numbers = #tpu.dot_dimension_numbers<[1], [0], [0], [1], [0, 0, 1, 1], [], []>} : vector<32x8xf32>, vector<8x32xf32>, vector<32x32xf32> -> vector<32x32xf32>
    %146 = arith.addf %112, %145 : vector<32x32xf32>
    %c96 = arith.constant 96 : index
    %c0_64 = arith.constant 0 : index
    %147 = vector.load %arg3[%c96, %c0_64] : memref<792x8xf32, #tpu.memory_space<vmem>>, vector<32x8xf32>
    %c224 = arith.constant 224 : index
    %c0_65 = arith.constant 0 : index
    %148 = vector.load %arg3[%c224, %c0_65] : memref<792x8xf32, #tpu.memory_space<vmem>>, vector<32x8xf32>
    %c352 = arith.constant 352 : index
    %c0_66 = arith.constant 0 : index
    %149 = vector.load %arg3[%c352, %c0_66] : memref<792x8xf32, #tpu.memory_space<vmem>>, vector<32x8xf32>
    %c771 = arith.constant 771 : index
    %c0_67 = arith.constant 0 : index
    %150 = vector.load %arg3[%c771, %c0_67] : memref<792x8xf32, #tpu.memory_space<vmem>>, vector<1x8xf32>
    %c775 = arith.constant 775 : index
    %c0_68 = arith.constant 0 : index
    %151 = vector.load %arg3[%c775, %c0_68] : memref<792x8xf32, #tpu.memory_space<vmem>>, vector<1x8xf32>
    %c779 = arith.constant 779 : index
    %c0_69 = arith.constant 0 : index
    %152 = vector.load %arg3[%c779, %c0_69] : memref<792x8xf32, #tpu.memory_space<vmem>>, vector<1x8xf32>
    %cst_70 = arith.constant dense<0.000000e+00> : vector<32x8xf32>
    %153 = tpu.matmul %37, %147, %cst_70 {dimension_numbers = #tpu.dot_dimension_numbers<[1], [0], [0], [1], [0, 0, 1, 1], [], []>} : vector<32x32xf32>, vector<32x8xf32>, vector<32x8xf32> -> vector<32x8xf32>
    %154 = vector.broadcast %150 : vector<1x8xf32> to vector<32x8xf32>
    %155 = arith.addf %153, %154 : vector<32x8xf32>
    %156 = vector.shape_cast %155 : vector<32x8xf32> to vector<4x8x8xf32>
    %cst_71 = arith.constant dense<0.000000e+00> : vector<32x8xf32>
    %157 = tpu.matmul %37, %148, %cst_71 {dimension_numbers = #tpu.dot_dimension_numbers<[1], [0], [0], [1], [0, 0, 1, 1], [], []>} : vector<32x32xf32>, vector<32x8xf32>, vector<32x8xf32> -> vector<32x8xf32>
    %158 = vector.broadcast %151 : vector<1x8xf32> to vector<32x8xf32>
    %159 = arith.addf %157, %158 : vector<32x8xf32>
    %160 = vector.shape_cast %159 : vector<32x8xf32> to vector<4x8x8xf32>
    %cst_72 = arith.constant dense<0.000000e+00> : vector<32x8xf32>
    %161 = tpu.matmul %37, %149, %cst_72 {dimension_numbers = #tpu.dot_dimension_numbers<[1], [0], [0], [1], [0, 0, 1, 1], [], []>} : vector<32x32xf32>, vector<32x8xf32>, vector<32x8xf32> -> vector<32x8xf32>
    %162 = vector.broadcast %152 : vector<1x8xf32> to vector<32x8xf32>
    %163 = arith.addf %161, %162 : vector<32x8xf32>
    %164 = vector.shape_cast %163 : vector<32x8xf32> to vector<4x8x8xf32>
    "tpu.trace_start"() <{level = 10 : i32, message = "bqd,bkd->bqk"}> : () -> ()
    %cst_73 = arith.constant dense<0.000000e+00> : vector<4x8x8xf32>
    %165 = tpu.matmul %156, %160, %cst_73 {dimension_numbers = #tpu.dot_dimension_numbers<[2], [2], [1], [1], [0, 0, 0, 1, 1, 1], [0], [0]>} : vector<4x8x8xf32>, vector<4x8x8xf32>, vector<4x8x8xf32> -> vector<4x8x8xf32>
    "tpu.trace_stop"() : () -> ()
    %cst_74 = arith.constant dense<0xFF800000> : vector<4x8xf32>
    %166 = vector.multi_reduction <maximumf>, %165, %cst_74 [2] : vector<4x8x8xf32> to vector<4x8xf32>
    %167 = vector.shape_cast %166 : vector<4x8xf32> to vector<4x8x1xf32>
    %168 = vector.broadcast %167 : vector<4x8x1xf32> to vector<4x8x8xf32>
    %169 = arith.subf %165, %168 : vector<4x8x8xf32>
    %170 = math.exp %169 : vector<4x8x8xf32>
    %cst_75 = arith.constant dense<0.000000e+00> : vector<4x8xf32>
    %171 = vector.multi_reduction <add>, %170, %cst_75 [2] : vector<4x8x8xf32> to vector<4x8xf32>
    %172 = vector.shape_cast %171 : vector<4x8xf32> to vector<4x8x1xf32>
    %173 = tpu.reciprocal %172 {approx = true} : vector<4x8x1xf32> -> vector<4x8x1xf32>
    %174 = vector.broadcast %173 : vector<4x8x1xf32> to vector<4x8x8xf32>
    %175 = arith.mulf %170, %174 : vector<4x8x8xf32>
    "tpu.trace_start"() <{level = 10 : i32, message = "bqk,bkd->bqd"}> : () -> ()
    %cst_76 = arith.constant dense<0.000000e+00> : vector<4x8x8xf32>
    %176 = tpu.matmul %175, %164, %cst_76 {dimension_numbers = #tpu.dot_dimension_numbers<[2], [1], [1], [2], [0, 0, 0, 1, 1, 2], [0], [0]>} : vector<4x8x8xf32>, vector<4x8x8xf32>, vector<4x8x8xf32> -> vector<4x8x8xf32>
    "tpu.trace_stop"() : () -> ()
    %c152 = arith.constant 152 : index
    %c0_77 = arith.constant 0 : index
    %177 = vector.load %arg2[%c152, %c0_77] : memref<410x32xf32, #tpu.memory_space<vmem>>, vector<8x32xf32>
    %178 = vector.shape_cast %176 : vector<4x8x8xf32> to vector<32x8xf32>
    %cst_78 = arith.constant dense<0.000000e+00> : vector<32x32xf32>
    %179 = tpu.matmul %178, %177, %cst_78 {dimension_numbers = #tpu.dot_dimension_numbers<[1], [0], [0], [1], [0, 0, 1, 1], [], []>} : vector<32x8xf32>, vector<8x32xf32>, vector<32x32xf32> -> vector<32x32xf32>
    %180 = arith.addf %146, %179 : vector<32x32xf32>
    %181 = arith.addf %37, %180 : vector<32x32xf32>
    %cst_79 = arith.constant dense<0.000000e+00> : vector<32xf32>
    %182 = vector.multi_reduction <add>, %181, %cst_79 [1] : vector<32x32xf32> to vector<32xf32>
    %183 = vector.shape_cast %182 : vector<32xf32> to vector<32x1xf32>
    %cst_80 = arith.constant 3.200000e+01 : f32
    %184 = vector.broadcast %cst_80 : f32 to vector<32x1xf32>
    %185 = arith.divf %183, %184 : vector<32x1xf32>
    %186 = vector.broadcast %185 : vector<32x1xf32> to vector<32x32xf32>
    %187 = arith.subf %181, %186 : vector<32x32xf32>
    %188 = arith.mulf %187, %187 : vector<32x32xf32>
    %cst_81 = arith.constant dense<0.000000e+00> : vector<32xf32>
    %189 = vector.multi_reduction <add>, %188, %cst_81 [1] : vector<32x32xf32> to vector<32xf32>
    %190 = vector.shape_cast %189 : vector<32xf32> to vector<32x1xf32>
    %cst_82 = arith.constant 3.200000e+01 : f32
    %191 = vector.broadcast %cst_82 : f32 to vector<32x1xf32>
    %192 = arith.divf %190, %191 : vector<32x1xf32>
    %193 = vector.broadcast %185 : vector<32x1xf32> to vector<32x32xf32>
    %194 = arith.subf %181, %193 : vector<32x32xf32>
    %cst_83 = arith.constant 9.99999996E-13 : f32
    %195 = vector.broadcast %cst_83 : f32 to vector<32x1xf32>
    %196 = arith.addf %192, %195 : vector<32x1xf32>
    %197 = math.rsqrt %196 : vector<32x1xf32>
    %198 = vector.broadcast %197 : vector<32x1xf32> to vector<32x32xf32>
    %199 = arith.mulf %194, %198 : vector<32x32xf32>
    %200 = vector.broadcast %39 : vector<1x32xf32> to vector<32x32xf32>
    %201 = arith.mulf %199, %200 : vector<32x32xf32>
    %202 = vector.broadcast %40 : vector<1x32xf32> to vector<32x32xf32>
    %203 = arith.addf %201, %202 : vector<32x32xf32>
    %c0_84 = arith.constant 0 : index
    %c0_85 = arith.constant 0 : index
    %204 = vector.load %arg4[%c0_84, %c0_85] : memref<66x64xf32, #tpu.memory_space<vmem>>, vector<32x64xf32>
    %c64_86 = arith.constant 64 : index
    %c0_87 = arith.constant 0 : index
    %205 = vector.load %arg4[%c64_86, %c0_87] : memref<66x64xf32, #tpu.memory_space<vmem>>, vector<1x64xf32>
    %c192_88 = arith.constant 192 : index
    %c0_89 = arith.constant 0 : index
    %206 = vector.load %arg2[%c192_88, %c0_89] : memref<410x32xf32, #tpu.memory_space<vmem>>, vector<64x32xf32>
    %cst_90 = arith.constant dense<0.000000e+00> : vector<32x64xf32>
    %207 = tpu.matmul %203, %204, %cst_90 {dimension_numbers = #tpu.dot_dimension_numbers<[1], [0], [0], [1], [0, 0, 1, 1], [], []>} : vector<32x32xf32>, vector<32x64xf32>, vector<32x64xf32> -> vector<32x64xf32>
    %208 = vector.broadcast %205 : vector<1x64xf32> to vector<32x64xf32>
    %209 = arith.addf %207, %208 : vector<32x64xf32>
    %cst_91 = arith.constant 5.000000e-01 : f32
    %210 = vector.broadcast %cst_91 : f32 to vector<32x64xf32>
    %211 = arith.mulf %210, %209 : vector<32x64xf32>
    %cst_92 = arith.constant 4.471500e-02 : f32
    %212 = vector.broadcast %cst_92 : f32 to vector<32x64xf32>
    %213 = arith.mulf %212, %209 : vector<32x64xf32>
    %214 = arith.mulf %213, %209 : vector<32x64xf32>
    %215 = arith.mulf %214, %209 : vector<32x64xf32>
    %216 = arith.addf %209, %215 : vector<32x64xf32>
    %cst_93 = arith.constant 0.797884583 : f32
    %217 = vector.broadcast %cst_93 : f32 to vector<32x64xf32>
    %218 = arith.mulf %217, %216 : vector<32x64xf32>
    %219 = math.tanh %218 : vector<32x64xf32>
    %cst_94 = arith.constant 1.000000e+00 : f32
    %220 = vector.broadcast %cst_94 : f32 to vector<32x64xf32>
    %221 = arith.addf %220, %219 : vector<32x64xf32>
    %222 = arith.mulf %211, %221 : vector<32x64xf32>
    %cst_95 = arith.constant dense<0.000000e+00> : vector<32x32xf32>
    %223 = tpu.matmul %222, %206, %cst_95 {dimension_numbers = #tpu.dot_dimension_numbers<[1], [0], [0], [1], [0, 0, 1, 1], [], []>} : vector<32x64xf32>, vector<64x32xf32>, vector<32x32xf32> -> vector<32x32xf32>
    %224 = vector.broadcast %41 : vector<1x32xf32> to vector<32x32xf32>
    %225 = arith.addf %223, %224 : vector<32x32xf32>
    %226 = arith.addf %203, %225 : vector<32x32xf32>
    %cst_96 = arith.constant dense<0.000000e+00> : vector<32xf32>
    %227 = vector.multi_reduction <add>, %226, %cst_96 [1] : vector<32x32xf32> to vector<32xf32>
    %228 = vector.shape_cast %227 : vector<32xf32> to vector<32x1xf32>
    %cst_97 = arith.constant 3.200000e+01 : f32
    %229 = vector.broadcast %cst_97 : f32 to vector<32x1xf32>
    %230 = arith.divf %228, %229 : vector<32x1xf32>
    %231 = vector.broadcast %230 : vector<32x1xf32> to vector<32x32xf32>
    %232 = arith.subf %226, %231 : vector<32x32xf32>
    %233 = arith.mulf %232, %232 : vector<32x32xf32>
    %cst_98 = arith.constant dense<0.000000e+00> : vector<32xf32>
    %234 = vector.multi_reduction <add>, %233, %cst_98 [1] : vector<32x32xf32> to vector<32xf32>
    %235 = vector.shape_cast %234 : vector<32xf32> to vector<32x1xf32>
    %cst_99 = arith.constant 3.200000e+01 : f32
    %236 = vector.broadcast %cst_99 : f32 to vector<32x1xf32>
    %237 = arith.divf %235, %236 : vector<32x1xf32>
    %238 = vector.broadcast %230 : vector<32x1xf32> to vector<32x32xf32>
    %239 = arith.subf %226, %238 : vector<32x32xf32>
    %cst_100 = arith.constant 9.99999996E-13 : f32
    %240 = vector.broadcast %cst_100 : f32 to vector<32x1xf32>
    %241 = arith.addf %237, %240 : vector<32x1xf32>
    %242 = math.rsqrt %241 : vector<32x1xf32>
    %243 = vector.broadcast %242 : vector<32x1xf32> to vector<32x32xf32>
    %244 = arith.mulf %239, %243 : vector<32x32xf32>
    %245 = vector.broadcast %42 : vector<1x32xf32> to vector<32x32xf32>
    %246 = arith.mulf %244, %245 : vector<32x32xf32>
    %247 = vector.broadcast %43 : vector<1x32xf32> to vector<32x32xf32>
    %248 = arith.addf %246, %247 : vector<32x32xf32>
    %c404 = arith.constant 404 : index
    %c0_101 = arith.constant 0 : index
    %249 = vector.load %arg2[%c404, %c0_101] : memref<410x32xf32, #tpu.memory_space<vmem>>, vector<1x32xf32>
    %c405 = arith.constant 405 : index
    %c0_102 = arith.constant 0 : index
    %250 = vector.load %arg2[%c405, %c0_102] : memref<410x32xf32, #tpu.memory_space<vmem>>, vector<1x32xf32>
    %c406 = arith.constant 406 : index
    %c0_103 = arith.constant 0 : index
    %251 = vector.load %arg2[%c406, %c0_103] : memref<410x32xf32, #tpu.memory_space<vmem>>, vector<1x32xf32>
    %c407 = arith.constant 407 : index
    %c0_104 = arith.constant 0 : index
    %252 = vector.load %arg2[%c407, %c0_104] : memref<410x32xf32, #tpu.memory_space<vmem>>, vector<1x32xf32>
    %c408 = arith.constant 408 : index
    %c0_105 = arith.constant 0 : index
    %253 = vector.load %arg2[%c408, %c0_105] : memref<410x32xf32, #tpu.memory_space<vmem>>, vector<1x32xf32>
    %c409 = arith.constant 409 : index
    %c0_106 = arith.constant 0 : index
    %254 = vector.load %arg2[%c409, %c0_106] : memref<410x32xf32, #tpu.memory_space<vmem>>, vector<1x32xf32>
    %c384_107 = arith.constant 384 : index
    %c0_108 = arith.constant 0 : index
    %255 = vector.load %arg3[%c384_107, %c0_108] : memref<792x8xf32, #tpu.memory_space<vmem>>, vector<32x8xf32>
    %c512 = arith.constant 512 : index
    %c0_109 = arith.constant 0 : index
    %256 = vector.load %arg3[%c512, %c0_109] : memref<792x8xf32, #tpu.memory_space<vmem>>, vector<32x8xf32>
    %c640 = arith.constant 640 : index
    %c0_110 = arith.constant 0 : index
    %257 = vector.load %arg3[%c640, %c0_110] : memref<792x8xf32, #tpu.memory_space<vmem>>, vector<32x8xf32>
    %c780 = arith.constant 780 : index
    %c0_111 = arith.constant 0 : index
    %258 = vector.load %arg3[%c780, %c0_111] : memref<792x8xf32, #tpu.memory_space<vmem>>, vector<1x8xf32>
    %c784 = arith.constant 784 : index
    %c0_112 = arith.constant 0 : index
    %259 = vector.load %arg3[%c784, %c0_112] : memref<792x8xf32, #tpu.memory_space<vmem>>, vector<1x8xf32>
    %c788 = arith.constant 788 : index
    %c0_113 = arith.constant 0 : index
    %260 = vector.load %arg3[%c788, %c0_113] : memref<792x8xf32, #tpu.memory_space<vmem>>, vector<1x8xf32>
    %cst_114 = arith.constant dense<0.000000e+00> : vector<32x8xf32>
    %261 = tpu.matmul %248, %255, %cst_114 {dimension_numbers = #tpu.dot_dimension_numbers<[1], [0], [0], [1], [0, 0, 1, 1], [], []>} : vector<32x32xf32>, vector<32x8xf32>, vector<32x8xf32> -> vector<32x8xf32>
    %262 = vector.broadcast %258 : vector<1x8xf32> to vector<32x8xf32>
    %263 = arith.addf %261, %262 : vector<32x8xf32>
    %264 = vector.shape_cast %263 : vector<32x8xf32> to vector<4x8x8xf32>
    %cst_115 = arith.constant dense<0.000000e+00> : vector<32x8xf32>
    %265 = tpu.matmul %248, %256, %cst_115 {dimension_numbers = #tpu.dot_dimension_numbers<[1], [0], [0], [1], [0, 0, 1, 1], [], []>} : vector<32x32xf32>, vector<32x8xf32>, vector<32x8xf32> -> vector<32x8xf32>
    %266 = vector.broadcast %259 : vector<1x8xf32> to vector<32x8xf32>
    %267 = arith.addf %265, %266 : vector<32x8xf32>
    %268 = vector.shape_cast %267 : vector<32x8xf32> to vector<4x8x8xf32>
    %cst_116 = arith.constant dense<0.000000e+00> : vector<32x8xf32>
    %269 = tpu.matmul %248, %257, %cst_116 {dimension_numbers = #tpu.dot_dimension_numbers<[1], [0], [0], [1], [0, 0, 1, 1], [], []>} : vector<32x32xf32>, vector<32x8xf32>, vector<32x8xf32> -> vector<32x8xf32>
    %270 = vector.broadcast %260 : vector<1x8xf32> to vector<32x8xf32>
    %271 = arith.addf %269, %270 : vector<32x8xf32>
    %272 = vector.shape_cast %271 : vector<32x8xf32> to vector<4x8x8xf32>
    "tpu.trace_start"() <{level = 10 : i32, message = "bqd,bkd->bqk"}> : () -> ()
    %cst_117 = arith.constant dense<0.000000e+00> : vector<4x8x8xf32>
    %273 = tpu.matmul %264, %268, %cst_117 {dimension_numbers = #tpu.dot_dimension_numbers<[2], [2], [1], [1], [0, 0, 0, 1, 1, 1], [0], [0]>} : vector<4x8x8xf32>, vector<4x8x8xf32>, vector<4x8x8xf32> -> vector<4x8x8xf32>
    "tpu.trace_stop"() : () -> ()
    %cst_118 = arith.constant dense<0xFF800000> : vector<4x8xf32>
    %274 = vector.multi_reduction <maximumf>, %273, %cst_118 [2] : vector<4x8x8xf32> to vector<4x8xf32>
    %275 = vector.shape_cast %274 : vector<4x8xf32> to vector<4x8x1xf32>
    %276 = vector.broadcast %275 : vector<4x8x1xf32> to vector<4x8x8xf32>
    %277 = arith.subf %273, %276 : vector<4x8x8xf32>
    %278 = math.exp %277 : vector<4x8x8xf32>
    %cst_119 = arith.constant dense<0.000000e+00> : vector<4x8xf32>
    %279 = vector.multi_reduction <add>, %278, %cst_119 [2] : vector<4x8x8xf32> to vector<4x8xf32>
    %280 = vector.shape_cast %279 : vector<4x8xf32> to vector<4x8x1xf32>
    %281 = tpu.reciprocal %280 {approx = true} : vector<4x8x1xf32> -> vector<4x8x1xf32>
    %282 = vector.broadcast %281 : vector<4x8x1xf32> to vector<4x8x8xf32>
    %283 = arith.mulf %278, %282 : vector<4x8x8xf32>
    "tpu.trace_start"() <{level = 10 : i32, message = "bqk,bkd->bqd"}> : () -> ()
    %cst_120 = arith.constant dense<0.000000e+00> : vector<4x8x8xf32>
    %284 = tpu.matmul %283, %272, %cst_120 {dimension_numbers = #tpu.dot_dimension_numbers<[2], [1], [1], [2], [0, 0, 0, 1, 1, 2], [0], [0]>} : vector<4x8x8xf32>, vector<4x8x8xf32>, vector<4x8x8xf32> -> vector<4x8x8xf32>
    "tpu.trace_stop"() : () -> ()
    %c160_121 = arith.constant 160 : index
    %c0_122 = arith.constant 0 : index
    %285 = vector.load %arg2[%c160_121, %c0_122] : memref<410x32xf32, #tpu.memory_space<vmem>>, vector<8x32xf32>
    %286 = vector.shape_cast %284 : vector<4x8x8xf32> to vector<32x8xf32>
    %cst_123 = arith.constant dense<0.000000e+00> : vector<32x32xf32>
    %287 = tpu.matmul %286, %285, %cst_123 {dimension_numbers = #tpu.dot_dimension_numbers<[1], [0], [0], [1], [0, 0, 1, 1], [], []>} : vector<32x8xf32>, vector<8x32xf32>, vector<32x32xf32> -> vector<32x32xf32>
    %288 = vector.broadcast %249 : vector<1x32xf32> to vector<32x32xf32>
    %289 = arith.addf %288, %287 : vector<32x32xf32>
    %c416 = arith.constant 416 : index
    %c0_124 = arith.constant 0 : index
    %290 = vector.load %arg3[%c416, %c0_124] : memref<792x8xf32, #tpu.memory_space<vmem>>, vector<32x8xf32>
    %c544 = arith.constant 544 : index
    %c0_125 = arith.constant 0 : index
    %291 = vector.load %arg3[%c544, %c0_125] : memref<792x8xf32, #tpu.memory_space<vmem>>, vector<32x8xf32>
    %c672 = arith.constant 672 : index
    %c0_126 = arith.constant 0 : index
    %292 = vector.load %arg3[%c672, %c0_126] : memref<792x8xf32, #tpu.memory_space<vmem>>, vector<32x8xf32>
    %c781 = arith.constant 781 : index
    %c0_127 = arith.constant 0 : index
    %293 = vector.load %arg3[%c781, %c0_127] : memref<792x8xf32, #tpu.memory_space<vmem>>, vector<1x8xf32>
    %c785 = arith.constant 785 : index
    %c0_128 = arith.constant 0 : index
    %294 = vector.load %arg3[%c785, %c0_128] : memref<792x8xf32, #tpu.memory_space<vmem>>, vector<1x8xf32>
    %c789 = arith.constant 789 : index
    %c0_129 = arith.constant 0 : index
    %295 = vector.load %arg3[%c789, %c0_129] : memref<792x8xf32, #tpu.memory_space<vmem>>, vector<1x8xf32>
    %cst_130 = arith.constant dense<0.000000e+00> : vector<32x8xf32>
    %296 = tpu.matmul %248, %290, %cst_130 {dimension_numbers = #tpu.dot_dimension_numbers<[1], [0], [0], [1], [0, 0, 1, 1], [], []>} : vector<32x32xf32>, vector<32x8xf32>, vector<32x8xf32> -> vector<32x8xf32>
    %297 = vector.broadcast %293 : vector<1x8xf32> to vector<32x8xf32>
    %298 = arith.addf %296, %297 : vector<32x8xf32>
    %299 = vector.shape_cast %298 : vector<32x8xf32> to vector<4x8x8xf32>
    %cst_131 = arith.constant dense<0.000000e+00> : vector<32x8xf32>
    %300 = tpu.matmul %248, %291, %cst_131 {dimension_numbers = #tpu.dot_dimension_numbers<[1], [0], [0], [1], [0, 0, 1, 1], [], []>} : vector<32x32xf32>, vector<32x8xf32>, vector<32x8xf32> -> vector<32x8xf32>
    %301 = vector.broadcast %294 : vector<1x8xf32> to vector<32x8xf32>
    %302 = arith.addf %300, %301 : vector<32x8xf32>
    %303 = vector.shape_cast %302 : vector<32x8xf32> to vector<4x8x8xf32>
    %cst_132 = arith.constant dense<0.000000e+00> : vector<32x8xf32>
    %304 = tpu.matmul %248, %292, %cst_132 {dimension_numbers = #tpu.dot_dimension_numbers<[1], [0], [0], [1], [0, 0, 1, 1], [], []>} : vector<32x32xf32>, vector<32x8xf32>, vector<32x8xf32> -> vector<32x8xf32>
    %305 = vector.broadcast %295 : vector<1x8xf32> to vector<32x8xf32>
    %306 = arith.addf %304, %305 : vector<32x8xf32>
    %307 = vector.shape_cast %306 : vector<32x8xf32> to vector<4x8x8xf32>
    "tpu.trace_start"() <{level = 10 : i32, message = "bqd,bkd->bqk"}> : () -> ()
    %cst_133 = arith.constant dense<0.000000e+00> : vector<4x8x8xf32>
    %308 = tpu.matmul %299, %303, %cst_133 {dimension_numbers = #tpu.dot_dimension_numbers<[2], [2], [1], [1], [0, 0, 0, 1, 1, 1], [0], [0]>} : vector<4x8x8xf32>, vector<4x8x8xf32>, vector<4x8x8xf32> -> vector<4x8x8xf32>
    "tpu.trace_stop"() : () -> ()
    %cst_134 = arith.constant dense<0xFF800000> : vector<4x8xf32>
    %309 = vector.multi_reduction <maximumf>, %308, %cst_134 [2] : vector<4x8x8xf32> to vector<4x8xf32>
    %310 = vector.shape_cast %309 : vector<4x8xf32> to vector<4x8x1xf32>
    %311 = vector.broadcast %310 : vector<4x8x1xf32> to vector<4x8x8xf32>
    %312 = arith.subf %308, %311 : vector<4x8x8xf32>
    %313 = math.exp %312 : vector<4x8x8xf32>
    %cst_135 = arith.constant dense<0.000000e+00> : vector<4x8xf32>
    %314 = vector.multi_reduction <add>, %313, %cst_135 [2] : vector<4x8x8xf32> to vector<4x8xf32>
    %315 = vector.shape_cast %314 : vector<4x8xf32> to vector<4x8x1xf32>
    %316 = tpu.reciprocal %315 {approx = true} : vector<4x8x1xf32> -> vector<4x8x1xf32>
    %317 = vector.broadcast %316 : vector<4x8x1xf32> to vector<4x8x8xf32>
    %318 = arith.mulf %313, %317 : vector<4x8x8xf32>
    "tpu.trace_start"() <{level = 10 : i32, message = "bqk,bkd->bqd"}> : () -> ()
    %cst_136 = arith.constant dense<0.000000e+00> : vector<4x8x8xf32>
    %319 = tpu.matmul %318, %307, %cst_136 {dimension_numbers = #tpu.dot_dimension_numbers<[2], [1], [1], [2], [0, 0, 0, 1, 1, 2], [0], [0]>} : vector<4x8x8xf32>, vector<4x8x8xf32>, vector<4x8x8xf32> -> vector<4x8x8xf32>
    "tpu.trace_stop"() : () -> ()
    %c168 = arith.constant 168 : index
    %c0_137 = arith.constant 0 : index
    %320 = vector.load %arg2[%c168, %c0_137] : memref<410x32xf32, #tpu.memory_space<vmem>>, vector<8x32xf32>
    %321 = vector.shape_cast %319 : vector<4x8x8xf32> to vector<32x8xf32>
    %cst_138 = arith.constant dense<0.000000e+00> : vector<32x32xf32>
    %322 = tpu.matmul %321, %320, %cst_138 {dimension_numbers = #tpu.dot_dimension_numbers<[1], [0], [0], [1], [0, 0, 1, 1], [], []>} : vector<32x8xf32>, vector<8x32xf32>, vector<32x32xf32> -> vector<32x32xf32>
    %323 = arith.addf %289, %322 : vector<32x32xf32>
    %c448 = arith.constant 448 : index
    %c0_139 = arith.constant 0 : index
    %324 = vector.load %arg3[%c448, %c0_139] : memref<792x8xf32, #tpu.memory_space<vmem>>, vector<32x8xf32>
    %c576 = arith.constant 576 : index
    %c0_140 = arith.constant 0 : index
    %325 = vector.load %arg3[%c576, %c0_140] : memref<792x8xf32, #tpu.memory_space<vmem>>, vector<32x8xf32>
    %c704 = arith.constant 704 : index
    %c0_141 = arith.constant 0 : index
    %326 = vector.load %arg3[%c704, %c0_141] : memref<792x8xf32, #tpu.memory_space<vmem>>, vector<32x8xf32>
    %c782 = arith.constant 782 : index
    %c0_142 = arith.constant 0 : index
    %327 = vector.load %arg3[%c782, %c0_142] : memref<792x8xf32, #tpu.memory_space<vmem>>, vector<1x8xf32>
    %c786 = arith.constant 786 : index
    %c0_143 = arith.constant 0 : index
    %328 = vector.load %arg3[%c786, %c0_143] : memref<792x8xf32, #tpu.memory_space<vmem>>, vector<1x8xf32>
    %c790 = arith.constant 790 : index
    %c0_144 = arith.constant 0 : index
    %329 = vector.load %arg3[%c790, %c0_144] : memref<792x8xf32, #tpu.memory_space<vmem>>, vector<1x8xf32>
    %cst_145 = arith.constant dense<0.000000e+00> : vector<32x8xf32>
    %330 = tpu.matmul %248, %324, %cst_145 {dimension_numbers = #tpu.dot_dimension_numbers<[1], [0], [0], [1], [0, 0, 1, 1], [], []>} : vector<32x32xf32>, vector<32x8xf32>, vector<32x8xf32> -> vector<32x8xf32>
    %331 = vector.broadcast %327 : vector<1x8xf32> to vector<32x8xf32>
    %332 = arith.addf %330, %331 : vector<32x8xf32>
    %333 = vector.shape_cast %332 : vector<32x8xf32> to vector<4x8x8xf32>
    %cst_146 = arith.constant dense<0.000000e+00> : vector<32x8xf32>
    %334 = tpu.matmul %248, %325, %cst_146 {dimension_numbers = #tpu.dot_dimension_numbers<[1], [0], [0], [1], [0, 0, 1, 1], [], []>} : vector<32x32xf32>, vector<32x8xf32>, vector<32x8xf32> -> vector<32x8xf32>
    %335 = vector.broadcast %328 : vector<1x8xf32> to vector<32x8xf32>
    %336 = arith.addf %334, %335 : vector<32x8xf32>
    %337 = vector.shape_cast %336 : vector<32x8xf32> to vector<4x8x8xf32>
    %cst_147 = arith.constant dense<0.000000e+00> : vector<32x8xf32>
    %338 = tpu.matmul %248, %326, %cst_147 {dimension_numbers = #tpu.dot_dimension_numbers<[1], [0], [0], [1], [0, 0, 1, 1], [], []>} : vector<32x32xf32>, vector<32x8xf32>, vector<32x8xf32> -> vector<32x8xf32>
    %339 = vector.broadcast %329 : vector<1x8xf32> to vector<32x8xf32>
    %340 = arith.addf %338, %339 : vector<32x8xf32>
    %341 = vector.shape_cast %340 : vector<32x8xf32> to vector<4x8x8xf32>
    "tpu.trace_start"() <{level = 10 : i32, message = "bqd,bkd->bqk"}> : () -> ()
    %cst_148 = arith.constant dense<0.000000e+00> : vector<4x8x8xf32>
    %342 = tpu.matmul %333, %337, %cst_148 {dimension_numbers = #tpu.dot_dimension_numbers<[2], [2], [1], [1], [0, 0, 0, 1, 1, 1], [0], [0]>} : vector<4x8x8xf32>, vector<4x8x8xf32>, vector<4x8x8xf32> -> vector<4x8x8xf32>
    "tpu.trace_stop"() : () -> ()
    %cst_149 = arith.constant dense<0xFF800000> : vector<4x8xf32>
    %343 = vector.multi_reduction <maximumf>, %342, %cst_149 [2] : vector<4x8x8xf32> to vector<4x8xf32>
    %344 = vector.shape_cast %343 : vector<4x8xf32> to vector<4x8x1xf32>
    %345 = vector.broadcast %344 : vector<4x8x1xf32> to vector<4x8x8xf32>
    %346 = arith.subf %342, %345 : vector<4x8x8xf32>
    %347 = math.exp %346 : vector<4x8x8xf32>
    %cst_150 = arith.constant dense<0.000000e+00> : vector<4x8xf32>
    %348 = vector.multi_reduction <add>, %347, %cst_150 [2] : vector<4x8x8xf32> to vector<4x8xf32>
    %349 = vector.shape_cast %348 : vector<4x8xf32> to vector<4x8x1xf32>
    %350 = tpu.reciprocal %349 {approx = true} : vector<4x8x1xf32> -> vector<4x8x1xf32>
    %351 = vector.broadcast %350 : vector<4x8x1xf32> to vector<4x8x8xf32>
    %352 = arith.mulf %347, %351 : vector<4x8x8xf32>
    "tpu.trace_start"() <{level = 10 : i32, message = "bqk,bkd->bqd"}> : () -> ()
    %cst_151 = arith.constant dense<0.000000e+00> : vector<4x8x8xf32>
    %353 = tpu.matmul %352, %341, %cst_151 {dimension_numbers = #tpu.dot_dimension_numbers<[2], [1], [1], [2], [0, 0, 0, 1, 1, 2], [0], [0]>} : vector<4x8x8xf32>, vector<4x8x8xf32>, vector<4x8x8xf32> -> vector<4x8x8xf32>
    "tpu.trace_stop"() : () -> ()
    %c176 = arith.constant 176 : index
    %c0_152 = arith.constant 0 : index
    %354 = vector.load %arg2[%c176, %c0_152] : memref<410x32xf32, #tpu.memory_space<vmem>>, vector<8x32xf32>
    %355 = vector.shape_cast %353 : vector<4x8x8xf32> to vector<32x8xf32>
    %cst_153 = arith.constant dense<0.000000e+00> : vector<32x32xf32>
    %356 = tpu.matmul %355, %354, %cst_153 {dimension_numbers = #tpu.dot_dimension_numbers<[1], [0], [0], [1], [0, 0, 1, 1], [], []>} : vector<32x8xf32>, vector<8x32xf32>, vector<32x32xf32> -> vector<32x32xf32>
    %357 = arith.addf %323, %356 : vector<32x32xf32>
    %c480 = arith.constant 480 : index
    %c0_154 = arith.constant 0 : index
    %358 = vector.load %arg3[%c480, %c0_154] : memref<792x8xf32, #tpu.memory_space<vmem>>, vector<32x8xf32>
    %c608 = arith.constant 608 : index
    %c0_155 = arith.constant 0 : index
    %359 = vector.load %arg3[%c608, %c0_155] : memref<792x8xf32, #tpu.memory_space<vmem>>, vector<32x8xf32>
    %c736 = arith.constant 736 : index
    %c0_156 = arith.constant 0 : index
    %360 = vector.load %arg3[%c736, %c0_156] : memref<792x8xf32, #tpu.memory_space<vmem>>, vector<32x8xf32>
    %c783 = arith.constant 783 : index
    %c0_157 = arith.constant 0 : index
    %361 = vector.load %arg3[%c783, %c0_157] : memref<792x8xf32, #tpu.memory_space<vmem>>, vector<1x8xf32>
    %c787 = arith.constant 787 : index
    %c0_158 = arith.constant 0 : index
    %362 = vector.load %arg3[%c787, %c0_158] : memref<792x8xf32, #tpu.memory_space<vmem>>, vector<1x8xf32>
    %c791 = arith.constant 791 : index
    %c0_159 = arith.constant 0 : index
    %363 = vector.load %arg3[%c791, %c0_159] : memref<792x8xf32, #tpu.memory_space<vmem>>, vector<1x8xf32>
    %cst_160 = arith.constant dense<0.000000e+00> : vector<32x8xf32>
    %364 = tpu.matmul %248, %358, %cst_160 {dimension_numbers = #tpu.dot_dimension_numbers<[1], [0], [0], [1], [0, 0, 1, 1], [], []>} : vector<32x32xf32>, vector<32x8xf32>, vector<32x8xf32> -> vector<32x8xf32>
    %365 = vector.broadcast %361 : vector<1x8xf32> to vector<32x8xf32>
    %366 = arith.addf %364, %365 : vector<32x8xf32>
    %367 = vector.shape_cast %366 : vector<32x8xf32> to vector<4x8x8xf32>
    %cst_161 = arith.constant dense<0.000000e+00> : vector<32x8xf32>
    %368 = tpu.matmul %248, %359, %cst_161 {dimension_numbers = #tpu.dot_dimension_numbers<[1], [0], [0], [1], [0, 0, 1, 1], [], []>} : vector<32x32xf32>, vector<32x8xf32>, vector<32x8xf32> -> vector<32x8xf32>
    %369 = vector.broadcast %362 : vector<1x8xf32> to vector<32x8xf32>
    %370 = arith.addf %368, %369 : vector<32x8xf32>
    %371 = vector.shape_cast %370 : vector<32x8xf32> to vector<4x8x8xf32>
    %cst_162 = arith.constant dense<0.000000e+00> : vector<32x8xf32>
    %372 = tpu.matmul %248, %360, %cst_162 {dimension_numbers = #tpu.dot_dimension_numbers<[1], [0], [0], [1], [0, 0, 1, 1], [], []>} : vector<32x32xf32>, vector<32x8xf32>, vector<32x8xf32> -> vector<32x8xf32>
    %373 = vector.broadcast %363 : vector<1x8xf32> to vector<32x8xf32>
    %374 = arith.addf %372, %373 : vector<32x8xf32>
    %375 = vector.shape_cast %374 : vector<32x8xf32> to vector<4x8x8xf32>
    "tpu.trace_start"() <{level = 10 : i32, message = "bqd,bkd->bqk"}> : () -> ()
    %cst_163 = arith.constant dense<0.000000e+00> : vector<4x8x8xf32>
    %376 = tpu.matmul %367, %371, %cst_163 {dimension_numbers = #tpu.dot_dimension_numbers<[2], [2], [1], [1], [0, 0, 0, 1, 1, 1], [0], [0]>} : vector<4x8x8xf32>, vector<4x8x8xf32>, vector<4x8x8xf32> -> vector<4x8x8xf32>
    "tpu.trace_stop"() : () -> ()
    %cst_164 = arith.constant dense<0xFF800000> : vector<4x8xf32>
    %377 = vector.multi_reduction <maximumf>, %376, %cst_164 [2] : vector<4x8x8xf32> to vector<4x8xf32>
    %378 = vector.shape_cast %377 : vector<4x8xf32> to vector<4x8x1xf32>
    %379 = vector.broadcast %378 : vector<4x8x1xf32> to vector<4x8x8xf32>
    %380 = arith.subf %376, %379 : vector<4x8x8xf32>
    %381 = math.exp %380 : vector<4x8x8xf32>
    %cst_165 = arith.constant dense<0.000000e+00> : vector<4x8xf32>
    %382 = vector.multi_reduction <add>, %381, %cst_165 [2] : vector<4x8x8xf32> to vector<4x8xf32>
    %383 = vector.shape_cast %382 : vector<4x8xf32> to vector<4x8x1xf32>
    %384 = tpu.reciprocal %383 {approx = true} : vector<4x8x1xf32> -> vector<4x8x1xf32>
    %385 = vector.broadcast %384 : vector<4x8x1xf32> to vector<4x8x8xf32>
    %386 = arith.mulf %381, %385 : vector<4x8x8xf32>
    "tpu.trace_start"() <{level = 10 : i32, message = "bqk,bkd->bqd"}> : () -> ()
    %cst_166 = arith.constant dense<0.000000e+00> : vector<4x8x8xf32>
    %387 = tpu.matmul %386, %375, %cst_166 {dimension_numbers = #tpu.dot_dimension_numbers<[2], [1], [1], [2], [0, 0, 0, 1, 1, 2], [0], [0]>} : vector<4x8x8xf32>, vector<4x8x8xf32>, vector<4x8x8xf32> -> vector<4x8x8xf32>
    "tpu.trace_stop"() : () -> ()
    %c184 = arith.constant 184 : index
    %c0_167 = arith.constant 0 : index
    %388 = vector.load %arg2[%c184, %c0_167] : memref<410x32xf32, #tpu.memory_space<vmem>>, vector<8x32xf32>
    %389 = vector.shape_cast %387 : vector<4x8x8xf32> to vector<32x8xf32>
    %cst_168 = arith.constant dense<0.000000e+00> : vector<32x32xf32>
    %390 = tpu.matmul %389, %388, %cst_168 {dimension_numbers = #tpu.dot_dimension_numbers<[1], [0], [0], [1], [0, 0, 1, 1], [], []>} : vector<32x8xf32>, vector<8x32xf32>, vector<32x32xf32> -> vector<32x32xf32>
    %391 = arith.addf %357, %390 : vector<32x32xf32>
    %392 = arith.addf %248, %391 : vector<32x32xf32>
    %cst_169 = arith.constant dense<0.000000e+00> : vector<32xf32>
    %393 = vector.multi_reduction <add>, %392, %cst_169 [1] : vector<32x32xf32> to vector<32xf32>
    %394 = vector.shape_cast %393 : vector<32xf32> to vector<32x1xf32>
    %cst_170 = arith.constant 3.200000e+01 : f32
    %395 = vector.broadcast %cst_170 : f32 to vector<32x1xf32>
    %396 = arith.divf %394, %395 : vector<32x1xf32>
    %397 = vector.broadcast %396 : vector<32x1xf32> to vector<32x32xf32>
    %398 = arith.subf %392, %397 : vector<32x32xf32>
    %399 = arith.mulf %398, %398 : vector<32x32xf32>
    %cst_171 = arith.constant dense<0.000000e+00> : vector<32xf32>
    %400 = vector.multi_reduction <add>, %399, %cst_171 [1] : vector<32x32xf32> to vector<32xf32>
    %401 = vector.shape_cast %400 : vector<32xf32> to vector<32x1xf32>
    %cst_172 = arith.constant 3.200000e+01 : f32
    %402 = vector.broadcast %cst_172 : f32 to vector<32x1xf32>
    %403 = arith.divf %401, %402 : vector<32x1xf32>
    %404 = vector.broadcast %396 : vector<32x1xf32> to vector<32x32xf32>
    %405 = arith.subf %392, %404 : vector<32x32xf32>
    %cst_173 = arith.constant 9.99999996E-13 : f32
    %406 = vector.broadcast %cst_173 : f32 to vector<32x1xf32>
    %407 = arith.addf %403, %406 : vector<32x1xf32>
    %408 = math.rsqrt %407 : vector<32x1xf32>
    %409 = vector.broadcast %408 : vector<32x1xf32> to vector<32x32xf32>
    %410 = arith.mulf %405, %409 : vector<32x32xf32>
    %411 = vector.broadcast %250 : vector<1x32xf32> to vector<32x32xf32>
    %412 = arith.mulf %410, %411 : vector<32x32xf32>
    %413 = vector.broadcast %251 : vector<1x32xf32> to vector<32x32xf32>
    %414 = arith.addf %412, %413 : vector<32x32xf32>
    %c32_174 = arith.constant 32 : index
    %c0_175 = arith.constant 0 : index
    %415 = vector.load %arg4[%c32_174, %c0_175] : memref<66x64xf32, #tpu.memory_space<vmem>>, vector<32x64xf32>
    %c65 = arith.constant 65 : index
    %c0_176 = arith.constant 0 : index
    %416 = vector.load %arg4[%c65, %c0_176] : memref<66x64xf32, #tpu.memory_space<vmem>>, vector<1x64xf32>
    %c256_177 = arith.constant 256 : index
    %c0_178 = arith.constant 0 : index
    %417 = vector.load %arg2[%c256_177, %c0_178] : memref<410x32xf32, #tpu.memory_space<vmem>>, vector<64x32xf32>
    %cst_179 = arith.constant dense<0.000000e+00> : vector<32x64xf32>
    %418 = tpu.matmul %414, %415, %cst_179 {dimension_numbers = #tpu.dot_dimension_numbers<[1], [0], [0], [1], [0, 0, 1, 1], [], []>} : vector<32x32xf32>, vector<32x64xf32>, vector<32x64xf32> -> vector<32x64xf32>
    %419 = vector.broadcast %416 : vector<1x64xf32> to vector<32x64xf32>
    %420 = arith.addf %418, %419 : vector<32x64xf32>
    %cst_180 = arith.constant 5.000000e-01 : f32
    %421 = vector.broadcast %cst_180 : f32 to vector<32x64xf32>
    %422 = arith.mulf %421, %420 : vector<32x64xf32>
    %cst_181 = arith.constant 4.471500e-02 : f32
    %423 = vector.broadcast %cst_181 : f32 to vector<32x64xf32>
    %424 = arith.mulf %423, %420 : vector<32x64xf32>
    %425 = arith.mulf %424, %420 : vector<32x64xf32>
    %426 = arith.mulf %425, %420 : vector<32x64xf32>
    %427 = arith.addf %420, %426 : vector<32x64xf32>
    %cst_182 = arith.constant 0.797884583 : f32
    %428 = vector.broadcast %cst_182 : f32 to vector<32x64xf32>
    %429 = arith.mulf %428, %427 : vector<32x64xf32>
    %430 = math.tanh %429 : vector<32x64xf32>
    %cst_183 = arith.constant 1.000000e+00 : f32
    %431 = vector.broadcast %cst_183 : f32 to vector<32x64xf32>
    %432 = arith.addf %431, %430 : vector<32x64xf32>
    %433 = arith.mulf %422, %432 : vector<32x64xf32>
    %cst_184 = arith.constant dense<0.000000e+00> : vector<32x32xf32>
    %434 = tpu.matmul %433, %417, %cst_184 {dimension_numbers = #tpu.dot_dimension_numbers<[1], [0], [0], [1], [0, 0, 1, 1], [], []>} : vector<32x64xf32>, vector<64x32xf32>, vector<32x32xf32> -> vector<32x32xf32>
    %435 = vector.broadcast %252 : vector<1x32xf32> to vector<32x32xf32>
    %436 = arith.addf %434, %435 : vector<32x32xf32>
    %437 = arith.addf %414, %436 : vector<32x32xf32>
    %cst_185 = arith.constant dense<0.000000e+00> : vector<32xf32>
    %438 = vector.multi_reduction <add>, %437, %cst_185 [1] : vector<32x32xf32> to vector<32xf32>
    %439 = vector.shape_cast %438 : vector<32xf32> to vector<32x1xf32>
    %cst_186 = arith.constant 3.200000e+01 : f32
    %440 = vector.broadcast %cst_186 : f32 to vector<32x1xf32>
    %441 = arith.divf %439, %440 : vector<32x1xf32>
    %442 = vector.broadcast %441 : vector<32x1xf32> to vector<32x32xf32>
    %443 = arith.subf %437, %442 : vector<32x32xf32>
    %444 = arith.mulf %443, %443 : vector<32x32xf32>
    %cst_187 = arith.constant dense<0.000000e+00> : vector<32xf32>
    %445 = vector.multi_reduction <add>, %444, %cst_187 [1] : vector<32x32xf32> to vector<32xf32>
    %446 = vector.shape_cast %445 : vector<32xf32> to vector<32x1xf32>
    %cst_188 = arith.constant 3.200000e+01 : f32
    %447 = vector.broadcast %cst_188 : f32 to vector<32x1xf32>
    %448 = arith.divf %446, %447 : vector<32x1xf32>
    %449 = vector.broadcast %441 : vector<32x1xf32> to vector<32x32xf32>
    %450 = arith.subf %437, %449 : vector<32x32xf32>
    %cst_189 = arith.constant 9.99999996E-13 : f32
    %451 = vector.broadcast %cst_189 : f32 to vector<32x1xf32>
    %452 = arith.addf %448, %451 : vector<32x1xf32>
    %453 = math.rsqrt %452 : vector<32x1xf32>
    %454 = vector.broadcast %453 : vector<32x1xf32> to vector<32x32xf32>
    %455 = arith.mulf %450, %454 : vector<32x32xf32>
    %456 = vector.broadcast %253 : vector<1x32xf32> to vector<32x32xf32>
    %457 = arith.mulf %455, %456 : vector<32x32xf32>
    %458 = vector.broadcast %254 : vector<1x32xf32> to vector<32x32xf32>
    %459 = arith.addf %457, %458 : vector<32x32xf32>
    %460 = tpu.iota {dimensions = array<i32: 0>} : vector<4x32xi32>
    %461 = tpu.iota {dimensions = array<i32: 1>} : vector<4x32xi32>
    %c8_i32 = arith.constant 8 : i32
    %462 = vector.broadcast %c8_i32 : i32 to vector<4x32xi32>
    %463 = arith.muli %460, %462 : vector<4x32xi32>
    %464 = arith.cmpi eq, %461, %463 : vector<4x32xi32>
    %465 = arith.extui %464 : vector<4x32xi1> to vector<4x32xi32>
    %466 = arith.sitofp %465 : vector<4x32xi32> to vector<4x32xf32>
    %cst_190 = arith.constant dense<0.000000e+00> : vector<4x32xf32>
    %467 = tpu.matmul %466, %459, %cst_190 {dimension_numbers = #tpu.dot_dimension_numbers<[1], [0], [0], [1], [0, 0, 1, 1], [], []>} : vector<4x32xf32>, vector<32x32xf32>, vector<4x32xf32> -> vector<4x32xf32>
    %c320_191 = arith.constant 320 : index
    %c0_192 = arith.constant 0 : index
    %468 = vector.load %arg2[%c320_191, %c0_192] : memref<410x32xf32, #tpu.memory_space<vmem>>, vector<32x32xf32>
    %c394 = arith.constant 394 : index
    %c0_193 = arith.constant 0 : index
    %469 = vector.load %arg2[%c394, %c0_193] : memref<410x32xf32, #tpu.memory_space<vmem>>, vector<1x32xf32>
    %cst_194 = arith.constant dense<0.000000e+00> : vector<4x32xf32>
    %470 = tpu.matmul %467, %468, %cst_194 {dimension_numbers = #tpu.dot_dimension_numbers<[1], [0], [0], [1], [0, 0, 1, 1], [], []>} : vector<4x32xf32>, vector<32x32xf32>, vector<4x32xf32> -> vector<4x32xf32>
    %471 = vector.broadcast %469 : vector<1x32xf32> to vector<4x32xf32>
    %472 = arith.addf %470, %471 : vector<4x32xf32>
    %473 = math.tanh %472 : vector<4x32xf32>
    %c0_195 = arith.constant 0 : index
    %c0_196 = arith.constant 0 : index
    %474 = vector.load %arg1[%c0_195, %c0_196] : memref<2x1xf32, #tpu.memory_space<vmem>>, vector<2x1xf32>
    %c395 = arith.constant 395 : index
    %c0_197 = arith.constant 0 : index
    %475 = vector.load %arg2[%c395, %c0_197] : memref<410x32xf32, #tpu.memory_space<vmem>>, vector<1x32xf32>
    %c396 = arith.constant 396 : index
    %c0_198 = arith.constant 0 : index
    %476 = vector.load %arg2[%c396, %c0_198] : memref<410x32xf32, #tpu.memory_space<vmem>>, vector<1x32xf32>
    %c397 = arith.constant 397 : index
    %c0_199 = arith.constant 0 : index
    %477 = vector.load %arg2[%c397, %c0_199] : memref<410x32xf32, #tpu.memory_space<vmem>>, vector<1x32xf32>
    %c352_200 = arith.constant 352 : index
    %c0_201 = arith.constant 0 : index
    %478 = vector.load %arg2[%c352_200, %c0_201] : memref<410x32xf32, #tpu.memory_space<vmem>>, vector<32x32xf32>
    %479 = vector.broadcast %474 : vector<2x1xf32> to vector<2x32xf32>
    %480 = vector.broadcast %475 : vector<1x32xf32> to vector<2x32xf32>
    %481 = arith.mulf %479, %480 : vector<2x32xf32>
    %482 = vector.broadcast %476 : vector<1x32xf32> to vector<2x32xf32>
    %483 = arith.addf %481, %482 : vector<2x32xf32>
    %cst_202 = arith.constant 0.000000e+00 : f32
    %484 = vector.broadcast %cst_202 : f32 to vector<2x32xf32>
    %485 = arith.maximumf %483, %484 : vector<2x32xf32>
    %cst_203 = arith.constant dense<0.000000e+00> : vector<2x32xf32>
    %486 = tpu.matmul %485, %478, %cst_203 {dimension_numbers = #tpu.dot_dimension_numbers<[1], [0], [0], [1], [0, 0, 1, 1], [], []>} : vector<2x32xf32>, vector<32x32xf32>, vector<2x32xf32> -> vector<2x32xf32>
    %487 = vector.broadcast %477 : vector<1x32xf32> to vector<2x32xf32>
    %488 = arith.addf %486, %487 : vector<2x32xf32>
    %489 = arith.negf %488 : vector<2x32xf32>
    %490 = math.exp %489 : vector<2x32xf32>
    %cst_204 = arith.constant 1.000000e+00 : f32
    %491 = vector.broadcast %cst_204 : f32 to vector<2x32xf32>
    %492 = arith.addf %491, %490 : vector<2x32xf32>
    %493 = arith.divf %491, %492 : vector<2x32xf32>
    %cst_205 = arith.constant 2.000000e+00 : f32
    %494 = vector.broadcast %cst_205 : f32 to vector<2x32xf32>
    %495 = arith.mulf %494, %493 : vector<2x32xf32>
    %496 = vector.extract_strided_slice %473 {offsets = [0, 0], sizes = [2, 32], strides = [1, 1]} : vector<4x32xf32> to vector<2x32xf32>
    %497 = arith.mulf %495, %496 : vector<2x32xf32>
    %498 = vector.extract_strided_slice %473 {offsets = [2, 0], sizes = [2, 32], strides = [1, 1]} : vector<4x32xf32> to vector<2x32xf32>
    %499 = arith.mulf %495, %498 : vector<2x32xf32>
    %c0_206 = arith.constant 0 : index
    %c0_207 = arith.constant 0 : index
    %500 = vector.load %arg5[%c0_206, %c0_207] : memref<98x128xf32, #tpu.memory_space<vmem>>, vector<32x128xf32>
    %c32_208 = arith.constant 32 : index
    %c0_209 = arith.constant 0 : index
    %501 = vector.load %arg5[%c32_208, %c0_209] : memref<98x128xf32, #tpu.memory_space<vmem>>, vector<32x128xf32>
    %c64_210 = arith.constant 64 : index
    %c0_211 = arith.constant 0 : index
    %502 = vector.load %arg5[%c64_210, %c0_211] : memref<98x128xf32, #tpu.memory_space<vmem>>, vector<32x128xf32>
    %c96_212 = arith.constant 96 : index
    %c0_213 = arith.constant 0 : index
    %503 = vector.load %arg5[%c96_212, %c0_213] : memref<98x128xf32, #tpu.memory_space<vmem>>, vector<1x128xf32>
    %c97 = arith.constant 97 : index
    %c0_214 = arith.constant 0 : index
    %504 = vector.load %arg5[%c97, %c0_214] : memref<98x128xf32, #tpu.memory_space<vmem>>, vector<1x128xf32>
    %cst_215 = arith.constant dense<0.000000e+00> : vector<2x128xf32>
    %505 = tpu.matmul %497, %500, %cst_215 {dimension_numbers = #tpu.dot_dimension_numbers<[1], [0], [0], [1], [0, 0, 1, 1], [], []>} : vector<2x32xf32>, vector<32x128xf32>, vector<2x128xf32> -> vector<2x128xf32>
    %cst_216 = arith.constant dense<0.000000e+00> : vector<2x128xf32>
    %506 = tpu.matmul %499, %501, %cst_216 {dimension_numbers = #tpu.dot_dimension_numbers<[1], [0], [0], [1], [0, 0, 1, 1], [], []>} : vector<2x32xf32>, vector<32x128xf32>, vector<2x128xf32> -> vector<2x128xf32>
    %507 = arith.addf %505, %506 : vector<2x128xf32>
    %508 = vector.broadcast %503 : vector<1x128xf32> to vector<2x128xf32>
    %509 = arith.addf %507, %508 : vector<2x128xf32>
    %cst_217 = arith.constant dense<0.000000e+00> : vector<2x128xf32>
    %510 = tpu.matmul %497, %502, %cst_217 {dimension_numbers = #tpu.dot_dimension_numbers<[1], [0], [0], [1], [0, 0, 1, 1], [], []>} : vector<2x32xf32>, vector<32x128xf32>, vector<2x128xf32> -> vector<2x128xf32>
    %511 = vector.broadcast %504 : vector<1x128xf32> to vector<2x128xf32>
    %512 = arith.addf %510, %511 : vector<2x128xf32>
    %cst_218 = arith.constant 0.000000e+00 : f32
    %513 = vector.broadcast %cst_218 : f32 to vector<4x128xf32>
    %514 = tpu.concatenate %509, %512, %513 in 0 : vector<2x128xf32>, vector<2x128xf32>, vector<4x128xf32> -> vector<8x128xf32>
    %c0_219 = arith.constant 0 : index
    %c0_220 = arith.constant 0 : index
    %515 = vector.load %arg6[%c0_219, %c0_220] : memref<8x128xf32, #tpu.memory_space<vmem>>, vector<8x128xf32>
    tpu.vector_store %arg6[%c0_219, %c0_220], %514 {strides = array<i32>} : memref<8x128xf32, #tpu.memory_space<vmem>>, vector<8x128xf32>,
    return
  }
}

</mosaic_0001>

<bundles_post_ra>
// kernel: tpu_custom_call.1
= control target key start
LH: loop header
LB: loop body
LE: loop exit
PB: predicated region body
PF: predicated region fallthrough
CT: control target
= control target key end

     0   :  { %v12006_v2 = vmov 0   ;;  %s13503_s0 = inlined_call_operand.vmem [shape: s32[32,1], index: 0, kind: input, shape index: {}]   ;;  %s13504_s1 = inlined_call_operand.vmem [shape: f32[2,1], index: 1, kind: input, shape index: {}]   ;;  %s13505_s2 = inlined_call_operand.vmem [shape: f32[410,32], index: 2, kind: input, shape index: {}]   ;;  %s13506_s3 = inlined_call_operand.vmem [shape: f32[792,8], index: 3, kind: input, shape index: {}]   ;;  %s13507_s4 = inlined_call_operand.vmem [shape: f32[66,64], index: 4, kind: input, shape index: {}]   ;;  %s13508_s5 = inlined_call_operand.vmem [shape: f32[98,128], index: 5, kind: input, shape index: {}]   ;;  %s13509_s6 = inlined_call_operand.hbm [shape: f32[8,128], index: 6, kind: output, shape index: {}]  }
   0x1   :  { %v26_v0 = vld [vmem:[%s13503_s0 + $0x10] sm:$0xff]  ;;  %v24_v1 = vld [vmem:[%s13503_s0] sm:$0xff]  ;;  %11791 = vset.pattern.permute.xlu1 %v12006_v2  ;;  %11790 = vset.pattern.permute.xlu0 %v12006_v2  ;;  %v55_v4 = vld [vmem:[%s13505_s2 + $0x8] sm:$0xff] }
   0x2   :  { %v54_v3 = vld [vmem:[%s13505_s2] sm:$0xff]  ;;  %37 = vperm.xlu1 %11791, %v26_v0   ;;  %31 = vperm.xlu0 %11790, %v24_v1   ;;  %v27_v5 = vld [vmem:[%s13503_s0 + $0x18] sm:$0xff]  ;;  %v56_v7 = vld [vmem:[%s13505_s2 + $0x10] sm:$0xff] }
   0x3   :  { %v11444_v6 = vpack.c.bf16 %v55_v4, %v54_v3  ;;  %v57_v8 = vld [vmem:[%s13505_s2 + $0x18] sm:$0xff]  ;;  %v25_v9 = vld [vmem:[%s13503_s0 + $0x8] sm:$0xff]  ;;  %v58_v11 = vld [vmem:[%s13505_s2 + $0x20] sm:$0xff] }
   0x4   :  { %v11448_v10 = vpack.c.bf16 %v57_v8, %v56_v7  ;;  %v59_v12 = vld [vmem:[%s13505_s2 + $0x28] sm:$0xff] }
   0x5   :  { %11445 = vmatprep.subr.bf16.mxu0 %v11444_v6  ;;  %v11452_v13 = vpack.c.bf16 %v59_v12, %v58_v11 }
   0x6   :  { %11447 = vmatpush3.bf16.msra.mxu0 %v11444_v6  ;;  %40 = vperm.xlu1 %11791, %v27_v5  }
   0x7   :  { %34 = vperm.xlu0 %11790, %v25_v9  }
   0x8   :  { %11 = vsyncpa [#allocation3], 0  ;;  %11449 = vmatprep.subr.bf16.mxu0 %v11448_v10  ;;  %v60_v14 = vld [vmem:[%s13505_s2 + $0x30] sm:$0xff]  ;;  %v61_v15 = vld [vmem:[%s13505_s2 + $0x38] sm:$0xff]  ;;  %v28_v29 = vlaneseq  ;;  %v12007_v33 = vmov 1.0   ;;  %vm162_vm4 = vcmask 261120  }
   0x9   :  { %v11456_v16 = vpack.c.bf16 %v61_v15, %v60_v14  ;;  %v62_v17 = vld [vmem:[%s13505_s2 + $0x40] sm:$0xff]  ;;  %v63_v18 = vld [vmem:[%s13505_s2 + $0x48] sm:$0xff]  ;;  %v64_v20 = vld [vmem:[%s13505_s2 + $0x50] sm:$0xff]  ;;  %vm12009_vm5 = vmmov 0   ;;  %vm532_vm6 = vcmask 64512   ;;  %vm4577_vm7 = vcmask 523264  }
   0xa   :  { %11451 = vmatpush3.bf16.msra.mxu0 %v11448_v10  ;;  %v11460_v19 = vpack.c.bf16 %v63_v18, %v62_v17  ;;  %v65_v21 = vld [vmem:[%s13505_s2 + $0x58] sm:$0xff]  ;;  %v66_v23 = vld [vmem:[%s13505_s2 + $0x60] sm:$0xff]  ;;  %v67_v24 = vld [vmem:[%s13505_s2 + $0x68] sm:$0xff]  ;;  %v12108_v30 = vand.u32 127, %v28_v29  ;;  %vm9777_vm9 = vcmask 1041408   ;;  %s12011_s0 = smov [#allocation2]  }
   0xb   :  { %11453 = vmatprep.subr.bf16.mxu0 %v11452_v13  ;;  %v11464_v22 = vpack.c.bf16 %v65_v21, %v64_v20  ;;  %v11468_v25 = vpack.c.bf16 %v67_v24, %v66_v23  ;;  %v68_v26 = vld [vmem:[%s13505_s2 + $0x70] sm:$0xff]  ;;  %v69_v27 = vld [vmem:[%s13505_s2 + $0x78] sm:$0xff]  ;;  %v155_v36 = vld [vmem:[%s13505_s2 + $0x180] sm:$0xff]  ;;  %s9788_s19 = sshll.u32 %s12011_s0, 4  ;;  %vm9779_vm10 = vcmask 1043456   ;;  %s9789_s19 = int_to_ptr.vmem [resolvable:$true] %s9788_s19 }
   0xc   :  { %v11472_v28 = vpack.c.bf16 %v69_v27, %v68_v26  ;;  %v238_v5 = vld [vmem:[%s13506_s3] sm:$0xff]  ;;  %v239_v6 = vld [vmem:[%s13506_s3 + $0x8] sm:$0xff]  ;;  %v240_v8 = vld [vmem:[%s13506_s3 + $0x10] sm:$0xff]  ;;  %s11982_s20 = scalar_lea.vmem %s9789_s19, 128  ;;  %p11987_p1 = scmp.lt.s32.totalorder %s9789_s19, %s9789_s19 }
   0xd   :  { %v11476_v7 = vpack.c.bf16 %v239_v6, %v238_v5  ;;  %v241_v9 = vld [vmem:[%s13506_s3 + $0x18] sm:$0xff]  ;;  %v242_v11 = vld [vmem:[%s13506_s3 + $0x80] sm:$0xff]  ;;  %v243_v12 = vld [vmem:[%s13506_s3 + $0x88] sm:$0xff]  ;;  %p11983_p0 = scmp.ne.s32.totalorder %s9789_s19, %s11982_s20  ;;  %p11988_p2 = scmp.lt.s32.totalorder %s11982_s20, %s11982_s20 }
   0xe   :  { %11455 = vmatpush3.bf16.msra.mxu0 %v11452_v13  ;;  %v11480_v10 = vpack.c.bf16 %v241_v9, %v240_v8  ;;  %v11484_v13 = vpack.c.bf16 %v243_v12, %v242_v11  ;;  %v9804_v27 = vld [vmem:[%s13505_s2 + $0x188] ss:$0 sm:$0xff] }
   0xf   :  { %11457 = vmatprep.subr.bf16.mxu0 %v11456_v16  ;;  %11477 = vmatprep.subr.bf16.mxu1 %v11476_v7  ;;  %v9816_v6 = vld [vmem:[%s13506_s3 + $0x308] ss:$0 sm:$0xff]  ;;  %p11989_p3 = por %p11988_p2, %p11987_p1 }
  0x10   :  { %11479 = vmatpush3.bf16.msra.mxu1 %v11476_v7 }
  0x11   :  { %11481 = vmatprep.subr.bf16.mxu1 %v11480_v10  ;;  %p11990_p4 = pnand %p11989_p3, %p11983_p0 }
  0x12   :  { %11459 = vmatpush3.bf16.msra.mxu0 %v11456_v16 }
  0x13   :  { %11461 = vmatprep.subr.bf16.mxu0 %v11460_v19 }
  0x14   :  { %11483 = vmatpush3.bf16.msra.mxu1 %v11480_v10 }
  0x15   :  { %11485 = vmatprep.subr.bf16.mxu1 %v11484_v13 }
  0x16   :  { %11463 = vmatpush3.bf16.msra.mxu0 %v11460_v19 }
  0x17   :  { %11465 = vmatprep.subr.bf16.mxu0 %v11464_v22 }
  0x1a   :  { %11467 = vmatpush3.bf16.msra.mxu0 %v11464_v22 }
  0x1b   :  { %11469 = vmatprep.subr.bf16.mxu0 %v11468_v25 }
  0x1e   :  { %11471 = vmatpush3.bf16.msra.mxu0 %v11468_v25 }
  0x1f   :  { %11473 = vmatprep.subr.bf16.mxu0 %v11472_v28 }
  0x22   :  { %11475 = vmatpush3.bf16.msra.mxu0 %v11472_v28 }
  0x81   :  { %v38_v31 = vpop.permute.xlu1 %37  ;;  %v32_v32 = vpop.permute.xlu0 %31 }
  0x82   :  { %vm42_vm0 = vcmp.eq.s32.totalorder %v32_v32, %v12108_v30  ;;  %vm44_vm1 = vcmp.eq.s32.totalorder %v38_v31, %v12108_v30 }
  0x83   :  { %10580 = vmatprep.mubr.msk.f32.mxu0 %vm42_vm0, %v12007_v33 }
  0x85   :  { %v41_v35 = vpop.permute.xlu1 %40 }
  0x86   :  { %v35_v34 = vpop.permute.xlu0 %34  ;;  %vm45_vm3 = vcmp.eq.s32.totalorder %v41_v35, %v12108_v30 }
  0x87   :  { %vm43_vm2 = vcmp.eq.s32.totalorder %v35_v34, %v12108_v30 }
  0x88   :  { %10581 = vmatmul.mubr.msk.f32.vlgmr.msra.gmra.mrb[0].mxu0 %vm43_vm2, %v12007_v33 }
  0x89   :  { %10583 = vmatprep.mubr.msk.f32.mxu0 %vm44_vm1, %v12007_v33 }
  0x8c   :  { %10584 = vmatmul.mubr.msk.f32.gmra.mrb[2].mxu0 %vm45_vm3, %v12007_v33  ;;  %v9805_v33 = vld [vmem:[%s13505_s2 + $0x189] ss:$0 sm:$0xff] }
 0x15b   :  { %v10582_v37 = vpop.f32.mrb[0].mxu0 }
 0x15c   :  { %v157_v38 = vadd.f32 %v10582_v37, %v155_v36  ;;  %v136_v39 = vpop.f32.mrb[1].mxu0  ;;  %v245_v37 = vld [vmem:[%s13506_s3 + $0x98] sm:$0xff] }
 0x15d   :  { %v156_v40 = vadd.f32 %v155_v36, %v136_v39 }
 0x15e   :  { %v166_v41 = vsel %vm162_vm4, %v157_v38, 0.0 }
 0x15f   :  { %167 = vadd.xlane.f32.xlu1 %v166_v41  ;;  %v10585_v42 = vpop.f32.mrb[2].mxu0  ;;  %v163_v43 = vsel %vm162_vm4, %v156_v40, 0.0 }
 0x160   :  { %164 = vadd.xlane.f32.xlu0 %v163_v43  ;;  %v146_v44 = vpop.f32.mrb[3].mxu0  ;;  %v159_v46 = vadd.f32 %v10585_v42, %v155_v36 }
 0x161   :  { %v158_v45 = vadd.f32 %v155_v36, %v146_v44  ;;  %v244_v36 = vld [vmem:[%s13506_s3 + $0x90] sm:$0xff]  ;;  %v246_v44 = vld [vmem:[%s13506_s3 + $0x100] sm:$0xff] }
 0x162   :  { %v172_v48 = vsel %vm162_vm4, %v159_v46, 0.0  ;;  %v11488_v42 = vpack.c.bf16 %v245_v37, %v244_v36 }
 0x163   :  { %v169_v47 = vsel %vm162_vm4, %v158_v45, 0.0 }
 0x164   :  { %170 = vadd.xlane.f32.xlu0 %v169_v47 }
 0x168   :  { %173 = vadd.xlane.f32.xlu0 %v172_v48 }
 0x1ec   :  { %v168_v49 = vpop.xlane.xlu1 %167 }
 0x1ed   :  { %v177_v50 = vmul.f32 0.03125, %v168_v49  ;;  %v165_v51 = vpop.xlane.xlu0 %164 }
 0x1ee   :  { %v176_v52 = vmul.f32 0.03125, %v165_v51 }
 0x1ef   :  { %v181_v53 = vsub.f32 %v157_v38, %v177_v50 }
 0x1f0   :  { %v180_v54 = vsub.f32 %v156_v40, %v176_v52  ;;  %v248_v52 = vld [vmem:[%s13506_s3 + $0x110] sm:$0xff] }
 0x1f1   :  { %v171_v55 = vpop.xlane.xlu0 %170  ;;  %v185_v56 = vmul.f32 %v181_v53, %v181_v53 }
 0x1f2   :  { %v178_v57 = vmul.f32 0.03125, %v171_v55  ;;  %v184_v58 = vmul.f32 %v180_v54, %v180_v54  ;;  %v12008_v55 = vmov 0.0  }
 0x1f3   :  { %v191_v59 = vsel %vm162_vm4, %v185_v56, 0.0  ;;  %10638 = vmatprep.subr.mxu0 %v12008_v55  ;;  %10640 = vmatprep.mubr.msk.f32.mxu0 %vm12009_vm5, %v12008_v55 }
 0x1f4   :  { %v182_v60 = vsub.f32 %v158_v45, %v178_v57  ;;  %192 = vadd.xlane.f32.xlu0 %v191_v59  ;;  %v188_v61 = vsel %vm162_vm4, %v184_v58, 0.0  ;;  %v247_v45 = vld [vmem:[%s13506_s3 + $0x108] sm:$0xff] }
 0x1f5   :  { %189 = vadd.xlane.f32.xlu1 %v188_v61  ;;  %v174_v62 = vpop.xlane.xlu0 %173  ;;  %v11492_v49 = vpack.c.bf16 %v247_v45, %v246_v44 }
 0x1f6   :  { %v179_v63 = vmul.f32 0.03125, %v174_v62  ;;  %v186_v0 = vmul.f32 %v182_v60, %v182_v60 }
 0x1f8   :  { %v183_v1 = vsub.f32 %v159_v46, %v179_v63  ;;  %v194_v2 = vsel %vm162_vm4, %v186_v0, 0.0  ;;  %v9806_v63 = vld [vmem:[%s13506_s3 + $0x300] ss:$0 sm:$0xff] }
 0x1f9   :  { %195 = vadd.xlane.f32.xlu1 %v194_v2 }
 0x1fa   :  { %v187_v3 = vmul.f32 %v183_v1, %v183_v1 }
 0x1fc   :  { %v197_v4 = vsel %vm162_vm4, %v187_v3, 0.0 }
 0x1fd   :  { %198 = vadd.xlane.f32.xlu0 %v197_v4 }
 0x281   :  { %v193_v14 = vpop.xlane.xlu0 %192 }
 0x282   :  { %v201_v15 = vmul.f32 0.03125, %v193_v14  ;;  %v190_v16 = vpop.xlane.xlu1 %189 }
 0x283   :  { %v200_v17 = vmul.f32 0.03125, %v190_v16 }
 0x284   :  { %v205_v18 = vadd.f32 1e-12, %v201_v15 }
 0x285   :  { %v204_v19 = vadd.f32 1e-12, %v200_v17 }
 0x286   :  { %11792 = vrsqrt.f32 %v205_v18  ;;  %v196_v20 = vpop.xlane.xlu1 %195 }
 0x287   :  { %11794 = vrsqrt.f32 %v204_v19  ;;  %v202_v21 = vmul.f32 0.03125, %v196_v20 }
 0x289   :  { %v206_v22 = vadd.f32 1e-12, %v202_v21 }
 0x28a   :  { %v199_v23 = vpop.xlane.xlu0 %198 }
 0x28b   :  { %11796 = vrsqrt.f32 %v206_v22  ;;  %v203_v24 = vmul.f32 0.03125, %v199_v23 }
 0x28d   :  { %v207_v25 = vadd.f32 1e-12, %v203_v24 }
 0x28f   :  { %11798 = vrsqrt.f32 %v207_v25 }
 0x290   :  { %v11793_v26 = vpop.eup %11792 }
 0x291   :  { %v11795_v28 = vpop.eup %11794  ;;  %v213_v31 = vmul.f32 %v11793_v26, %v181_v53  ;;  %v249_v53 = vld [vmem:[%s13506_s3 + $0x118] sm:$0xff] }
 0x292   :  { %v212_v32 = vmul.f32 %v11795_v28, %v180_v54  ;;  %v11496_v54 = vpack.c.bf16 %v249_v53, %v248_v52 }
 0x293   :  { %v221_v34 = vmul.f32 %v9804_v27, %v213_v31 }
 0x294   :  { %v220_v35 = vmul.f32 %v9804_v27, %v212_v32 }
 0x295   :  { %v11797_v38 = vpop.eup %11796  ;;  %v12157_v41 = vadd.f32 %v9805_v33, %v221_v34 }
 0x296   :  { %v12155_v39 = vadd.f32 %v9805_v33, %v220_v35  ;;  %v214_v40 = vmul.f32 %v11797_v38, %v182_v60  ;;  %v9811_v60 = vld [vmem:[%s13506_s3 + $0x304] ss:$0 sm:$0xff] }
 0x298   :  { %v222_v43 = vmul.f32 %v9804_v27, %v214_v40  ;;  %10594 = vmatprep.mubr.msk.f32.mxu1 %vm162_vm4, %v12155_v39 }
 0x299   :  { %v11799_v46 = vpop.eup %11798  ;;  %10595 = vmatmul.mubr.msk.f32.vlgmr.msra.gmra.mrb[0].mxu1 %vm162_vm4, %v12157_v41 }
 0x29a   :  { %v12169_v47 = vadd.f32 %v9805_v33, %v222_v43  ;;  %v215_v48 = vmul.f32 %v11799_v46, %v183_v1  ;;  %11487 = vmatpush3.bf16.msra.mxu1 %v11484_v13 }
 0x29b   :  { %11489 = vmatprep.subr.bf16.mxu1 %v11488_v42 }
 0x29c   :  { %v223_v50 = vmul.f32 %v9804_v27, %v215_v48  ;;  %10597 = vmatprep.mubr.msk.f32.mxu1 %vm162_vm4, %v12169_v47 }
 0x29e   :  { %v12173_v51 = vadd.f32 %v9805_v33, %v223_v50  ;;  %11491 = vmatpush3.bf16.msra.mxu1 %v11488_v42 }
 0x29f   :  { %11493 = vmatprep.subr.bf16.mxu1 %v11492_v49 }
 0x2a0   :  { %10598 = vmatmul.mubr.msk.f32.gmra.mrb[2].mxu1 %vm162_vm4, %v12173_v51 }
 0x2a1   :  { %10608 = vmatprep.mubr.msk.f32.mxu1 %vm162_vm4, %v12155_v39 }
 0x2a4   :  { %10609 = vmatmul.mubr.msk.f32.vlgmr.msra.gmra.mrb[4].mxu1 %vm162_vm4, %v12157_v41 }
 0x2a5   :  { %10611 = vmatprep.mubr.msk.f32.mxu1 %vm162_vm4, %v12169_v47  ;;  %11495 = vmatpush3.bf16.msra.mxu1 %v11492_v49 }
 0x2a6   :  { %11497 = vmatprep.subr.bf16.mxu1 %v11496_v54 }
 0x2a8   :  { %10612 = vmatmul.mubr.msk.f32.gmra.mrb[6].mxu1 %vm162_vm4, %v12173_v51 }
 0x2a9   :  { %11499 = vmatpush3.bf16.msra.mxu1 %v11496_v54  ;;  %10622 = vmatprep.mubr.msk.f32.mxu1 %vm162_vm4, %v12155_v39 }
 0x2aa   :  { %10628 = vmatprep.subr.mxu1 %v12008_v55 }
 0x2ac   :  { %10623 = vmatmul.mubr.msk.f32.vlgmr.msra.gmra.mrb[8].mxu1 %vm162_vm4, %v12157_v41 }
 0x2ad   :  { %10625 = vmatprep.mubr.msk.f32.mxu1 %vm162_vm4, %v12169_v47 }
 0x2b0   :  { %10626 = vmatmul.mubr.msk.f32.gmra.mrb[10].mxu1 %vm162_vm4, %v12173_v51 }
 0x2b1   :  { %10630 = vmatprep.mubr.msk.f32.mxu1 %vm12009_vm5, %v12008_v55 }
 0x36c   :  { %v10596_v56 = vpop.f32.mrb[0].mxu1 }
 0x36d   :  { %v335_v57 = vpop.f32.mrb[1].mxu1  ;;  %v341_v8 = vadd.f32 %v10596_v56, %v9806_v63 }
 0x36e   :  { %v336_v2 = vadd.f32 %v9806_v63, %v335_v57 }
 0x373   :  { %v10599_v58 = vpop.f32.mrb[2].mxu1 }
 0x374   :  { %v345_v59 = vpop.f32.mrb[3].mxu1  ;;  %v351_v14 = vadd.f32 %v10599_v58, %v9806_v63 }
 0x375   :  { %v346_v9 = vadd.f32 %v9806_v63, %v345_v59 }
 0x377   :  { %v10610_v61 = vpop.f32.mrb[4].mxu1 }
 0x378   :  { %v424_v62 = vpop.f32.mrb[5].mxu1  ;;  %v430_v4 = vadd.f32 %v10610_v61, %v9811_v60 }
 0x379   :  { %v425_v0 = vadd.f32 %v9811_v60, %v424_v62 }
 0x37b   :  { %v10613_v1 = vpop.f32.mrb[6].mxu1  ;;  %10629 = vmatpush3.xpose.msk.msra.mxu1 %vm532_vm6, %v425_v0  ;;  %v1279_v0 = vld [vmem:[%s13506_s3 + $0x20] sm:$0xff] }
 0x37c   :  { %v434_v3 = vpop.f32.mrb[7].mxu1  ;;  %10633 = vmatprep.subr.mxu1 %v12008_v55  ;;  %v440_v11 = vadd.f32 %v10613_v1, %v9811_v60  ;;  %v1280_v1 = vld [vmem:[%s13506_s3 + $0x28] sm:$0xff] }
 0x37d   :  { %v435_v5 = vadd.f32 %v9811_v60, %v434_v3 }
 0x37e   :  { %10631 = vmatmul.mubr.msk.f32.vlgmr.msra.gmra.mrb[12].mxu1 %vm532_vm6, %v336_v2 }
 0x37f   :  { %v10624_v7 = vpop.f32.mrb[8].mxu1  ;;  %10634 = vmatpush3.xpose.msk.msra.mxu1 %vm532_vm6, %v430_v4  ;;  %10639 = vmatpush3.xpose.msk.msra.mxu0 %vm532_vm6, %v435_v5  ;;  %v11500_v5 = vpack.c.bf16 %v1280_v1, %v1279_v0 }
 0x380   :  { %v513_v10 = vpop.f32.mrb[9].mxu1  ;;  %10635 = vmatprep.mubr.msk.f32.mxu1 %vm12009_vm5, %v12008_v55  ;;  %10643 = vmatprep.subr.mxu1 %v12008_v55  ;;  %v519_v17 = vadd.f32 %v10624_v7, %v9816_v6  ;;  %v1281_v7 = vld [vmem:[%s13506_s3 + $0x30] sm:$0xff] }
 0x381   :  { %v514_v12 = vadd.f32 %v9816_v6, %v513_v10  ;;  %10648 = vmatprep.subr.mxu0 %v12008_v55 }
 0x382   :  { %10636 = vmatmul.mubr.msk.f32.vlgmr.msra.gmra.mrb[14].mxu1 %vm532_vm6, %v341_v8  ;;  %10641 = vmatmul.mubr.msk.f32.vlgmr.msra.gmra.mrb[4].mxu0 %vm532_vm6, %v346_v9  ;;  %v1282_v8 = vld [vmem:[%s13506_s3 + $0x38] sm:$0xff] }
 0x383   :  { %v10627_v13 = vpop.f32.mrb[10].mxu1  ;;  %10644 = vmatpush3.xpose.msk.msra.mxu1 %vm532_vm6, %v440_v11  ;;  %10649 = vmatpush3.msra.mxu0 %v514_v12  ;;  %v11504_v11 = vpack.c.bf16 %v1282_v8, %v1281_v7  ;;  %v1287_v12 = vld [vmem:[%s13506_s3 + $0x120] sm:$0xff] }
 0x384   :  { %v12226_v15 = vadd.f32 %v10627_v13, %v9816_v6  ;;  %v523_v16 = vpop.f32.mrb[11].mxu1  ;;  %10645 = vmatprep.mubr.msk.f32.mxu1 %vm12009_vm5, %v12008_v55  ;;  %10653 = vmatprep.subr.mxu1 %v12008_v55  ;;  %v1288_v13 = vld [vmem:[%s13506_s3 + $0x128] sm:$0xff] }
 0x385   :  { %v12231_v18 = vadd.f32 %v9816_v6, %v523_v16  ;;  %10650 = vmatprep.mubr.msk.f32.mxu0 %vm12009_vm5, %v12008_v55  ;;  %10658 = vmatprep.subr.mxu0 %v12008_v55  ;;  %v1290_v16 = vld [vmem:[%s13506_s3 + $0x138] sm:$0xff] }
 0x386   :  { %10646 = vmatmul.mubr.msk.f32.vlgmr.msra.gmra.mrb[16].mxu1 %vm532_vm6, %v351_v14  ;;  %v11516_v14 = vpack.c.bf16 %v1288_v13, %v1287_v12 }
 0x387   :  { %10654 = vmatpush3.msra.mxu1 %v519_v17  ;;  %10655 = vmatprep.mubr.msk.f32.mxu1 %vm12009_vm5, %v12008_v55 }
 0x388   :  { %10663 = vmatprep.subr.mxu1 %v12008_v55 }
 0x451   :  { %v605_v19 = vpop.f32.mrb[12].mxu1 }
 0x452   :  { %v10632_v20 = vpop.f32.mrb[13].mxu1  ;;  %v837_v21 = vsel %vm532_vm6, %v605_v19, -inf }
 0x453   :  { %838 = vmax.xlane.f32.xlu1 %v837_v21  ;;  %v1284_v20 = vld [vmem:[%s13506_s3 + $0xa8] sm:$0xff] }
 0x455   :  { %v681_v22 = vpop.f32.mrb[14].mxu1  ;;  %v757_v23 = vpop.f32.mrb[4].mxu0 }
 0x456   :  { %v10637_v24 = vpop.f32.mrb[15].mxu1  ;;  %v10642_v25 = vpop.f32.mrb[5].mxu0  ;;  %v840_v26 = vsel %vm532_vm6, %v681_v22, -inf  ;;  %v843_v27 = vsel %vm532_vm6, %v757_v23, -inf }
 0x457   :  { %841 = vmax.xlane.f32.xlu0 %v840_v26  ;;  %844 = vmax.xlane.f32.xlu1 %v843_v27  ;;  %v1286_v24 = vld [vmem:[%s13506_s3 + $0xb8] sm:$0xff] }
 0x459   :  { %v833_v28 = vpop.f32.mrb[16].mxu1 }
 0x45a   :  { %v10647_v31 = vpop.f32.mrb[17].mxu1  ;;  %v846_v32 = vsel %vm532_vm6, %v833_v28, -inf }
 0x45b   :  { %847 = vmax.xlane.f32.xlu0 %v846_v32 }
 0x4e0   :  { %v839_v33 = vpop.xlane.xlu1 %838 }
 0x4e1   :  { %v849_v34 = vsub.f32 %v605_v19, %v839_v33  ;;  %v1283_v19 = vld [vmem:[%s13506_s3 + $0xa0] sm:$0xff] }
 0x4e2   :  { %v11508_v21 = vpack.c.bf16 %v1284_v20, %v1283_v19 }
 0x4e3   :  { %v853_v35 = vmul.f32 1.442695, %v849_v34 }
 0x4e4   :  { %v842_v36 = vpop.xlane.xlu0 %841  ;;  %v845_v37 = vpop.xlane.xlu1 %844 }
 0x4e5   :  { %11800 = vpow2.f32 %v853_v35  ;;  %v850_v38 = vsub.f32 %v681_v22, %v842_v36  ;;  %v851_v40 = vsub.f32 %v757_v23, %v845_v37  ;;  %v1285_v23 = vld [vmem:[%s13506_s3 + $0xb0] sm:$0xff] }
 0x4e6   :  { %v11512_v26 = vpack.c.bf16 %v1286_v24, %v1285_v23 }
 0x4e7   :  { %v855_v42 = vmul.f32 1.442695, %v850_v38  ;;  %v857_v43 = vmul.f32 1.442695, %v851_v40 }
 0x4e8   :  { %v848_v44 = vpop.xlane.xlu0 %847 }
 0x4e9   :  { %11802 = vpow2.f32 %v855_v42  ;;  %v852_v45 = vsub.f32 %v833_v28, %v848_v44 }
 0x4ea   :  { %11804 = vpow2.f32 %v857_v43  ;;  %v9848_v43 = vld [vmem:[%s13506_s3 + $0x309] ss:$0 sm:$0xff] }
 0x4eb   :  { %v859_v46 = vmul.f32 1.442695, %v852_v45 }
 0x4ed   :  { %11806 = vpow2.f32 %v859_v46 }
 0x4ef   :  { %v11801_v48 = vpop.eup %11800 }
 0x4f0   :  { %v861_v49 = vsel %vm532_vm6, %v11801_v48, 0.0 }
 0x4f1   :  { %862 = vadd.xlane.f32.xlu1 %v861_v49  ;;  %v9843_v49 = vld [vmem:[%s13506_s3 + $0x305] ss:$0 sm:$0xff] }
 0x4f3   :  { %v11803_v50 = vpop.eup %11802 }
 0x4f4   :  { %v11805_v52 = vpop.eup %11804  ;;  %v864_v53 = vsel %vm532_vm6, %v11803_v50, 0.0 }
 0x4f5   :  { %865 = vadd.xlane.f32.xlu0 %v864_v53  ;;  %v867_v54 = vsel %vm532_vm6, %v11805_v52, 0.0  ;;  %v9838_v53 = vld [vmem:[%s13506_s3 + $0x301] ss:$0 sm:$0xff] }
 0x4f6   :  { %868 = vadd.xlane.f32.xlu1 %v867_v54 }
 0x4f7   :  { %v11807_v56 = vpop.eup %11806 }
 0x4f8   :  { %v870_v57 = vsel %vm532_vm6, %v11807_v56, 0.0 }
 0x4f9   :  { %871 = vadd.xlane.f32.xlu0 %v870_v57 }
 0x57e   :  { %v863_v58 = vpop.xlane.xlu1 %862 }
 0x57f   :  { %11808 = vrcp.f32 %v863_v58 }
 0x582   :  { %v866_v59 = vpop.xlane.xlu0 %865 }
 0x583   :  { %11810 = vrcp.f32 %v866_v59  ;;  %v869_v60 = vpop.xlane.xlu1 %868 }
 0x584   :  { %11812 = vrcp.f32 %v869_v60 }
 0x586   :  { %v872_v61 = vpop.xlane.xlu0 %871 }
 0x587   :  { %11814 = vrcp.f32 %v872_v61 }
 0x589   :  { %v11809_v62 = vpop.eup %11808 }
 0x58a   :  { %v877_v63 = vmul.f32 %v11809_v62, %v11801_v48 }
 0x58c   :  { %10651 = vmatmul.mubr.msk.f32.vlgmr.msra.gmra.mrb[6].mxu0 %vm532_vm6, %v877_v63 }
 0x58d   :  { %v11811_v2 = vpop.eup %11810  ;;  %10659 = vmatpush3.msra.mxu0 %v12231_v18  ;;  %10660 = vmatprep.mubr.msk.f32.mxu0 %vm12009_vm5, %v12008_v55  ;;  %v1173_v18 = vld [vmem:[%s13505_s2 + $0x80] sm:$0xff] }
 0x58e   :  { %v11813_v3 = vpop.eup %11812  ;;  %v878_v4 = vmul.f32 %v11811_v2, %v11803_v50  ;;  %10668 = vmatprep.subr.mxu0 %v1173_v18 }
 0x58f   :  { %v879_v6 = vmul.f32 %v11813_v3, %v11805_v52 }
 0x590   :  { %10656 = vmatmul.mubr.msk.f32.vlgmr.msra.gmra.mrb[18].mxu1 %vm532_vm6, %v878_v4 }
 0x591   :  { %v11815_v9 = vpop.eup %11814  ;;  %10661 = vmatmul.mubr.msk.f32.vlgmr.msra.gmra.mrb[8].mxu0 %vm532_vm6, %v879_v6  ;;  %10664 = vmatpush3.msra.mxu1 %v12226_v15  ;;  %v1289_v15 = vld [vmem:[%s13506_s3 + $0x130] sm:$0xff] }
 0x592   :  { %v880_v10 = vmul.f32 %v11815_v9, %v11807_v56  ;;  %10665 = vmatprep.mubr.msk.f32.mxu1 %vm12009_vm5, %v12008_v55  ;;  %11501 = vmatprep.subr.bf16.mxu1 %v11500_v5  ;;  %v11520_v17 = vpack.c.bf16 %v1290_v16, %v1289_v15 }
 0x593   :  { %10669 = vmatpush3.msra.mxu0 %v1173_v18 }
 0x594   :  { %10666 = vmatmul.mubr.msk.f32.vlgmr.msra.gmra.mrb[20].mxu1 %vm532_vm6, %v880_v10  ;;  %11509 = vmatprep.subr.bf16.mxu0 %v11508_v21 }
 0x595   :  { %11503 = vmatpush3.bf16.msra.mxu1 %v11500_v5  ;;  %10684 = vmatprep.mubr.msk.f32.mxu1 %vm162_vm4, %v12155_v39 }
 0x596   :  { %11505 = vmatprep.subr.bf16.mxu1 %v11504_v11 }
 0x599   :  { %11507 = vmatpush3.bf16.msra.mxu1 %v11504_v11 }
 0x59a   :  { %11517 = vmatprep.subr.bf16.mxu1 %v11516_v14 }
 0x59c   :  { %10685 = vmatmul.mubr.msk.f32.vlgmr.msra.gmra.mrb[22].mxu1 %vm162_vm4, %v12157_v41 }
 0x59d   :  { %10687 = vmatprep.mubr.msk.f32.mxu1 %vm162_vm4, %v12169_v47  ;;  %11519 = vmatpush3.bf16.msra.mxu1 %v11516_v14 }
 0x59e   :  { %11521 = vmatprep.subr.bf16.mxu1 %v11520_v17 }
 0x5a0   :  { %10688 = vmatmul.mubr.msk.f32.gmra.mrb[24].mxu1 %vm162_vm4, %v12173_v51 }
 0x5a1   :  { %11523 = vmatpush3.bf16.msra.mxu1 %v11520_v17  ;;  %10712 = vmatprep.mubr.msk.f32.mxu1 %vm162_vm4, %v12155_v39 }
 0x5a2   :  { %10728 = vmatprep.subr.mxu1 %v12008_v55 }
 0x5a4   :  { %10713 = vmatmul.mubr.msk.f32.vlgmr.msra.gmra.mrb[26].mxu1 %vm162_vm4, %v12157_v41 }
 0x5a5   :  { %10715 = vmatprep.mubr.msk.f32.mxu1 %vm162_vm4, %v12169_v47 }
 0x5a8   :  { %10716 = vmatmul.mubr.msk.f32.gmra.mrb[28].mxu1 %vm162_vm4, %v12173_v51 }
 0x5a9   :  { %10730 = vmatprep.mubr.msk.f32.mxu1 %vm12009_vm5, %v12008_v55 }
 0x65f   :  { %v950_v22 = vpop.f32.mrb[6].mxu0 }
 0x660   :  { %v10652_v25 = vpop.f32.mrb[7].mxu0  ;;  %10670 = vmatprep.mubr.msk.f32.mxu0 %vm532_vm6, %v950_v22 }
 0x663   :  { %v1023_v27 = vpop.f32.mrb[18].mxu1 }
 0x664   :  { %v1096_v28 = vpop.f32.mrb[8].mxu0  ;;  %v10657_v31 = vpop.f32.mrb[19].mxu1  ;;  %10671 = vmatmul.mubr.msk.f32.vlgmr.msra.gmra.mrb[10].mxu0 %vm532_vm6, %v1023_v27 }
 0x665   :  { %v10662_v32 = vpop.f32.mrb[9].mxu0  ;;  %10673 = vmatprep.mubr.msk.f32.mxu0 %vm532_vm6, %v1096_v28  ;;  %11511 = vmatpush3.bf16.msra.mxu0 %v11508_v21 }
 0x666   :  { %11513 = vmatprep.subr.bf16.mxu0 %v11512_v26 }
 0x667   :  { %v1169_v33 = vpop.f32.mrb[20].mxu1 }
 0x668   :  { %v10667_v34 = vpop.f32.mrb[21].mxu1  ;;  %10674 = vmatmul.mubr.msk.f32.gmra.mrb[12].mxu0 %vm532_vm6, %v1169_v33 }
 0x669   :  { %11515 = vmatpush3.bf16.msra.mxu0 %v11512_v26  ;;  %10698 = vmatprep.mubr.msk.f32.mxu0 %vm162_vm4, %v12155_v39 }
 0x66a   :  { %10718 = vmatprep.subr.mxu0 %v12008_v55 }
 0x66c   :  { %10699 = vmatmul.mubr.msk.f32.vlgmr.msra.gmra.mrb[14].mxu0 %vm162_vm4, %v12157_v41 }
 0x66d   :  { %10701 = vmatprep.mubr.msk.f32.mxu0 %vm162_vm4, %v12169_v47 }
 0x66f   :  { %v10686_v35 = vpop.f32.mrb[22].mxu1 }
 0x670   :  { %v1364_v36 = vpop.f32.mrb[23].mxu1  ;;  %10702 = vmatmul.mubr.msk.f32.gmra.mrb[16].mxu0 %vm162_vm4, %v12173_v51  ;;  %v1370_v61 = vadd.f32 %v10686_v35, %v9838_v53 }
 0x671   :  { %10720 = vmatprep.mubr.msk.f32.mxu0 %vm12009_vm5, %v12008_v55  ;;  %v1365_v57 = vadd.f32 %v9838_v53, %v1364_v36 }
 0x673   :  { %v10689_v37 = vpop.f32.mrb[24].mxu1 }
 0x674   :  { %v1374_v38 = vpop.f32.mrb[25].mxu1  ;;  %v1380_v1 = vadd.f32 %v10689_v37, %v9838_v53 }
 0x675   :  { %v1375_v62 = vadd.f32 %v9838_v53, %v1374_v38  ;;  %v2306_v53 = vld [vmem:[%s13506_s3 + $0x58] sm:$0xff] }
 0x677   :  { %v10714_v40 = vpop.f32.mrb[26].mxu1 }
 0x678   :  { %v1542_v42 = vpop.f32.mrb[27].mxu1  ;;  %v1548_v2 = vadd.f32 %v10714_v40, %v9848_v43 }
 0x679   :  { %v1543_v63 = vadd.f32 %v9848_v43, %v1542_v42 }
 0x67b   :  { %v10717_v44 = vpop.f32.mrb[28].mxu1 }
 0x67c   :  { %v12334_v45 = vadd.f32 %v10717_v44, %v9848_v43  ;;  %v1552_v46 = vpop.f32.mrb[29].mxu1  ;;  %v2304_v44 = vld [vmem:[%s13506_s3 + $0x48] sm:$0xff] }
 0x67d   :  { %v12336_v48 = vadd.f32 %v9848_v43, %v1552_v46  ;;  %v2303_v43 = vld [vmem:[%s13506_s3 + $0x40] sm:$0xff] }
 0x73f   :  { %v10700_v50 = vpop.f32.mrb[14].mxu0 }
 0x740   :  { %v1453_v52 = vpop.f32.mrb[15].mxu0  ;;  %v1459_v59 = vadd.f32 %v10700_v50, %v9843_v49  ;;  %v11524_v50 = vpack.c.bf16 %v2304_v44, %v2303_v43 }
 0x741   :  { %v1454_v54 = vadd.f32 %v9843_v49, %v1453_v52  ;;  %v2305_v52 = vld [vmem:[%s13506_s3 + $0x50] sm:$0xff] }
 0x743   :  { %v10703_v56 = vpop.f32.mrb[16].mxu0  ;;  %10719 = vmatpush3.xpose.msk.msra.mxu0 %vm532_vm6, %v1454_v54 }
 0x744   :  { %v1463_v58 = vpop.f32.mrb[17].mxu0  ;;  %10723 = vmatprep.subr.mxu0 %v12008_v55  ;;  %v1469_v0 = vadd.f32 %v10703_v56, %v9843_v49 }
 0x745   :  { %v1464_v60 = vadd.f32 %v9843_v49, %v1463_v58 }
 0x746   :  { %10721 = vmatmul.mubr.msk.f32.vlgmr.msra.gmra.mrb[18].mxu0 %vm532_vm6, %v1365_v57 }
 0x747   :  { %10724 = vmatpush3.xpose.msk.msra.mxu0 %vm532_vm6, %v1459_v59  ;;  %10729 = vmatpush3.xpose.msk.msra.mxu1 %vm532_vm6, %v1464_v60  ;;  %v11528_v59 = vpack.c.bf16 %v2306_v53, %v2305_v52  ;;  %v2311_v60 = vld [vmem:[%s13506_s3 + $0x140] sm:$0xff] }
 0x748   :  { %10725 = vmatprep.mubr.msk.f32.mxu0 %vm12009_vm5, %v12008_v55  ;;  %10733 = vmatprep.subr.mxu0 %v12008_v55 }
 0x749   :  { %10738 = vmatprep.subr.mxu1 %v12008_v55 }
 0x74a   :  { %10726 = vmatmul.mubr.msk.f32.vlgmr.msra.gmra.mrb[20].mxu0 %vm532_vm6, %v1370_v61  ;;  %10731 = vmatmul.mubr.msk.f32.vlgmr.msra.gmra.mrb[30].mxu1 %vm532_vm6, %v1375_v62  ;;  %v2312_v61 = vld [vmem:[%s13506_s3 + $0x148] sm:$0xff] }
 0x74b   :  { %10734 = vmatpush3.xpose.msk.msra.mxu0 %vm532_vm6, %v1469_v0  ;;  %10739 = vmatpush3.msra.mxu1 %v1543_v63  ;;  %v11540_v62 = vpack.c.bf16 %v2312_v61, %v2311_v60  ;;  %v2313_v0 = vld [vmem:[%s13506_s3 + $0x150] sm:$0xff] }
 0x74c   :  { %10735 = vmatprep.mubr.msk.f32.mxu0 %vm12009_vm5, %v12008_v55  ;;  %10743 = vmatprep.subr.mxu0 %v12008_v55 }
 0x74d   :  { %10740 = vmatprep.mubr.msk.f32.mxu1 %vm12009_vm5, %v12008_v55  ;;  %10748 = vmatprep.subr.mxu1 %v12008_v55 }
 0x74e   :  { %10736 = vmatmul.mubr.msk.f32.vlgmr.msra.gmra.mrb[22].mxu0 %vm532_vm6, %v1380_v1  ;;  %v2314_v1 = vld [vmem:[%s13506_s3 + $0x158] sm:$0xff] }
 0x74f   :  { %10744 = vmatpush3.msra.mxu0 %v1548_v2  ;;  %10745 = vmatprep.mubr.msk.f32.mxu0 %vm12009_vm5, %v12008_v55  ;;  %v2201_v2 = vld [vmem:[%s13505_s2 + $0x88] sm:$0xff] }
 0x750   :  { %10753 = vmatprep.subr.mxu0 %v12008_v55 }
 0x819   :  { %v1633_v3 = vpop.f32.mrb[18].mxu0 }
 0x81a   :  { %v10722_v4 = vpop.f32.mrb[19].mxu0  ;;  %v1865_v5 = vsel %vm532_vm6, %v1633_v3, -inf }
 0x81b   :  { %1866 = vmax.xlane.f32.xlu1 %v1865_v5  ;;  %v2308_v4 = vld [vmem:[%s13506_s3 + $0xc8] sm:$0xff] }
 0x81d   :  { %v1709_v6 = vpop.f32.mrb[20].mxu0  ;;  %v1785_v7 = vpop.f32.mrb[30].mxu1 }
 0x81e   :  { %v10727_v8 = vpop.f32.mrb[21].mxu0  ;;  %v10732_v9 = vpop.f32.mrb[31].mxu1  ;;  %v1871_v10 = vsel %vm532_vm6, %v1785_v7, -inf  ;;  %v1868_v11 = vsel %vm532_vm6, %v1709_v6, -inf }
 0x81f   :  { %1872 = vmax.xlane.f32.xlu1 %v1871_v10  ;;  %1869 = vmax.xlane.f32.xlu0 %v1868_v11  ;;  %v2309_v8 = vld [vmem:[%s13506_s3 + $0xd0] sm:$0xff]  ;;  %v2310_v9 = vld [vmem:[%s13506_s3 + $0xd8] sm:$0xff] }
 0x820   :  { %v11536_v11 = vpack.c.bf16 %v2310_v9, %v2309_v8 }
 0x821   :  { %v1861_v12 = vpop.f32.mrb[22].mxu0 }
 0x822   :  { %v10737_v13 = vpop.f32.mrb[23].mxu0  ;;  %v1874_v14 = vsel %vm532_vm6, %v1861_v12, -inf }
 0x823   :  { %1875 = vmax.xlane.f32.xlu0 %v1874_v14 }
 0x8a8   :  { %v1867_v15 = vpop.xlane.xlu1 %1866 }
 0x8a9   :  { %v1877_v16 = vsub.f32 %v1633_v3, %v1867_v15  ;;  %v2307_v3 = vld [vmem:[%s13506_s3 + $0xc0] sm:$0xff] }
 0x8aa   :  { %v11532_v5 = vpack.c.bf16 %v2308_v4, %v2307_v3 }
 0x8ab   :  { %v1881_v17 = vmul.f32 1.442695, %v1877_v16 }
 0x8ac   :  { %v1873_v18 = vpop.xlane.xlu1 %1872  ;;  %v1870_v19 = vpop.xlane.xlu0 %1869 }
 0x8ad   :  { %11816 = vpow2.f32 %v1881_v17  ;;  %v1879_v20 = vsub.f32 %v1785_v7, %v1873_v18  ;;  %v1878_v21 = vsub.f32 %v1709_v6, %v1870_v19 }
 0x8af   :  { %v1885_v22 = vmul.f32 1.442695, %v1879_v20  ;;  %v1883_v23 = vmul.f32 1.442695, %v1878_v21 }
 0x8b0   :  { %v1876_v24 = vpop.xlane.xlu0 %1875 }
 0x8b1   :  { %11818 = vpow2.f32 %v1885_v22  ;;  %v1880_v25 = vsub.f32 %v1861_v12, %v1876_v24 }
 0x8b2   :  { %11820 = vpow2.f32 %v1883_v23  ;;  %v9879_v23 = vld [vmem:[%s13506_s3 + $0x30a] ss:$0 sm:$0xff] }
 0x8b3   :  { %v1887_v26 = vmul.f32 1.442695, %v1880_v25 }
 0x8b5   :  { %11822 = vpow2.f32 %v1887_v26 }
 0x8b7   :  { %v11817_v27 = vpop.eup %11816 }
 0x8b8   :  { %v1889_v28 = vsel %vm532_vm6, %v11817_v27, 0.0 }
 0x8b9   :  { %1890 = vadd.xlane.f32.xlu1 %v1889_v28  ;;  %v9874_v28 = vld [vmem:[%s13506_s3 + $0x306] ss:$0 sm:$0xff] }
 0x8bb   :  { %v11819_v31 = vpop.eup %11818 }
 0x8bc   :  { %v11821_v32 = vpop.eup %11820  ;;  %v1895_v33 = vsel %vm532_vm6, %v11819_v31, 0.0 }
 0x8bd   :  { %1896 = vadd.xlane.f32.xlu1 %v1895_v33  ;;  %v1892_v34 = vsel %vm532_vm6, %v11821_v32, 0.0 }
 0x8be   :  { %1893 = vadd.xlane.f32.xlu0 %v1892_v34 }
 0x8bf   :  { %v11823_v35 = vpop.eup %11822 }
 0x8c0   :  { %v1898_v36 = vsel %vm532_vm6, %v11823_v35, 0.0 }
 0x8c2   :  { %1899 = vadd.xlane.f32.xlu0 %v1898_v36 }
 0x946   :  { %v1891_v37 = vpop.xlane.xlu1 %1890 }
 0x947   :  { %11824 = vrcp.f32 %v1891_v37 }
 0x94a   :  { %v1897_v38 = vpop.xlane.xlu1 %1896 }
 0x94b   :  { %11826 = vrcp.f32 %v1897_v38  ;;  %v1894_v40 = vpop.xlane.xlu0 %1893 }
 0x94c   :  { %11828 = vrcp.f32 %v1894_v40 }
 0x94f   :  { %v1900_v42 = vpop.xlane.xlu0 %1899 }
 0x950   :  { %11830 = vrcp.f32 %v1900_v42 }
 0x951   :  { %v11825_v46 = vpop.eup %11824 }
 0x952   :  { %v1905_v49 = vmul.f32 %v11825_v46, %v11817_v27 }
 0x954   :  { %10741 = vmatmul.mubr.msk.f32.vlgmr.msra.gmra.mrb[32].mxu1 %vm532_vm6, %v1905_v49 }
 0x955   :  { %v11827_v54 = vpop.eup %11826  ;;  %10749 = vmatpush3.msra.mxu1 %v12336_v48  ;;  %10750 = vmatprep.mubr.msk.f32.mxu1 %vm12009_vm5, %v12008_v55 }
 0x956   :  { %v11829_v56 = vpop.eup %11828  ;;  %v1907_v57 = vmul.f32 %v11827_v54, %v11819_v31  ;;  %11525 = vmatprep.subr.bf16.mxu1 %v11524_v50 }
 0x957   :  { %v1906_v58 = vmul.f32 %v11829_v56, %v11821_v32  ;;  %v9869_v32 = vld [vmem:[%s13506_s3 + $0x302] ss:$0 sm:$0xff] }
 0x958   :  { %10751 = vmatmul.mubr.msk.f32.vlgmr.msra.gmra.mrb[34].mxu1 %vm532_vm6, %v1907_v57 }
 0x959   :  { %10746 = vmatmul.mubr.msk.f32.vlgmr.msra.gmra.mrb[24].mxu0 %vm532_vm6, %v1906_v58  ;;  %11527 = vmatpush3.bf16.msra.mxu1 %v11524_v50 }
 0x95a   :  { %v11831_v48 = vpop.eup %11830  ;;  %10754 = vmatpush3.msra.mxu0 %v12334_v45  ;;  %10774 = vmatprep.mubr.msk.f32.mxu1 %vm162_vm4, %v12155_v39  ;;  %v11544_v45 = vpack.c.bf16 %v2314_v1, %v2313_v0 }
 0x95b   :  { %v1908_v63 = vmul.f32 %v11831_v48, %v11823_v35  ;;  %10755 = vmatprep.mubr.msk.f32.mxu0 %vm12009_vm5, %v12008_v55  ;;  %11529 = vmatprep.subr.bf16.mxu1 %v11528_v59 }
 0x95c   :  { %10758 = vmatprep.subr.mxu0 %v2201_v2 }
 0x95d   :  { %10756 = vmatmul.mubr.msk.f32.vlgmr.msra.gmra.mrb[26].mxu0 %vm532_vm6, %v1908_v63  ;;  %11531 = vmatpush3.bf16.msra.mxu1 %v11528_v59 }
 0x95e   :  { %11541 = vmatprep.subr.bf16.mxu1 %v11540_v62  ;;  %10759 = vmatpush3.msra.mxu0 %v2201_v2 }
 0x95f   :  { %11533 = vmatprep.subr.bf16.mxu0 %v11532_v5 }
 0x960   :  { %10775 = vmatmul.mubr.msk.f32.vlgmr.msra.gmra.mrb[36].mxu1 %vm162_vm4, %v12157_v41 }
 0x961   :  { %10777 = vmatprep.mubr.msk.f32.mxu1 %vm162_vm4, %v12169_v47  ;;  %11543 = vmatpush3.bf16.msra.mxu1 %v11540_v62 }
 0x962   :  { %11545 = vmatprep.subr.bf16.mxu1 %v11544_v45 }
 0x964   :  { %10778 = vmatmul.mubr.msk.f32.gmra.mrb[38].mxu1 %vm162_vm4, %v12173_v51 }
 0x965   :  { %11547 = vmatpush3.bf16.msra.mxu1 %v11544_v45  ;;  %10802 = vmatprep.mubr.msk.f32.mxu1 %vm162_vm4, %v12155_v39 }
 0x966   :  { %10813 = vmatprep.subr.mxu1 %v12008_v55 }
 0x968   :  { %10803 = vmatmul.mubr.msk.f32.vlgmr.msra.gmra.mrb[40].mxu1 %vm162_vm4, %v12157_v41 }
 0x969   :  { %10805 = vmatprep.mubr.msk.f32.mxu1 %vm162_vm4, %v12169_v47 }
 0x96c   :  { %10806 = vmatmul.mubr.msk.f32.gmra.mrb[42].mxu1 %vm162_vm4, %v12173_v51 }
 0x96d   :  { %10815 = vmatprep.mubr.msk.f32.mxu1 %vm12009_vm5, %v12008_v55 }
 0xa27   :  { %v1978_v6 = vpop.f32.mrb[32].mxu1 }
 0xa28   :  { %v10742_v7 = vpop.f32.mrb[33].mxu1  ;;  %10760 = vmatprep.mubr.msk.f32.mxu0 %vm532_vm6, %v1978_v6 }
 0xa2b   :  { %v2124_v10 = vpop.f32.mrb[34].mxu1 }
 0xa2c   :  { %v2051_v12 = vpop.f32.mrb[24].mxu0  ;;  %v10752_v13 = vpop.f32.mrb[35].mxu1 }
 0xa2d   :  { %v10747_v14 = vpop.f32.mrb[25].mxu0  ;;  %10761 = vmatmul.mubr.msk.f32.vlgmr.msra.gmra.mrb[10].mxu0 %vm532_vm6, %v2051_v12 }
 0xa2e   :  { %10763 = vmatprep.mubr.msk.f32.mxu0 %vm532_vm6, %v2124_v10  ;;  %11535 = vmatpush3.bf16.msra.mxu0 %v11532_v5 }
 0xa2f   :  { %11537 = vmatprep.subr.bf16.mxu0 %v11536_v11 }
 0xa30   :  { %v2197_v15 = vpop.f32.mrb[26].mxu0 }
 0xa31   :  { %v10757_v16 = vpop.f32.mrb[27].mxu0  ;;  %10764 = vmatmul.mubr.msk.f32.gmra.mrb[12].mxu0 %vm532_vm6, %v2197_v15 }
 0xa32   :  { %11539 = vmatpush3.bf16.msra.mxu0 %v11536_v11  ;;  %10788 = vmatprep.mubr.msk.f32.mxu0 %vm162_vm4, %v12155_v39 }
 0xa33   :  { %v10776_v17 = vpop.f32.mrb[36].mxu1  ;;  %10808 = vmatprep.subr.mxu0 %v12008_v55 }
 0xa34   :  { %v2388_v18 = vpop.f32.mrb[37].mxu1  ;;  %v2394_v36 = vadd.f32 %v10776_v17, %v9869_v32 }
 0xa35   :  { %10789 = vmatmul.mubr.msk.f32.vlgmr.msra.gmra.mrb[28].mxu0 %vm162_vm4, %v12157_v41  ;;  %v2389_v38 = vadd.f32 %v9869_v32, %v2388_v18 }
 0xa36   :  { %10791 = vmatprep.mubr.msk.f32.mxu0 %vm162_vm4, %v12169_v47 }
 0xa37   :  { %v10779_v19 = vpop.f32.mrb[38].mxu1 }
 0xa38   :  { %v2398_v20 = vpop.f32.mrb[39].mxu1  ;;  %v2404_v44 = vadd.f32 %v10779_v19, %v9869_v32 }
 0xa39   :  { %10792 = vmatmul.mubr.msk.f32.gmra.mrb[30].mxu0 %vm162_vm4, %v12173_v51  ;;  %v2399_v46 = vadd.f32 %v9869_v32, %v2398_v20 }
 0xa3a   :  { %10810 = vmatprep.mubr.msk.f32.mxu0 %vm12009_vm5, %v12008_v55 }
 0xa3b   :  { %v10804_v21 = vpop.f32.mrb[40].mxu1 }
 0xa3c   :  { %v2566_v22 = vpop.f32.mrb[41].mxu1  ;;  %v2572_v49 = vadd.f32 %v10804_v21, %v9879_v23 }
 0xa3d   :  { %v2567_v50 = vadd.f32 %v9879_v23, %v2566_v22 }
 0xa3f   :  { %v10807_v24 = vpop.f32.mrb[42].mxu1 }
 0xa40   :  { %v12460_v25 = vadd.f32 %v10807_v24, %v9879_v23  ;;  %v2576_v26 = vpop.f32.mrb[43].mxu1  ;;  %v3328_v24 = vld [vmem:[%s13506_s3 + $0x68] sm:$0xff] }
 0xa41   :  { %v12462_v27 = vadd.f32 %v9879_v23, %v2576_v26  ;;  %v3327_v23 = vld [vmem:[%s13506_s3 + $0x60] sm:$0xff] }
 0xb08   :  { %v10790_v31 = vpop.f32.mrb[28].mxu0 }
 0xb09   :  { %v2483_v33 = vadd.f32 %v10790_v31, %v9874_v28  ;;  %v2477_v34 = vpop.f32.mrb[29].mxu0 }
 0xb0a   :  { %v2478_v35 = vadd.f32 %v9874_v28, %v2477_v34  ;;  %v3329_v34 = vld [vmem:[%s13506_s3 + $0x70] sm:$0xff] }
 0xb0b   :  { %10814 = vmatpush3.xpose.msk.msra.mxu1 %vm532_vm6, %v2483_v33  ;;  %v11548_v33 = vpack.c.bf16 %v3328_v24, %v3327_v23 }
 0xb0c   :  { %v10793_v37 = vpop.f32.mrb[30].mxu0  ;;  %10809 = vmatpush3.xpose.msk.msra.mxu0 %vm532_vm6, %v2478_v35  ;;  %10823 = vmatprep.subr.mxu1 %v12008_v55  ;;  %v3330_v35 = vld [vmem:[%s13506_s3 + $0x78] sm:$0xff] }
 0xb0d   :  { %v2493_v40 = vadd.f32 %v10793_v37, %v9874_v28  ;;  %v2487_v42 = vpop.f32.mrb[31].mxu0  ;;  %10818 = vmatprep.subr.mxu0 %v12008_v55 }
 0xb0e   :  { %v2488_v43 = vadd.f32 %v9874_v28, %v2487_v42  ;;  %10816 = vmatmul.mubr.msk.f32.vlgmr.msra.gmra.mrb[44].mxu1 %vm532_vm6, %v2394_v36 }
 0xb0f   :  { %10811 = vmatmul.mubr.msk.f32.vlgmr.msra.gmra.mrb[32].mxu0 %vm532_vm6, %v2389_v38  ;;  %10824 = vmatpush3.xpose.msk.msra.mxu1 %vm532_vm6, %v2493_v40  ;;  %v11552_v40 = vpack.c.bf16 %v3330_v35, %v3329_v34 }
 0xb10   :  { %10819 = vmatpush3.xpose.msk.msra.mxu0 %vm532_vm6, %v2488_v43  ;;  %10825 = vmatprep.mubr.msk.f32.mxu1 %vm12009_vm5, %v12008_v55  ;;  %v3335_v43 = vld [vmem:[%s13506_s3 + $0x160] sm:$0xff] }
 0xb11   :  { %10820 = vmatprep.mubr.msk.f32.mxu0 %vm12009_vm5, %v12008_v55  ;;  %10833 = vmatprep.subr.mxu1 %v12008_v55 }
 0xb12   :  { %10826 = vmatmul.mubr.msk.f32.vlgmr.msra.gmra.mrb[46].mxu1 %vm532_vm6, %v2404_v44  ;;  %10828 = vmatprep.subr.mxu0 %v12008_v55  ;;  %v3337_v44 = vld [vmem:[%s13506_s3 + $0x170] sm:$0xff] }
 0xb13   :  { %10821 = vmatmul.mubr.msk.f32.vlgmr.msra.gmra.mrb[34].mxu0 %vm532_vm6, %v2399_v46  ;;  %10834 = vmatpush3.msra.mxu1 %v2572_v49  ;;  %v3338_v46 = vld [vmem:[%s13506_s3 + $0x178] sm:$0xff] }
 0xb14   :  { %10829 = vmatpush3.msra.mxu0 %v2567_v50  ;;  %10835 = vmatprep.mubr.msk.f32.mxu1 %vm12009_vm5, %v12008_v55  ;;  %v11568_v49 = vpack.c.bf16 %v3338_v46, %v3337_v44  ;;  %v3225_v50 = vld [vmem:[%s13505_s2 + $0x90] sm:$0xff] }
 0xb15   :  { %10843 = vmatprep.subr.mxu1 %v12008_v55  ;;  %10830 = vmatprep.mubr.msk.f32.mxu0 %vm12009_vm5, %v12008_v55 }
 0xb16   :  { %10838 = vmatprep.subr.mxu0 %v12008_v55 }
 0xbe1   :  { %v2733_v52 = vpop.f32.mrb[44].mxu1 }
 0xbe2   :  { %v2657_v53 = vpop.f32.mrb[32].mxu0  ;;  %v10817_v54 = vpop.f32.mrb[45].mxu1  ;;  %v2892_v56 = vsel %vm532_vm6, %v2733_v52, -inf }
 0xbe3   :  { %2893 = vmax.xlane.f32.xlu0 %v2892_v56  ;;  %v10812_v57 = vpop.f32.mrb[33].mxu0  ;;  %v2889_v58 = vsel %vm532_vm6, %v2657_v53, -inf  ;;  %v3333_v56 = vld [vmem:[%s13506_s3 + $0xf0] sm:$0xff] }
 0xbe4   :  { %2890 = vmax.xlane.f32.xlu1 %v2889_v58  ;;  %v3334_v57 = vld [vmem:[%s13506_s3 + $0xf8] sm:$0xff] }
 0xbe5   :  { %v2885_v59 = vpop.f32.mrb[46].mxu1 }
 0xbe6   :  { %v2809_v60 = vpop.f32.mrb[34].mxu0  ;;  %v10827_v61 = vpop.f32.mrb[47].mxu1  ;;  %v2898_v48 = vsel %vm532_vm6, %v2885_v59, -inf }
 0xbe7   :  { %2899 = vmax.xlane.f32.xlu0 %v2898_v48  ;;  %v10822_v62 = vpop.f32.mrb[35].mxu0  ;;  %v2895_v63 = vsel %vm532_vm6, %v2809_v60, -inf  ;;  %v11560_v61 = vpack.c.bf16 %v3334_v57, %v3333_v56 }
 0xbe8   :  { %2896 = vmax.xlane.f32.xlu1 %v2895_v63 }
 0xc70   :  { %v2894_v0 = vpop.xlane.xlu0 %2893 }
 0xc71   :  { %v2902_v1 = vsub.f32 %v2733_v52, %v2894_v0  ;;  %v2891_v45 = vpop.xlane.xlu1 %2890  ;;  %v3331_v52 = vld [vmem:[%s13506_s3 + $0xe0] sm:$0xff] }
 0xc72   :  { %v2901_v2 = vsub.f32 %v2657_v53, %v2891_v45  ;;  %v3332_v53 = vld [vmem:[%s13506_s3 + $0xe8] sm:$0xff] }
 0xc73   :  { %v2907_v3 = vmul.f32 1.442695, %v2902_v1  ;;  %v11556_v54 = vpack.c.bf16 %v3332_v53, %v3331_v52 }
 0xc74   :  { %v2905_v4 = vmul.f32 1.442695, %v2901_v2  ;;  %v2900_v5 = vpop.xlane.xlu0 %2899 }
 0xc75   :  { %11832 = vpow2.f32 %v2907_v3  ;;  %v2904_v6 = vsub.f32 %v2885_v59, %v2900_v5  ;;  %v2897_v7 = vpop.xlane.xlu1 %2896 }
 0xc76   :  { %11834 = vpow2.f32 %v2905_v4  ;;  %v2903_v8 = vsub.f32 %v2809_v60, %v2897_v7  ;;  %v9910_v7 = vld [vmem:[%s13506_s3 + $0x30b] ss:$0 sm:$0xff] }
 0xc77   :  { %v2911_v9 = vmul.f32 1.442695, %v2904_v6 }
 0xc78   :  { %v2909_v10 = vmul.f32 1.442695, %v2903_v8 }
 0xc79   :  { %11836 = vpow2.f32 %v2911_v9 }
 0xc7a   :  { %11838 = vpow2.f32 %v2909_v10 }
 0xc7f   :  { %v11833_v11 = vpop.eup %11832 }
 0xc80   :  { %v11835_v12 = vpop.eup %11834  ;;  %v2916_v13 = vsel %vm532_vm6, %v11833_v11, 0.0 }
 0xc81   :  { %2917 = vadd.xlane.f32.xlu0 %v2916_v13  ;;  %v2913_v14 = vsel %vm532_vm6, %v11835_v12, 0.0 }
 0xc82   :  { %2914 = vadd.xlane.f32.xlu1 %v2913_v14 }
 0xc83   :  { %v11837_v15 = vpop.eup %11836 }
 0xc84   :  { %v11839_v16 = vpop.eup %11838  ;;  %v2922_v17 = vsel %vm532_vm6, %v11837_v15, 0.0 }
 0xc85   :  { %2923 = vadd.xlane.f32.xlu0 %v2922_v17  ;;  %v2919_v18 = vsel %vm532_vm6, %v11839_v16, 0.0 }
 0xc86   :  { %2920 = vadd.xlane.f32.xlu1 %v2919_v18 }
 0xd0e   :  { %v2918_v19 = vpop.xlane.xlu0 %2917 }
 0xd0f   :  { %11840 = vrcp.f32 %v2918_v19  ;;  %v2915_v20 = vpop.xlane.xlu1 %2914 }
 0xd10   :  { %11842 = vrcp.f32 %v2915_v20 }
 0xd12   :  { %v2924_v21 = vpop.xlane.xlu0 %2923 }
 0xd13   :  { %11844 = vrcp.f32 %v2924_v21  ;;  %v2921_v22 = vpop.xlane.xlu1 %2920 }
 0xd14   :  { %11846 = vrcp.f32 %v2921_v22 }
 0xd19   :  { %v11841_v26 = vpop.eup %11840 }
 0xd1a   :  { %v11843_v28 = vpop.eup %11842  ;;  %v2930_v31 = vmul.f32 %v11841_v26, %v11833_v11 }
 0xd1b   :  { %v2929_v32 = vmul.f32 %v11843_v28, %v11835_v12  ;;  %v9905_v12 = vld [vmem:[%s13506_s3 + $0x307] ss:$0 sm:$0xff] }
 0xd1c   :  { %10836 = vmatmul.mubr.msk.f32.vlgmr.msra.gmra.mrb[48].mxu1 %vm532_vm6, %v2930_v31 }
 0xd1d   :  { %v11845_v36 = vpop.eup %11844  ;;  %10844 = vmatpush3.msra.mxu1 %v12460_v25  ;;  %10831 = vmatmul.mubr.msk.f32.vlgmr.msra.gmra.mrb[36].mxu0 %vm532_vm6, %v2929_v32  ;;  %v3336_v25 = vld [vmem:[%s13506_s3 + $0x168] sm:$0xff] }
 0xd1e   :  { %v11847_v37 = vpop.eup %11846  ;;  %v2932_v38 = vmul.f32 %v11845_v36, %v11837_v15  ;;  %10839 = vmatpush3.msra.mxu0 %v12462_v27  ;;  %10845 = vmatprep.mubr.msk.f32.mxu1 %vm12009_vm5, %v12008_v55  ;;  %v11564_v27 = vpack.c.bf16 %v3336_v25, %v3335_v43  ;;  %v9900_v15 = vld [vmem:[%s13506_s3 + $0x303] ss:$0 sm:$0xff] }
 0xd1f   :  { %v2931_v42 = vmul.f32 %v11847_v37, %v11839_v16  ;;  %11549 = vmatprep.subr.bf16.mxu1 %v11548_v33  ;;  %10840 = vmatprep.mubr.msk.f32.mxu0 %vm12009_vm5, %v12008_v55 }
 0xd20   :  { %10846 = vmatmul.mubr.msk.f32.vlgmr.msra.gmra.mrb[50].mxu1 %vm532_vm6, %v2932_v38  ;;  %10848 = vmatprep.subr.mxu0 %v3225_v50 }
 0xd21   :  { %11551 = vmatpush3.bf16.msra.mxu1 %v11548_v33  ;;  %10841 = vmatmul.mubr.msk.f32.vlgmr.msra.gmra.mrb[38].mxu0 %vm532_vm6, %v2931_v42 }
 0xd22   :  { %10864 = vmatprep.mubr.msk.f32.mxu1 %vm162_vm4, %v12155_v39  ;;  %11553 = vmatprep.subr.bf16.mxu1 %v11552_v40 }
 0xd23   :  { %10849 = vmatpush3.msra.mxu0 %v3225_v50 }
 0xd24   :  { %11557 = vmatprep.subr.bf16.mxu0 %v11556_v54 }
 0xd25   :  { %11555 = vmatpush3.bf16.msra.mxu1 %v11552_v40 }
 0xd26   :  { %11565 = vmatprep.subr.bf16.mxu1 %v11564_v27 }
 0xd28   :  { %10865 = vmatmul.mubr.msk.f32.vlgmr.msra.gmra.mrb[52].mxu1 %vm162_vm4, %v12157_v41 }
 0xd29   :  { %10867 = vmatprep.mubr.msk.f32.mxu1 %vm162_vm4, %v12169_v47  ;;  %11567 = vmatpush3.bf16.msra.mxu1 %v11564_v27 }
 0xd2a   :  { %11569 = vmatprep.subr.bf16.mxu1 %v11568_v49 }
 0xd2c   :  { %10868 = vmatmul.mubr.msk.f32.gmra.mrb[54].mxu1 %vm162_vm4, %v12173_v51 }
 0xd2d   :  { %11571 = vmatpush3.bf16.msra.mxu1 %v11568_v49  ;;  %10892 = vmatprep.mubr.msk.f32.mxu1 %vm162_vm4, %v12155_v39 }
 0xd2e   :  { %10908 = vmatprep.subr.mxu1 %v12008_v55 }
 0xd30   :  { %10893 = vmatmul.mubr.msk.f32.vlgmr.msra.gmra.mrb[56].mxu1 %vm162_vm4, %v12157_v41 }
 0xd31   :  { %10895 = vmatprep.mubr.msk.f32.mxu1 %vm162_vm4, %v12169_v47 }
 0xd34   :  { %10896 = vmatmul.mubr.msk.f32.gmra.mrb[58].mxu1 %vm162_vm4, %v12173_v51 }
 0xd35   :  { %10910 = vmatprep.mubr.msk.f32.mxu1 %vm12009_vm5, %v12008_v55 }
 0xdef   :  { %v3075_v58 = vpop.f32.mrb[48].mxu1 }
 0xdf0   :  { %v3002_v59 = vpop.f32.mrb[36].mxu0  ;;  %v10837_v60 = vpop.f32.mrb[49].mxu1 }
 0xdf1   :  { %v10832_v48 = vpop.f32.mrb[37].mxu0  ;;  %10850 = vmatprep.mubr.msk.f32.mxu0 %vm532_vm6, %v3002_v59 }
 0xdf2   :  { %10851 = vmatmul.mubr.msk.f32.vlgmr.msra.gmra.mrb[10].mxu0 %vm532_vm6, %v3075_v58 }
 0xdf3   :  { %v3221_v62 = vpop.f32.mrb[50].mxu1  ;;  %11559 = vmatpush3.bf16.msra.mxu0 %v11556_v54 }
 0xdf4   :  { %v3148_v63 = vpop.f32.mrb[38].mxu0  ;;  %v10847_v0 = vpop.f32.mrb[51].mxu1  ;;  %11561 = vmatprep.subr.bf16.mxu0 %v11560_v61 }
 0xdf5   :  { %v10842_v1 = vpop.f32.mrb[39].mxu0  ;;  %10853 = vmatprep.mubr.msk.f32.mxu0 %vm532_vm6, %v3148_v63 }
 0xdf6   :  { %10854 = vmatmul.mubr.msk.f32.gmra.mrb[12].mxu0 %vm532_vm6, %v3221_v62 }
 0xdf7   :  { %11563 = vmatpush3.bf16.msra.mxu0 %v11560_v61  ;;  %10878 = vmatprep.mubr.msk.f32.mxu0 %vm162_vm4, %v12155_v39 }
 0xdf8   :  { %10898 = vmatprep.subr.mxu0 %v12008_v55 }
 0xdfa   :  { %10879 = vmatmul.mubr.msk.f32.vlgmr.msra.gmra.mrb[40].mxu0 %vm162_vm4, %v12157_v41 }
 0xdfb   :  { %v10866_v45 = vpop.f32.mrb[52].mxu1  ;;  %10881 = vmatprep.mubr.msk.f32.mxu0 %vm162_vm4, %v12169_v47 }
 0xdfc   :  { %v3412_v2 = vpop.f32.mrb[53].mxu1  ;;  %v3418_v22 = vadd.f32 %v10866_v45, %v9900_v15 }
 0xdfd   :  { %v3413_v18 = vadd.f32 %v9900_v15, %v3412_v2 }
 0xdfe   :  { %10882 = vmatmul.mubr.msk.f32.gmra.mrb[42].mxu0 %vm162_vm4, %v12173_v51 }
 0xdff   :  { %v10869_v3 = vpop.f32.mrb[54].mxu1  ;;  %10900 = vmatprep.mubr.msk.f32.mxu0 %vm12009_vm5, %v12008_v55 }
 0xe00   :  { %v3422_v4 = vpop.f32.mrb[55].mxu1  ;;  %v3428_v28 = vadd.f32 %v10869_v3, %v9900_v15 }
 0xe01   :  { %v3423_v23 = vadd.f32 %v9900_v15, %v3422_v4 }
 0xe03   :  { %v10894_v5 = vpop.f32.mrb[56].mxu1 }
 0xe04   :  { %v3590_v6 = vpop.f32.mrb[57].mxu1  ;;  %v3596_v31 = vadd.f32 %v10894_v5, %v9910_v7 }
 0xe05   :  { %v3591_v24 = vadd.f32 %v9910_v7, %v3590_v6 }
 0xe07   :  { %v10897_v8 = vpop.f32.mrb[58].mxu1 }
 0xe08   :  { %v12586_v9 = vadd.f32 %v10897_v8, %v9910_v7  ;;  %v3600_v10 = vpop.f32.mrb[59].mxu1 }
 0xe09   :  { %v12588_v11 = vadd.f32 %v9910_v7, %v3600_v10 }
 0xecd   :  { %v10880_v13 = vpop.f32.mrb[40].mxu0 }
 0xece   :  { %v3501_v14 = vpop.f32.mrb[41].mxu0  ;;  %v3507_v20 = vadd.f32 %v10880_v13, %v9905_v12 }
 0xecf   :  { %v3502_v16 = vadd.f32 %v9905_v12, %v3501_v14 }
 0xed1   :  { %v10883_v17 = vpop.f32.mrb[42].mxu0  ;;  %10899 = vmatpush3.xpose.msk.msra.mxu0 %vm532_vm6, %v3502_v16 }
 0xed2   :  { %v3511_v19 = vpop.f32.mrb[43].mxu0  ;;  %10903 = vmatprep.subr.mxu0 %v12008_v55  ;;  %v3517_v26 = vadd.f32 %v10883_v17, %v9905_v12 }
 0xed3   :  { %v3512_v21 = vadd.f32 %v9905_v12, %v3511_v19 }
 0xed4   :  { %10901 = vmatmul.mubr.msk.f32.vlgmr.msra.gmra.mrb[44].mxu0 %vm532_vm6, %v3413_v18 }
 0xed5   :  { %10904 = vmatpush3.xpose.msk.msra.mxu0 %vm532_vm6, %v3507_v20  ;;  %10909 = vmatpush3.xpose.msk.msra.mxu1 %vm532_vm6, %v3512_v21 }
 0xed6   :  { %10905 = vmatprep.mubr.msk.f32.mxu0 %vm12009_vm5, %v12008_v55  ;;  %10913 = vmatprep.subr.mxu0 %v12008_v55 }
 0xed7   :  { %10918 = vmatprep.subr.mxu1 %v12008_v55 }
 0xed8   :  { %10906 = vmatmul.mubr.msk.f32.vlgmr.msra.gmra.mrb[46].mxu0 %vm532_vm6, %v3418_v22  ;;  %10911 = vmatmul.mubr.msk.f32.vlgmr.msra.gmra.mrb[60].mxu1 %vm532_vm6, %v3423_v23 }
 0xed9   :  { %10914 = vmatpush3.xpose.msk.msra.mxu0 %vm532_vm6, %v3517_v26  ;;  %10919 = vmatpush3.msra.mxu1 %v3591_v24  ;;  %v9837_v24 = vld [vmem:[%s13505_s2 + $0x18e] ss:$0 sm:$0xff] }
 0xeda   :  { %10915 = vmatprep.mubr.msk.f32.mxu0 %vm12009_vm5, %v12008_v55  ;;  %10923 = vmatprep.subr.mxu0 %v12008_v55 }
 0xedb   :  { %10920 = vmatprep.mubr.msk.f32.mxu1 %vm12009_vm5, %v12008_v55  ;;  %10928 = vmatprep.subr.mxu1 %v12008_v55 }
 0xedc   :  { %10916 = vmatmul.mubr.msk.f32.vlgmr.msra.gmra.mrb[48].mxu0 %vm532_vm6, %v3428_v28 }
 0xedd   :  { %10924 = vmatpush3.msra.mxu0 %v3596_v31  ;;  %10925 = vmatprep.mubr.msk.f32.mxu0 %vm12009_vm5, %v12008_v55 }
 0xede   :  { %10933 = vmatprep.subr.mxu0 %v12008_v55 }
 0xfa7   :  { %v3681_v32 = vpop.f32.mrb[44].mxu0 }
 0xfa8   :  { %v10902_v33 = vpop.f32.mrb[45].mxu0  ;;  %v3913_v34 = vsel %vm532_vm6, %v3681_v32, -inf }
 0xfa9   :  { %3914 = vmax.xlane.f32.xlu1 %v3913_v34 }
 0xfab   :  { %v3757_v35 = vpop.f32.mrb[46].mxu0  ;;  %v3833_v36 = vpop.f32.mrb[60].mxu1 }
 0xfac   :  { %v10907_v37 = vpop.f32.mrb[47].mxu0  ;;  %v10912_v38 = vpop.f32.mrb[61].mxu1  ;;  %v3919_v40 = vsel %vm532_vm6, %v3833_v36, -inf  ;;  %v3916_v42 = vsel %vm532_vm6, %v3757_v35, -inf }
 0xfad   :  { %3920 = vmax.xlane.f32.xlu1 %v3919_v40  ;;  %3917 = vmax.xlane.f32.xlu0 %v3916_v42 }
 0xfaf   :  { %v3909_v43 = vpop.f32.mrb[48].mxu0 }
 0xfb0   :  { %v10917_v25 = vpop.f32.mrb[49].mxu0  ;;  %v3922_v27 = vsel %vm532_vm6, %v3909_v43, -inf }
 0xfb1   :  { %3923 = vmax.xlane.f32.xlu0 %v3922_v27 }
0x1036   :  { %v3915_v44 = vpop.xlane.xlu1 %3914 }
0x1037   :  { %v3925_v46 = vsub.f32 %v3681_v32, %v3915_v44 }
0x1039   :  { %v3929_v49 = vmul.f32 1.442695, %v3925_v46 }
0x103a   :  { %v3921_v50 = vpop.xlane.xlu1 %3920  ;;  %v3918_v52 = vpop.xlane.xlu0 %3917 }
0x103b   :  { %11848 = vpow2.f32 %v3929_v49  ;;  %v3927_v53 = vsub.f32 %v3833_v36, %v3921_v50  ;;  %v3926_v54 = vsub.f32 %v3757_v35, %v3918_v52 }
0x103d   :  { %v3933_v56 = vmul.f32 1.442695, %v3927_v53  ;;  %v3931_v57 = vmul.f32 1.442695, %v3926_v54 }
0x103e   :  { %v3924_v58 = vpop.xlane.xlu0 %3923 }
0x103f   :  { %11850 = vpow2.f32 %v3933_v56  ;;  %v3928_v59 = vsub.f32 %v3909_v43, %v3924_v58 }
0x1040   :  { %11852 = vpow2.f32 %v3931_v57 }
0x1041   :  { %v3935_v60 = vmul.f32 1.442695, %v3928_v59 }
0x1043   :  { %11854 = vpow2.f32 %v3935_v60 }
0x1045   :  { %v11849_v61 = vpop.eup %11848 }
0x1046   :  { %v3937_v48 = vsel %vm532_vm6, %v11849_v61, 0.0 }
0x1047   :  { %3938 = vadd.xlane.f32.xlu1 %v3937_v48 }
0x1049   :  { %v11851_v62 = vpop.eup %11850 }
0x104a   :  { %v11853_v63 = vpop.eup %11852  ;;  %v3943_v0 = vsel %vm532_vm6, %v11851_v62, 0.0 }
0x104b   :  { %3944 = vadd.xlane.f32.xlu1 %v3943_v0  ;;  %v3940_v1 = vsel %vm532_vm6, %v11853_v63, 0.0 }
0x104c   :  { %3941 = vadd.xlane.f32.xlu0 %v3940_v1  ;;  %v4423_v1 = vld [vmem:[%s13507_s4] sm:$0xff] }
0x104d   :  { %v11855_v45 = vpop.eup %11854 }
0x104e   :  { %v3946_v2 = vsel %vm532_vm6, %v11855_v45, 0.0 }
0x1050   :  { %3947 = vadd.xlane.f32.xlu0 %v3946_v2 }
0x10d4   :  { %v3939_v3 = vpop.xlane.xlu1 %3938 }
0x10d5   :  { %11856 = vrcp.f32 %v3939_v3  ;;  %v4425_v3 = vld [vmem:[%s13507_s4 + $0x10] sm:$0xff] }
0x10d8   :  { %v3945_v4 = vpop.xlane.xlu1 %3944 }
0x10d9   :  { %11858 = vrcp.f32 %v3945_v4  ;;  %v3942_v5 = vpop.xlane.xlu0 %3941  ;;  %v4426_v4 = vld [vmem:[%s13507_s4 + $0x18] sm:$0xff] }
0x10da   :  { %11860 = vrcp.f32 %v3942_v5  ;;  %v11576_v5 = vpack.c.bf16 %v4426_v4, %v4425_v3 }
0x10dd   :  { %v3948_v6 = vpop.xlane.xlu0 %3947 }
0x10de   :  { %11862 = vrcp.f32 %v3948_v6 }
0x10df   :  { %v11857_v7 = vpop.eup %11856 }
0x10e0   :  { %v3953_v8 = vmul.f32 %v11857_v7, %v11849_v61 }
0x10e2   :  { %10921 = vmatmul.mubr.msk.f32.vlgmr.msra.gmra.mrb[62].mxu1 %vm532_vm6, %v3953_v8 }
0x10e3   :  { %v11859_v10 = vpop.eup %11858  ;;  %10929 = vmatpush3.msra.mxu1 %v12588_v11  ;;  %10930 = vmatprep.mubr.msk.f32.mxu1 %vm12009_vm5, %v12008_v55  ;;  %v4249_v11 = vld [vmem:[%s13505_s2 + $0x98] sm:$0xff] }
0x10e4   :  { %v11861_v12 = vpop.eup %11860  ;;  %v3955_v13 = vmul.f32 %v11859_v10, %v11851_v62 }
0x10e5   :  { %v3954_v14 = vmul.f32 %v11861_v12, %v11853_v63 }
0x10e6   :  { %10931 = vmatmul.mubr.msk.f32.vlgmr.msra.gmra.mrb[64].mxu1 %vm532_vm6, %v3955_v13 }
0x10e7   :  { %10926 = vmatmul.mubr.msk.f32.vlgmr.msra.gmra.mrb[50].mxu0 %vm532_vm6, %v3954_v14 }
0x10e8   :  { %v11863_v15 = vpop.eup %11862  ;;  %10934 = vmatpush3.msra.mxu0 %v12586_v9  ;;  %10935 = vmatprep.mubr.msk.f32.mxu0 %vm12009_vm5, %v12008_v55 }
0x10e9   :  { %v3956_v16 = vmul.f32 %v11863_v15, %v11855_v45  ;;  %10938 = vmatprep.subr.mxu0 %v4249_v11  ;;  %v4424_v45 = vld [vmem:[%s13507_s4 + $0x8] sm:$0xff] }
0x10ea   :  { %v11572_v2 = vpack.c.bf16 %v4424_v45, %v4423_v1 }
0x10eb   :  { %10936 = vmatmul.mubr.msk.f32.vlgmr.msra.gmra.mrb[52].mxu0 %vm532_vm6, %v3956_v16 }
0x10ec   :  { %10939 = vmatpush3.msra.mxu0 %v4249_v11  ;;  %11573 = vmatprep.subr.bf16.mxu1 %v11572_v2 }
0x10ed   :  { %11575 = vmatpush3.bf16.msra.mxu1 %v11572_v2 }
0x10ee   :  { %11577 = vmatprep.subr.bf16.mxu1 %v11576_v5 }
0x10f1   :  { %11579 = vmatpush3.bf16.msra.mxu1 %v11576_v5 }
0x11b5   :  { %v4026_v17 = vpop.f32.mrb[62].mxu1 }
0x11b6   :  { %v10922_v18 = vpop.f32.mrb[63].mxu1  ;;  %10940 = vmatprep.mubr.msk.f32.mxu0 %vm532_vm6, %v4026_v17 }
0x11b9   :  { %v4172_v19 = vpop.f32.mrb[64].mxu1 }
0x11ba   :  { %v4099_v20 = vpop.f32.mrb[50].mxu0  ;;  %v10932_v21 = vpop.f32.mrb[65].mxu1 }
0x11bb   :  { %v10927_v9 = vpop.f32.mrb[51].mxu0  ;;  %10941 = vmatmul.mubr.msk.f32.vlgmr.msra.gmra.mrb[10].mxu0 %vm532_vm6, %v4099_v20  ;;  %v9931_v20 = vld [vmem:[%s13505_s2 + $0x18f] ss:$0 sm:$0xff] }
0x11bc   :  { %10943 = vmatprep.mubr.msk.f32.mxu0 %vm532_vm6, %v4172_v19 }
0x11be   :  { %v4245_v22 = vpop.f32.mrb[52].mxu0 }
0x11bf   :  { %v10937_v23 = vpop.f32.mrb[53].mxu0  ;;  %10944 = vmatmul.mubr.msk.f32.gmra.mrb[12].mxu0 %vm532_vm6, %v4245_v22 }
0x11c0   :  { %v9932_v23 = vld [vmem:[%s13505_s2 + $0x190] ss:$0 sm:$0xff] }
0x128e   :  { %v10942_v26 = vpop.f32.mrb[10].mxu0 }
0x128f   :  { %v11752_v28 = vadd.f32 %v10942_v26, %v9837_v24  ;;  %v4328_v31 = vpop.f32.mrb[11].mxu0 }
0x1290   :  { %v11753_v32 = vadd.f32 %v9837_v24, %v4328_v31 }
0x1291   :  { %v4352_v33 = vadd.f32 %v11752_v28, %v12157_v41 }
0x1292   :  { %v10945_v34 = vpop.f32.mrb[12].mxu0  ;;  %v4351_v35 = vadd.f32 %v11753_v32, %v12155_v39 }
0x1293   :  { %v11754_v36 = vadd.f32 %v10945_v34, %v9837_v24  ;;  %v4338_v37 = vpop.f32.mrb[13].mxu0  ;;  %v4358_v38 = vsel %vm162_vm4, %v4352_v33, 0.0 }
0x1294   :  { %v11755_v40 = vadd.f32 %v9837_v24, %v4338_v37  ;;  %4359 = vadd.xlane.f32.xlu0 %v4358_v38  ;;  %v4355_v42 = vsel %vm162_vm4, %v4351_v35, 0.0 }
0x1295   :  { %4356 = vadd.xlane.f32.xlu1 %v4355_v42  ;;  %v4354_v43 = vadd.f32 %v11754_v36, %v12173_v51  ;;  %v4428_v42 = vld [vmem:[%s13505_s2 + $0xc0] sm:$0xff] }
0x1296   :  { %v4353_v25 = vadd.f32 %v11755_v40, %v12169_v47 }
0x1297   :  { %v4364_v27 = vsel %vm162_vm4, %v4354_v43, 0.0 }
0x1298   :  { %4365 = vadd.xlane.f32.xlu0 %v4364_v27  ;;  %v4361_v41 = vsel %vm162_vm4, %v4353_v25, 0.0  ;;  %v4430_v27 = vld [vmem:[%s13505_s2 + $0xd0] sm:$0xff] }
0x1299   :  { %4362 = vadd.xlane.f32.xlu1 %v4361_v41  ;;  %v4431_v41 = vld [vmem:[%s13505_s2 + $0xd8] sm:$0xff] }
0x1321   :  { %v4360_v39 = vpop.xlane.xlu0 %4359 }
0x1322   :  { %v4368_v44 = vmul.f32 0.03125, %v4360_v39  ;;  %v4357_v46 = vpop.xlane.xlu1 %4356  ;;  %v11584_v39 = vpack.c.bf16 %v4431_v41, %v4430_v27 }
0x1323   :  { %v4367_v49 = vmul.f32 0.03125, %v4357_v46  ;;  %v4433_v46 = vld [vmem:[%s13505_s2 + $0xe8] sm:$0xff] }
0x1324   :  { %v4372_v50 = vsub.f32 %v4352_v33, %v4368_v44  ;;  %v4432_v44 = vld [vmem:[%s13505_s2 + $0xe0] sm:$0xff] }
0x1325   :  { %v4371_v52 = vsub.f32 %v4351_v35, %v4367_v49  ;;  %v4366_v53 = vpop.xlane.xlu0 %4365  ;;  %v11588_v49 = vpack.c.bf16 %v4433_v46, %v4432_v44 }
0x1326   :  { %v4370_v54 = vmul.f32 0.03125, %v4366_v53  ;;  %v4363_v56 = vpop.xlane.xlu1 %4362  ;;  %v4376_v57 = vmul.f32 %v4372_v50, %v4372_v50 }
0x1327   :  { %v4369_v58 = vmul.f32 0.03125, %v4363_v56  ;;  %v4375_v51 = vmul.f32 %v4371_v52, %v4371_v52 }
0x1328   :  { %v4374_v59 = vsub.f32 %v4354_v43, %v4370_v54  ;;  %v4382_v47 = vsel %vm162_vm4, %v4376_v57, 0.0  ;;  %v4429_v43 = vld [vmem:[%s13505_s2 + $0xc8] sm:$0xff]  ;;  %v9933_v54 = vld [vmem:[%s13507_s4 + $0x40] ss:$0 sm:$0xff] }
0x1329   :  { %v4373_v60 = vsub.f32 %v4353_v25, %v4369_v58  ;;  %4383 = vadd.xlane.f32.xlu0 %v4382_v47  ;;  %v4379_v61 = vsel %vm162_vm4, %v4375_v51, 0.0  ;;  %v11580_v25 = vpack.c.bf16 %v4429_v43, %v4428_v42  ;;  %v9938_v42 = vld [vmem:[%s13505_s2 + $0x191] ss:$0 sm:$0xff] }
0x132a   :  { %4380 = vadd.xlane.f32.xlu1 %v4379_v61  ;;  %v4378_v48 = vmul.f32 %v4374_v59, %v4374_v59 }
0x132b   :  { %v4377_v62 = vmul.f32 %v4373_v60, %v4373_v60  ;;  %11581 = vmatprep.subr.bf16.mxu0 %v11580_v25 }
0x132c   :  { %v4388_v63 = vsel %vm162_vm4, %v4378_v48, 0.0  ;;  %11583 = vmatpush3.bf16.msra.mxu0 %v11580_v25 }
0x132d   :  { %4389 = vadd.xlane.f32.xlu0 %v4388_v63  ;;  %v4385_v0 = vsel %vm162_vm4, %v4377_v62, 0.0  ;;  %11585 = vmatprep.subr.bf16.mxu0 %v11584_v39 }
0x132e   :  { %4386 = vadd.xlane.f32.xlu1 %v4385_v0 }
0x1330   :  { %11587 = vmatpush3.bf16.msra.mxu0 %v11584_v39 }
0x1331   :  { %11589 = vmatprep.subr.bf16.mxu0 %v11588_v49 }
0x1334   :  { %11591 = vmatpush3.bf16.msra.mxu0 %v11588_v49 }
0x13b6   :  { %v4384_v6 = vpop.xlane.xlu0 %4383 }
0x13b7   :  { %v4392_v7 = vmul.f32 0.03125, %v4384_v6  ;;  %v4381_v8 = vpop.xlane.xlu1 %4380 }
0x13b8   :  { %v4391_v10 = vmul.f32 0.03125, %v4381_v8 }
0x13b9   :  { %v4396_v12 = vadd.f32 1e-12, %v4392_v7 }
0x13ba   :  { %v4395_v13 = vadd.f32 1e-12, %v4391_v10  ;;  %v4390_v14 = vpop.xlane.xlu0 %4389 }
0x13bb   :  { %11864 = vrsqrt.f32 %v4396_v12  ;;  %v4394_v15 = vmul.f32 0.03125, %v4390_v14  ;;  %v4387_v16 = vpop.xlane.xlu1 %4386 }
0x13bc   :  { %11866 = vrsqrt.f32 %v4395_v13  ;;  %v4393_v11 = vmul.f32 0.03125, %v4387_v16 }
0x13bd   :  { %v4398_v17 = vadd.f32 1e-12, %v4394_v15 }
0x13be   :  { %v4397_v18 = vadd.f32 1e-12, %v4393_v11 }
0x13bf   :  { %11868 = vrsqrt.f32 %v4398_v17 }
0x13c0   :  { %11870 = vrsqrt.f32 %v4397_v18 }
0x13c5   :  { %v11865_v19 = vpop.eup %11864 }
0x13c6   :  { %v11867_v21 = vpop.eup %11866  ;;  %v4404_v9 = vmul.f32 %v11865_v19, %v4372_v50  ;;  %v4434_v50 = vld [vmem:[%s13505_s2 + $0xf0] sm:$0xff] }
0x13c7   :  { %v4403_v22 = vmul.f32 %v11867_v21, %v4371_v52  ;;  %v4435_v52 = vld [vmem:[%s13505_s2 + $0xf8] sm:$0xff] }
0x13c8   :  { %v4412_v24 = vmul.f32 %v9931_v20, %v4404_v9  ;;  %v11592_v53 = vpack.c.bf16 %v4435_v52, %v4434_v50 }
0x13c9   :  { %v11869_v26 = vpop.eup %11868  ;;  %v4411_v28 = vmul.f32 %v9931_v20, %v4403_v22 }
0x13ca   :  { %v11871_v31 = vpop.eup %11870  ;;  %v4406_v32 = vmul.f32 %v11869_v26, %v4374_v59  ;;  %v12678_v35 = vadd.f32 %v9932_v23, %v4412_v24  ;;  %11593 = vmatprep.subr.bf16.mxu0 %v11592_v53 }
0x13cb   :  { %v12676_v33 = vadd.f32 %v9932_v23, %v4411_v28  ;;  %v4405_v34 = vmul.f32 %v11871_v31, %v4373_v60  ;;  %11595 = vmatpush3.bf16.msra.mxu0 %v11592_v53 }
0x13cc   :  { %v4414_v36 = vmul.f32 %v9931_v20, %v4406_v32 }
0x13cd   :  { %10954 = vmatprep.mubr.msk.f32.mxu1 %vm162_vm4, %v12676_v33  ;;  %v4413_v37 = vmul.f32 %v9931_v20, %v4405_v34 }
0x13ce   :  { %10955 = vmatmul.mubr.msk.f32.vlgmr.msra.gmra.mrb[66].mxu1 %vm162_vm4, %v12678_v35  ;;  %v12686_v40 = vadd.f32 %v9932_v23, %v4414_v36 }
0x13cf   :  { %v12684_v38 = vadd.f32 %v9932_v23, %v4413_v37 }
0x13d1   :  { %10957 = vmatprep.mubr.msk.f32.mxu1 %vm162_vm4, %v12684_v38 }
0x13d2   :  { %10958 = vmatmul.mubr.msk.f32.gmra.mrb[68].mxu1 %vm162_vm4, %v12686_v40 }
0x14a1   :  { %v10956_v56 = vpop.f32.mrb[66].mxu1 }
0x14a2   :  { %v4524_v57 = vadd.f32 %v10956_v56, %v9933_v54  ;;  %v4518_v58 = vpop.f32.mrb[67].mxu1 }
0x14a3   :  { %v4519_v51 = vadd.f32 %v9933_v54, %v4518_v58 }
0x14a4   :  { %v4542_v59 = vmul.f32 0.044715, %v4524_v57  ;;  %v4538_v9 = vmul.f32 0.5, %v4524_v57 }
0x14a5   :  { %v4541_v47 = vmul.f32 0.044715, %v4519_v51  ;;  %v10959_v60 = vpop.f32.mrb[68].mxu1  ;;  %v4537_v20 = vmul.f32 0.5, %v4519_v51 }
0x14a6   :  { %v4546_v61 = vmul.f32 %v4542_v59, %v4524_v57  ;;  %v4534_v48 = vadd.f32 %v10959_v60, %v9933_v54  ;;  %v4528_v62 = vpop.f32.mrb[69].mxu1 }
0x14a7   :  { %v4545_v63 = vmul.f32 %v4541_v47, %v4519_v51  ;;  %v4529_v0 = vadd.f32 %v9933_v54, %v4528_v62 }
0x14a8   :  { %v4550_v1 = vmul.f32 %v4546_v61, %v4524_v57  ;;  %v4544_v45 = vmul.f32 0.044715, %v4534_v48  ;;  %v4540_v34 = vmul.f32 0.5, %v4534_v48 }
0x14a9   :  { %v4549_v2 = vmul.f32 %v4545_v63, %v4519_v51  ;;  %v4543_v3 = vmul.f32 0.044715, %v4529_v0  ;;  %v4539_v31 = vmul.f32 0.5, %v4529_v0 }
0x14aa   :  { %v4554_v4 = vadd.f32 %v4550_v1, %v4524_v57  ;;  %v4548_v5 = vmul.f32 %v4544_v45, %v4534_v48 }
0x14ab   :  { %v4553_v6 = vadd.f32 %v4549_v2, %v4519_v51  ;;  %v4547_v7 = vmul.f32 %v4543_v3, %v4529_v0 }
0x14ac   :  { %v4558_v8 = vmul.f32 0.7978846, %v4554_v4  ;;  %v4552_v10 = vmul.f32 %v4548_v5, %v4534_v48 }
0x14ad   :  { %v4551_v12 = vmul.f32 %v4547_v7, %v4529_v0  ;;  %v4557_v13 = vmul.f32 0.7978846, %v4553_v6 }
0x14ae   :  { %11872 = vtanh.f32 %v4558_v8  ;;  %v4556_v14 = vadd.f32 %v4552_v10, %v4534_v48  ;;  %v4753_v8 = vld [vmem:[%s13506_s3 + $0x180] sm:$0xff]  ;;  %v4754_v10 = vld [vmem:[%s13506_s3 + $0x188] sm:$0xff] }
0x14af   :  { %v4555_v15 = vadd.f32 %v4551_v12, %v4529_v0  ;;  %11874 = vtanh.f32 %v4557_v13  ;;  %v4761_v12 = vld [vmem:[%s13506_s3 + $0x280] sm:$0xff]  ;;  %v11596_v13 = vpack.c.bf16 %v4754_v10, %v4753_v8  ;;  %v9945_v10 = vld [vmem:[%s13506_s3 + $0x30c] ss:$0 sm:$0xff] }
0x14b0   :  { %v4560_v16 = vmul.f32 0.7978846, %v4556_v14  ;;  %v4762_v14 = vld [vmem:[%s13506_s3 + $0x288] sm:$0xff] }
0x14b1   :  { %v4559_v11 = vmul.f32 0.7978846, %v4555_v15  ;;  %v11612_v15 = vpack.c.bf16 %v4762_v14, %v4761_v12  ;;  %11597 = vmatprep.subr.bf16.mxu1 %v11596_v13 }
0x14b2   :  { %11876 = vtanh.f32 %v4560_v16  ;;  %11599 = vmatpush3.bf16.msra.mxu1 %v11596_v13  ;;  %v4755_v16 = vld [vmem:[%s13506_s3 + $0x190] sm:$0xff] }
0x14b3   :  { %11878 = vtanh.f32 %v4559_v11  ;;  %11613 = vmatprep.subr.bf16.mxu0 %v11612_v15  ;;  %v4756_v11 = vld [vmem:[%s13506_s3 + $0x198] sm:$0xff] }
0x14b8   :  { %v11873_v17 = vpop.eup %11872 }
0x14b9   :  { %v11875_v18 = vpop.eup %11874  ;;  %v4566_v19 = vadd.f32 1.0, %v11873_v17  ;;  %v4763_v17 = vld [vmem:[%s13506_s3 + $0x290] sm:$0xff] }
0x14ba   :  { %v4565_v21 = vadd.f32 1.0, %v11875_v18  ;;  %v11600_v18 = vpack.c.bf16 %v4756_v11, %v4755_v16 }
0x14bb   :  { %v4570_v26 = vmul.f32 %v4566_v19, %v4538_v9  ;;  %v4764_v19 = vld [vmem:[%s13506_s3 + $0x298] sm:$0xff]  ;;  %v4758_v9 = vld [vmem:[%s13506_s3 + $0x208] sm:$0xff] }
0x14bc   :  { %v11877_v22 = vpop.eup %11876  ;;  %v4569_v23 = vmul.f32 %v4565_v21, %v4537_v20  ;;  %v11616_v20 = vpack.c.bf16 %v4764_v19, %v4763_v17  ;;  %11601 = vmatprep.subr.bf16.mxu1 %v11600_v18  ;;  %v4757_v21 = vld [vmem:[%s13506_s3 + $0x200] sm:$0xff] }
0x14bd   :  { %v11879_v24 = vpop.eup %11878  ;;  %v4568_v28 = vadd.f32 1.0, %v11877_v22  ;;  %11603 = vmatpush3.bf16.msra.mxu1 %v11600_v18  ;;  %v11604_v22 = vpack.c.bf16 %v4758_v9, %v4757_v21 }
0x14be   :  { %10976 = vmatprep.mubr.msk.f32.mxu0 %vm4577_vm7, %v4569_v23  ;;  %v4567_v32 = vadd.f32 1.0, %v11879_v24 }
0x14bf   :  { %10977 = vmatmul.mubr.msk.f32.vlgmr.msra.gmra.mrb[54].mxu0 %vm4577_vm7, %v4570_v26  ;;  %v4572_v37 = vmul.f32 %v4568_v28, %v4540_v34  ;;  %11605 = vmatprep.subr.bf16.mxu1 %v11604_v22 }
0x14c0   :  { %v4571_v36 = vmul.f32 %v4567_v32, %v4539_v31  ;;  %11615 = vmatpush3.bf16.msra.mxu0 %v11612_v15 }
0x14c1   :  { %11617 = vmatprep.subr.bf16.mxu0 %v11616_v20 }
0x14c2   :  { %10979 = vmatprep.mubr.msk.f32.mxu0 %vm4577_vm7, %v4571_v36 }
0x14c3   :  { %10980 = vmatmul.mubr.msk.f32.gmra.mrb[56].mxu0 %vm4577_vm7, %v4572_v37 }
0x14c4   :  { %11619 = vmatpush3.bf16.msra.mxu0 %v11616_v20 }
0x14c5   :  { %11034 = vmatprep.subr.mxu0 %v12008_v55 }
0x1592   :  { %v10978_v43 = vpop.f32.mrb[54].mxu0 }
0x1593   :  { %v4662_v25 = vadd.f32 %v10978_v43, %v9938_v42  ;;  %v4656_v27 = vpop.f32.mrb[55].mxu0 }
0x1594   :  { %v4657_v41 = vadd.f32 %v9938_v42, %v4656_v27 }
0x1595   :  { %v4676_v39 = vadd.f32 %v4662_v25, %v12678_v35 }
0x1596   :  { %v10981_v44 = vpop.f32.mrb[56].mxu0  ;;  %v4675_v46 = vadd.f32 %v4657_v41, %v12676_v33  ;;  %v9943_v41 = vld [vmem:[%s13505_s2 + $0x192] ss:$0 sm:$0xff] }
0x1597   :  { %v4672_v49 = vadd.f32 %v10981_v44, %v9938_v42  ;;  %v4666_v50 = vpop.f32.mrb[57].mxu0  ;;  %v4682_v52 = vsel %vm162_vm4, %v4676_v39, 0.0 }
0x1598   :  { %v4667_v53 = vadd.f32 %v9938_v42, %v4666_v50  ;;  %4683 = vadd.xlane.f32.xlu0 %v4682_v52  ;;  %v4679_v54 = vsel %vm162_vm4, %v4675_v46, 0.0 }
0x1599   :  { %4680 = vadd.xlane.f32.xlu1 %v4679_v54  ;;  %v4678_v56 = vadd.f32 %v4672_v49, %v12686_v40  ;;  %v9944_v49 = vld [vmem:[%s13505_s2 + $0x193] ss:$0 sm:$0xff] }
0x159a   :  { %v4677_v57 = vadd.f32 %v4667_v53, %v12684_v38  ;;  %v4759_v54 = vld [vmem:[%s13506_s3 + $0x210] sm:$0xff] }
0x159b   :  { %v4688_v58 = vsel %vm162_vm4, %v4678_v56, 0.0 }
0x159c   :  { %4689 = vadd.xlane.f32.xlu0 %v4688_v58  ;;  %v4685_v35 = vsel %vm162_vm4, %v4677_v57, 0.0 }
0x159d   :  { %4686 = vadd.xlane.f32.xlu1 %v4685_v35 }
0x1625   :  { %v4684_v33 = vpop.xlane.xlu0 %4683 }
0x1626   :  { %v4692_v51 = vmul.f32 0.03125, %v4684_v33  ;;  %v4681_v59 = vpop.xlane.xlu1 %4680 }
0x1627   :  { %v4691_v47 = vmul.f32 0.03125, %v4681_v59 }
0x1628   :  { %v12734_v60 = vsub.f32 %v4676_v39, %v4692_v51 }
0x1629   :  { %v12736_v61 = vsub.f32 %v4675_v46, %v4691_v47  ;;  %v4690_v48 = vpop.xlane.xlu0 %4689 }
0x162a   :  { %v4694_v62 = vmul.f32 0.03125, %v4690_v48  ;;  %v4687_v63 = vpop.xlane.xlu1 %4686  ;;  %v4700_v38 = vmul.f32 %v12734_v60, %v12734_v60 }
0x162b   :  { %v4693_v40 = vmul.f32 0.03125, %v4687_v63  ;;  %v4699_v0 = vmul.f32 %v12736_v61, %v12736_v61 }
0x162c   :  { %v12742_v1 = vsub.f32 %v4678_v56, %v4694_v62  ;;  %v4706_v45 = vsel %vm162_vm4, %v4700_v38, 0.0  ;;  %v4760_v56 = vld [vmem:[%s13506_s3 + $0x218] sm:$0xff] }
0x162d   :  { %v12745_v2 = vsub.f32 %v4677_v57, %v4693_v40  ;;  %4707 = vadd.xlane.f32.xlu0 %v4706_v45  ;;  %v4703_v3 = vsel %vm162_vm4, %v4699_v0, 0.0  ;;  %v11608_v47 = vpack.c.bf16 %v4760_v56, %v4759_v54  ;;  %v9955_v0 = vld [vmem:[%s13506_s3 + $0x314] ss:$0 sm:$0xff] }
0x162e   :  { %4704 = vadd.xlane.f32.xlu1 %v4703_v3  ;;  %v4702_v4 = vmul.f32 %v12742_v1, %v12742_v1 }
0x162f   :  { %v4701_v5 = vmul.f32 %v12745_v2, %v12745_v2 }
0x1630   :  { %v4712_v6 = vsel %vm162_vm4, %v4702_v4, 0.0 }
0x1631   :  { %4713 = vadd.xlane.f32.xlu0 %v4712_v6  ;;  %v4709_v7 = vsel %vm162_vm4, %v4701_v5, 0.0  ;;  %v9950_v6 = vld [vmem:[%s13506_s3 + $0x310] ss:$0 sm:$0xff] }
0x1632   :  { %4710 = vadd.xlane.f32.xlu1 %v4709_v7 }
0x16ba   :  { %v4708_v23 = vpop.xlane.xlu0 %4707 }
0x16bb   :  { %v4716_v24 = vmul.f32 0.03125, %v4708_v23  ;;  %v4705_v26 = vpop.xlane.xlu1 %4704 }
0x16bc   :  { %v4715_v28 = vmul.f32 0.03125, %v4705_v26 }
0x16bd   :  { %v4720_v31 = vadd.f32 1e-12, %v4716_v24 }
0x16be   :  { %v4719_v32 = vadd.f32 1e-12, %v4715_v28  ;;  %v4714_v34 = vpop.xlane.xlu0 %4713 }
0x16bf   :  { %11880 = vrsqrt.f32 %v4720_v31  ;;  %v4718_v36 = vmul.f32 0.03125, %v4714_v34  ;;  %v4711_v37 = vpop.xlane.xlu1 %4710 }
0x16c0   :  { %11882 = vrsqrt.f32 %v4719_v32  ;;  %v4717_v42 = vmul.f32 0.03125, %v4711_v37 }
0x16c1   :  { %v4722_v43 = vadd.f32 1e-12, %v4718_v36 }
0x16c2   :  { %v4721_v25 = vadd.f32 1e-12, %v4717_v42 }
0x16c3   :  { %11884 = vrsqrt.f32 %v4722_v43 }
0x16c4   :  { %11886 = vrsqrt.f32 %v4721_v25 }
0x16c9   :  { %v11881_v27 = vpop.eup %11880 }
0x16ca   :  { %v11883_v39 = vpop.eup %11882  ;;  %v4728_v44 = vmul.f32 %v11881_v27, %v12734_v60 }
0x16cb   :  { %v4727_v46 = vmul.f32 %v11883_v39, %v12736_v61 }
0x16cc   :  { %v4736_v50 = vmul.f32 %v9943_v41, %v4728_v44 }
0x16cd   :  { %v11885_v52 = vpop.eup %11884  ;;  %v4735_v53 = vmul.f32 %v9943_v41, %v4727_v46 }
0x16ce   :  { %v11887_v57 = vpop.eup %11886  ;;  %v4730_v58 = vmul.f32 %v11885_v52, %v12742_v1  ;;  %v12803_v51 = vadd.f32 %v9944_v49, %v4736_v50 }
0x16cf   :  { %v12800_v35 = vadd.f32 %v9944_v49, %v4735_v53  ;;  %v4729_v33 = vmul.f32 %v11887_v57, %v12745_v2 }
0x16d0   :  { %v4738_v59 = vmul.f32 %v9943_v41, %v4730_v58 }
0x16d1   :  { %v4737_v60 = vmul.f32 %v9943_v41, %v4729_v33  ;;  %10990 = vmatprep.mubr.msk.f32.mxu1 %vm162_vm4, %v12800_v35  ;;  %11018 = vmatprep.mubr.msk.f32.mxu0 %vm162_vm4, %v12800_v35 }
0x16d2   :  { %10991 = vmatmul.mubr.msk.f32.vlgmr.msra.gmra.mrb[70].mxu1 %vm162_vm4, %v12803_v51  ;;  %11019 = vmatmul.mubr.msk.f32.vlgmr.msra.gmra.mrb[58].mxu0 %vm162_vm4, %v12803_v51  ;;  %v12815_v48 = vadd.f32 %v9944_v49, %v4738_v59 }
0x16d3   :  { %v12813_v61 = vadd.f32 %v9944_v49, %v4737_v60  ;;  %11607 = vmatpush3.bf16.msra.mxu1 %v11604_v22 }
0x16d4   :  { %11609 = vmatprep.subr.bf16.mxu1 %v11608_v47 }
0x16d5   :  { %10993 = vmatprep.mubr.msk.f32.mxu1 %vm162_vm4, %v12813_v61  ;;  %11021 = vmatprep.mubr.msk.f32.mxu0 %vm162_vm4, %v12813_v61 }
0x16d6   :  { %10994 = vmatmul.mubr.msk.f32.gmra.mrb[72].mxu1 %vm162_vm4, %v12815_v48  ;;  %11022 = vmatmul.mubr.msk.f32.gmra.mrb[60].mxu0 %vm162_vm4, %v12815_v48 }
0x16d7   :  { %11611 = vmatpush3.bf16.msra.mxu1 %v11608_v47  ;;  %11004 = vmatprep.mubr.msk.f32.mxu1 %vm162_vm4, %v12800_v35 }
0x16d8   :  { %11024 = vmatprep.subr.mxu1 %v12008_v55  ;;  %11036 = vmatprep.mubr.msk.f32.mxu0 %vm12009_vm5, %v12008_v55 }
0x16da   :  { %11005 = vmatmul.mubr.msk.f32.vlgmr.msra.gmra.mrb[74].mxu1 %vm162_vm4, %v12803_v51 }
0x16db   :  { %11007 = vmatprep.mubr.msk.f32.mxu1 %vm162_vm4, %v12813_v61 }
0x16de   :  { %11008 = vmatmul.mubr.msk.f32.gmra.mrb[76].mxu1 %vm162_vm4, %v12815_v48 }
0x16df   :  { %11026 = vmatprep.mubr.msk.f32.mxu1 %vm12009_vm5, %v12008_v55 }
0x17a5   :  { %v10992_v62 = vpop.f32.mrb[70].mxu1  ;;  %v11020_v63 = vpop.f32.mrb[58].mxu0 }
0x17a6   :  { %v4850_v38 = vpop.f32.mrb[71].mxu1  ;;  %v5028_v40 = vpop.f32.mrb[59].mxu0  ;;  %v4856_v17 = vadd.f32 %v10992_v62, %v9945_v10  ;;  %v5034_v9 = vadd.f32 %v11020_v63, %v9955_v0 }
0x17a7   :  { %v4851_v14 = vadd.f32 %v9945_v10, %v4850_v38  ;;  %v5029_v19 = vadd.f32 %v9955_v0, %v5028_v40 }
0x17a9   :  { %v10995_v1 = vpop.f32.mrb[72].mxu1  ;;  %v11023_v45 = vpop.f32.mrb[60].mxu0 }
0x17aa   :  { %v12841_v2 = vadd.f32 %v11023_v45, %v9955_v0  ;;  %v4860_v3 = vpop.f32.mrb[73].mxu1  ;;  %v5038_v4 = vpop.f32.mrb[61].mxu0  ;;  %v4866_v21 = vadd.f32 %v10995_v1, %v9945_v10 }
0x17ab   :  { %v12843_v5 = vadd.f32 %v9955_v0, %v5038_v4  ;;  %v4861_v18 = vadd.f32 %v9945_v10, %v4860_v3  ;;  %v5793_v4 = vld [vmem:[%s13506_s3 + $0x1a0] sm:$0xff] }
0x17ad   :  { %v11006_v7 = vpop.f32.mrb[74].mxu1 }
0x17ae   :  { %v4939_v8 = vpop.f32.mrb[75].mxu1  ;;  %v4945_v16 = vadd.f32 %v11006_v7, %v9950_v6 }
0x17af   :  { %v4940_v12 = vadd.f32 %v9950_v6, %v4939_v8 }
0x17b1   :  { %v11009_v13 = vpop.f32.mrb[76].mxu1  ;;  %11025 = vmatpush3.xpose.msk.msra.mxu1 %vm532_vm6, %v4940_v12 }
0x17b2   :  { %v4949_v15 = vpop.f32.mrb[77].mxu1  ;;  %11029 = vmatprep.subr.mxu1 %v12008_v55  ;;  %v4955_v20 = vadd.f32 %v11009_v13, %v9950_v6 }
0x17b3   :  { %v4950_v11 = vadd.f32 %v9950_v6, %v4949_v15  ;;  %v5794_v6 = vld [vmem:[%s13506_s3 + $0x1a8] sm:$0xff]  ;;  %v5796_v15 = vld [vmem:[%s13506_s3 + $0x1b8] sm:$0xff] }
0x17b4   :  { %11027 = vmatmul.mubr.msk.f32.vlgmr.msra.gmra.mrb[78].mxu1 %vm532_vm6, %v4851_v14  ;;  %v11620_v12 = vpack.c.bf16 %v5794_v6, %v5793_v4  ;;  %v5795_v14 = vld [vmem:[%s13506_s3 + $0x1b0] sm:$0xff] }
0x17b5   :  { %11030 = vmatpush3.xpose.msk.msra.mxu1 %vm532_vm6, %v4945_v16  ;;  %11035 = vmatpush3.xpose.msk.msra.mxu0 %vm532_vm6, %v4950_v11  ;;  %v11624_v11 = vpack.c.bf16 %v5796_v15, %v5795_v14 }
0x17b6   :  { %11031 = vmatprep.mubr.msk.f32.mxu1 %vm12009_vm5, %v12008_v55  ;;  %11039 = vmatprep.subr.mxu1 %v12008_v55 }
0x17b7   :  { %11044 = vmatprep.subr.mxu0 %v12008_v55 }
0x17b8   :  { %11032 = vmatmul.mubr.msk.f32.vlgmr.msra.gmra.mrb[80].mxu1 %vm532_vm6, %v4856_v17  ;;  %11037 = vmatmul.mubr.msk.f32.vlgmr.msra.gmra.mrb[62].mxu0 %vm532_vm6, %v4861_v18  ;;  %v5801_v17 = vld [vmem:[%s13506_s3 + $0x2a0] sm:$0xff]  ;;  %v5802_v18 = vld [vmem:[%s13506_s3 + $0x2a8] sm:$0xff] }
0x17b9   :  { %11040 = vmatpush3.xpose.msk.msra.mxu1 %vm532_vm6, %v4955_v20  ;;  %11045 = vmatpush3.msra.mxu0 %v5029_v19  ;;  %v5803_v19 = vld [vmem:[%s13506_s3 + $0x2b0] sm:$0xff]  ;;  %v5804_v20 = vld [vmem:[%s13506_s3 + $0x2b8] sm:$0xff] }
0x17ba   :  { %11041 = vmatprep.mubr.msk.f32.mxu1 %vm12009_vm5, %v12008_v55  ;;  %11049 = vmatprep.subr.mxu1 %v12008_v55 }
0x17bb   :  { %11046 = vmatprep.mubr.msk.f32.mxu0 %vm12009_vm5, %v12008_v55  ;;  %11054 = vmatprep.subr.mxu0 %v12008_v55 }
0x17bc   :  { %11042 = vmatmul.mubr.msk.f32.vlgmr.msra.gmra.mrb[82].mxu1 %vm532_vm6, %v4866_v21  ;;  %v11640_v21 = vpack.c.bf16 %v5804_v20, %v5803_v19 }
0x17bd   :  { %11050 = vmatpush3.msra.mxu1 %v5034_v9  ;;  %11051 = vmatprep.mubr.msk.f32.mxu1 %vm12009_vm5, %v12008_v55  ;;  %v5687_v9 = vld [vmem:[%s13505_s2 + $0xa0] sm:$0xff] }
0x17be   :  { %11059 = vmatprep.subr.mxu1 %v12008_v55 }
0x1887   :  { %v5119_v22 = vpop.f32.mrb[78].mxu1 }
0x1888   :  { %v11028_v23 = vpop.f32.mrb[79].mxu1  ;;  %v5351_v24 = vsel %vm532_vm6, %v5119_v22, -inf }
0x1889   :  { %5352 = vmax.xlane.f32.xlu1 %v5351_v24  ;;  %v5798_v23 = vld [vmem:[%s13506_s3 + $0x228] sm:$0xff] }
0x188b   :  { %v5195_v26 = vpop.f32.mrb[80].mxu1  ;;  %v5271_v28 = vpop.f32.mrb[62].mxu0 }
0x188c   :  { %v11033_v31 = vpop.f32.mrb[81].mxu1  ;;  %v11038_v32 = vpop.f32.mrb[63].mxu0  ;;  %v5354_v34 = vsel %vm532_vm6, %v5195_v26, -inf  ;;  %v5357_v36 = vsel %vm532_vm6, %v5271_v28, -inf }
0x188d   :  { %5355 = vmax.xlane.f32.xlu0 %v5354_v34  ;;  %5358 = vmax.xlane.f32.xlu1 %v5357_v36  ;;  %v5800_v31 = vld [vmem:[%s13506_s3 + $0x238] sm:$0xff] }
0x188f   :  { %v5347_v37 = vpop.f32.mrb[82].mxu1 }
0x1890   :  { %v11043_v42 = vpop.f32.mrb[83].mxu1  ;;  %v5360_v43 = vsel %vm532_vm6, %v5347_v37, -inf }
0x1891   :  { %5361 = vmax.xlane.f32.xlu0 %v5360_v43 }
0x1916   :  { %v5353_v25 = vpop.xlane.xlu1 %5352 }
0x1917   :  { %v5363_v27 = vsub.f32 %v5119_v22, %v5353_v25  ;;  %v5797_v22 = vld [vmem:[%s13506_s3 + $0x220] sm:$0xff] }
0x1918   :  { %v11628_v24 = vpack.c.bf16 %v5798_v23, %v5797_v22 }
0x1919   :  { %v5367_v41 = vmul.f32 1.442695, %v5363_v27 }
0x191a   :  { %v5356_v39 = vpop.xlane.xlu0 %5355  ;;  %v5359_v44 = vpop.xlane.xlu1 %5358 }
0x191b   :  { %11888 = vpow2.f32 %v5367_v41  ;;  %v5364_v46 = vsub.f32 %v5195_v26, %v5356_v39  ;;  %v5365_v49 = vsub.f32 %v5271_v28, %v5359_v44  ;;  %v5799_v28 = vld [vmem:[%s13506_s3 + $0x230] sm:$0xff] }
0x191c   :  { %v11632_v34 = vpack.c.bf16 %v5800_v31, %v5799_v28 }
0x191d   :  { %v5369_v50 = vmul.f32 1.442695, %v5364_v46  ;;  %v5371_v52 = vmul.f32 1.442695, %v5365_v49 }
0x191e   :  { %v5362_v53 = vpop.xlane.xlu0 %5361 }
0x191f   :  { %11890 = vpow2.f32 %v5369_v50  ;;  %v5366_v54 = vsub.f32 %v5347_v37, %v5362_v53 }
0x1920   :  { %11892 = vpow2.f32 %v5371_v52  ;;  %v9987_v52 = vld [vmem:[%s13506_s3 + $0x315] ss:$0 sm:$0xff] }
0x1921   :  { %v5373_v56 = vmul.f32 1.442695, %v5366_v54 }
0x1923   :  { %11894 = vpow2.f32 %v5373_v56 }
0x1925   :  { %v11889_v57 = vpop.eup %11888 }
0x1926   :  { %v5375_v58 = vsel %vm532_vm6, %v11889_v57, 0.0 }
0x1927   :  { %5376 = vadd.xlane.f32.xlu1 %v5375_v58  ;;  %v9982_v58 = vld [vmem:[%s13506_s3 + $0x311] ss:$0 sm:$0xff] }
0x1929   :  { %v11891_v33 = vpop.eup %11890 }
0x192a   :  { %v11893_v59 = vpop.eup %11892  ;;  %v5378_v47 = vsel %vm532_vm6, %v11891_v33, 0.0 }
0x192b   :  { %5379 = vadd.xlane.f32.xlu0 %v5378_v47  ;;  %v5381_v60 = vsel %vm532_vm6, %v11893_v59, 0.0  ;;  %v9977_v47 = vld [vmem:[%s13506_s3 + $0x30d] ss:$0 sm:$0xff] }
0x192c   :  { %5382 = vadd.xlane.f32.xlu1 %v5381_v60 }
0x192d   :  { %v11895_v62 = vpop.eup %11894 }
0x192e   :  { %v5384_v63 = vsel %vm532_vm6, %v11895_v62, 0.0 }
0x192f   :  { %5385 = vadd.xlane.f32.xlu0 %v5384_v63 }
0x19b4   :  { %v5377_v38 = vpop.xlane.xlu1 %5376 }
0x19b5   :  { %11896 = vrcp.f32 %v5377_v38 }
0x19b8   :  { %v5380_v40 = vpop.xlane.xlu0 %5379 }
0x19b9   :  { %11898 = vrcp.f32 %v5380_v40  ;;  %v5383_v0 = vpop.xlane.xlu1 %5382 }
0x19ba   :  { %11900 = vrcp.f32 %v5383_v0 }
0x19bc   :  { %v5386_v1 = vpop.xlane.xlu0 %5385 }
0x19bd   :  { %11902 = vrcp.f32 %v5386_v1 }
0x19bf   :  { %v11897_v45 = vpop.eup %11896 }
0x19c0   :  { %v5391_v3 = vmul.f32 %v11897_v45, %v11889_v57 }
0x19c2   :  { %11047 = vmatmul.mubr.msk.f32.vlgmr.msra.gmra.mrb[64].mxu0 %vm532_vm6, %v5391_v3 }
0x19c3   :  { %v11899_v7 = vpop.eup %11898  ;;  %11055 = vmatpush3.msra.mxu0 %v12843_v5  ;;  %11056 = vmatprep.mubr.msk.f32.mxu0 %vm12009_vm5, %v12008_v55 }
0x19c4   :  { %v11901_v8 = vpop.eup %11900  ;;  %v5392_v10 = vmul.f32 %v11899_v7, %v11891_v33  ;;  %11064 = vmatprep.subr.mxu0 %v5687_v9 }
0x19c5   :  { %v5393_v13 = vmul.f32 %v11901_v8, %v11893_v59 }
0x19c6   :  { %11052 = vmatmul.mubr.msk.f32.vlgmr.msra.gmra.mrb[84].mxu1 %vm532_vm6, %v5392_v10 }
0x19c7   :  { %v11903_v16 = vpop.eup %11902  ;;  %11057 = vmatmul.mubr.msk.f32.vlgmr.msra.gmra.mrb[66].mxu0 %vm532_vm6, %v5393_v13  ;;  %11060 = vmatpush3.msra.mxu1 %v12841_v2  ;;  %v11636_v2 = vpack.c.bf16 %v5802_v18, %v5801_v17 }
0x19c8   :  { %v5394_v5 = vmul.f32 %v11903_v16, %v11895_v62  ;;  %11061 = vmatprep.mubr.msk.f32.mxu1 %vm12009_vm5, %v12008_v55  ;;  %11621 = vmatprep.subr.bf16.mxu1 %v11620_v12 }
0x19c9   :  { %11065 = vmatpush3.msra.mxu0 %v5687_v9 }
0x19ca   :  { %11062 = vmatmul.mubr.msk.f32.vlgmr.msra.gmra.mrb[86].mxu1 %vm532_vm6, %v5394_v5  ;;  %11629 = vmatprep.subr.bf16.mxu0 %v11628_v24 }
0x19cb   :  { %11623 = vmatpush3.bf16.msra.mxu1 %v11620_v12  ;;  %11080 = vmatprep.mubr.msk.f32.mxu1 %vm162_vm4, %v12800_v35 }
0x19cc   :  { %11625 = vmatprep.subr.bf16.mxu1 %v11624_v11 }
0x19cf   :  { %11627 = vmatpush3.bf16.msra.mxu1 %v11624_v11 }
0x19d0   :  { %11637 = vmatprep.subr.bf16.mxu1 %v11636_v2 }
0x19d2   :  { %11081 = vmatmul.mubr.msk.f32.vlgmr.msra.gmra.mrb[88].mxu1 %vm162_vm4, %v12803_v51 }
0x19d3   :  { %11083 = vmatprep.mubr.msk.f32.mxu1 %vm162_vm4, %v12813_v61  ;;  %11639 = vmatpush3.bf16.msra.mxu1 %v11636_v2 }
0x19d4   :  { %11641 = vmatprep.subr.bf16.mxu1 %v11640_v21 }
0x19d6   :  { %11084 = vmatmul.mubr.msk.f32.gmra.mrb[90].mxu1 %vm162_vm4, %v12815_v48 }
0x19d7   :  { %11643 = vmatpush3.bf16.msra.mxu1 %v11640_v21  ;;  %11108 = vmatprep.mubr.msk.f32.mxu1 %vm162_vm4, %v12800_v35 }
0x19d8   :  { %11124 = vmatprep.subr.mxu1 %v12008_v55 }
0x19da   :  { %11109 = vmatmul.mubr.msk.f32.vlgmr.msra.gmra.mrb[92].mxu1 %vm162_vm4, %v12803_v51 }
0x19db   :  { %11111 = vmatprep.mubr.msk.f32.mxu1 %vm162_vm4, %v12813_v61 }
0x19de   :  { %11112 = vmatmul.mubr.msk.f32.gmra.mrb[94].mxu1 %vm162_vm4, %v12815_v48 }
0x19df   :  { %11126 = vmatprep.mubr.msk.f32.mxu1 %vm12009_vm5, %v12008_v55 }
0x1a95   :  { %v5464_v26 = vpop.f32.mrb[64].mxu0 }
0x1a96   :  { %v11048_v32 = vpop.f32.mrb[65].mxu0  ;;  %11066 = vmatprep.mubr.msk.f32.mxu0 %vm532_vm6, %v5464_v26 }
0x1a99   :  { %v5537_v36 = vpop.f32.mrb[84].mxu1 }
0x1a9a   :  { %v5610_v37 = vpop.f32.mrb[66].mxu0  ;;  %v11053_v42 = vpop.f32.mrb[85].mxu1  ;;  %11067 = vmatmul.mubr.msk.f32.vlgmr.msra.gmra.mrb[68].mxu0 %vm532_vm6, %v5537_v36 }
0x1a9b   :  { %v11058_v43 = vpop.f32.mrb[67].mxu0  ;;  %11069 = vmatprep.mubr.msk.f32.mxu0 %vm532_vm6, %v5610_v37  ;;  %11631 = vmatpush3.bf16.msra.mxu0 %v11628_v24 }
0x1a9c   :  { %11633 = vmatprep.subr.bf16.mxu0 %v11632_v34 }
0x1a9d   :  { %v5683_v25 = vpop.f32.mrb[86].mxu1 }
0x1a9e   :  { %v11063_v27 = vpop.f32.mrb[87].mxu1  ;;  %11070 = vmatmul.mubr.msk.f32.gmra.mrb[70].mxu0 %vm532_vm6, %v5683_v25 }
0x1a9f   :  { %11635 = vmatpush3.bf16.msra.mxu0 %v11632_v34  ;;  %11094 = vmatprep.mubr.msk.f32.mxu0 %vm162_vm4, %v12800_v35 }
0x1aa0   :  { %11114 = vmatprep.subr.mxu0 %v12008_v55 }
0x1aa2   :  { %11095 = vmatmul.mubr.msk.f32.vlgmr.msra.gmra.mrb[72].mxu0 %vm162_vm4, %v12803_v51 }
0x1aa3   :  { %11097 = vmatprep.mubr.msk.f32.mxu0 %vm162_vm4, %v12813_v61 }
0x1aa5   :  { %v11082_v41 = vpop.f32.mrb[88].mxu1 }
0x1aa6   :  { %v5878_v39 = vpop.f32.mrb[89].mxu1  ;;  %11098 = vmatmul.mubr.msk.f32.gmra.mrb[74].mxu0 %vm162_vm4, %v12815_v48  ;;  %v5884_v1 = vadd.f32 %v11082_v41, %v9977_v47 }
0x1aa7   :  { %11116 = vmatprep.mubr.msk.f32.mxu0 %vm12009_vm5, %v12008_v55  ;;  %v5879_v63 = vadd.f32 %v9977_v47, %v5878_v39 }
0x1aa9   :  { %v11085_v44 = vpop.f32.mrb[90].mxu1 }
0x1aaa   :  { %v5888_v46 = vpop.f32.mrb[91].mxu1  ;;  %v5894_v6 = vadd.f32 %v11085_v44, %v9977_v47 }
0x1aab   :  { %v5889_v45 = vadd.f32 %v9977_v47, %v5888_v46  ;;  %v6820_v47 = vld [vmem:[%s13506_s3 + $0x1d8] sm:$0xff] }
0x1aad   :  { %v11110_v49 = vpop.f32.mrb[92].mxu1 }
0x1aae   :  { %v6056_v50 = vpop.f32.mrb[93].mxu1  ;;  %v6062_v7 = vadd.f32 %v11110_v49, %v9987_v52 }
0x1aaf   :  { %v6057_v3 = vadd.f32 %v9987_v52, %v6056_v50 }
0x1ab1   :  { %v11113_v53 = vpop.f32.mrb[94].mxu1 }
0x1ab2   :  { %v12967_v54 = vadd.f32 %v11113_v53, %v9987_v52  ;;  %v6066_v56 = vpop.f32.mrb[95].mxu1  ;;  %v6818_v53 = vld [vmem:[%s13506_s3 + $0x1c8] sm:$0xff] }
0x1ab3   :  { %v12969_v57 = vadd.f32 %v9987_v52, %v6066_v56  ;;  %v6817_v52 = vld [vmem:[%s13506_s3 + $0x1c0] sm:$0xff] }
0x1b75   :  { %v11096_v33 = vpop.f32.mrb[72].mxu0 }
0x1b76   :  { %v5967_v59 = vpop.f32.mrb[73].mxu0  ;;  %v5973_v40 = vadd.f32 %v11096_v33, %v9982_v58  ;;  %v11644_v33 = vpack.c.bf16 %v6818_v53, %v6817_v52 }
0x1b77   :  { %v5968_v60 = vadd.f32 %v9982_v58, %v5967_v59  ;;  %v6819_v59 = vld [vmem:[%s13506_s3 + $0x1d0] sm:$0xff] }
0x1b79   :  { %v11099_v62 = vpop.f32.mrb[74].mxu0  ;;  %11115 = vmatpush3.xpose.msk.msra.mxu0 %vm532_vm6, %v5968_v60 }
0x1b7a   :  { %v5977_v38 = vpop.f32.mrb[75].mxu0  ;;  %11119 = vmatprep.subr.mxu0 %v12008_v55  ;;  %v5983_v4 = vadd.f32 %v11099_v62, %v9982_v58 }
0x1b7b   :  { %v5978_v0 = vadd.f32 %v9982_v58, %v5977_v38 }
0x1b7c   :  { %11117 = vmatmul.mubr.msk.f32.vlgmr.msra.gmra.mrb[76].mxu0 %vm532_vm6, %v5879_v63 }
0x1b7d   :  { %11120 = vmatpush3.xpose.msk.msra.mxu0 %vm532_vm6, %v5973_v40  ;;  %11125 = vmatpush3.xpose.msk.msra.mxu1 %vm532_vm6, %v5978_v0  ;;  %v11648_v40 = vpack.c.bf16 %v6820_v47, %v6819_v59  ;;  %v6825_v0 = vld [vmem:[%s13506_s3 + $0x2c0] sm:$0xff] }
0x1b7e   :  { %11121 = vmatprep.mubr.msk.f32.mxu0 %vm12009_vm5, %v12008_v55  ;;  %11129 = vmatprep.subr.mxu0 %v12008_v55 }
0x1b7f   :  { %11134 = vmatprep.subr.mxu1 %v12008_v55 }
0x1b80   :  { %11122 = vmatmul.mubr.msk.f32.vlgmr.msra.gmra.mrb[78].mxu0 %vm532_vm6, %v5884_v1  ;;  %11127 = vmatmul.mubr.msk.f32.vlgmr.msra.gmra.mrb[96].mxu1 %vm532_vm6, %v5889_v45  ;;  %v6826_v1 = vld [vmem:[%s13506_s3 + $0x2c8] sm:$0xff] }
0x1b81   :  { %11130 = vmatpush3.xpose.msk.msra.mxu0 %vm532_vm6, %v5983_v4  ;;  %11135 = vmatpush3.msra.mxu1 %v6057_v3  ;;  %v11660_v45 = vpack.c.bf16 %v6826_v1, %v6825_v0  ;;  %v6827_v4 = vld [vmem:[%s13506_s3 + $0x2d0] sm:$0xff] }
0x1b82   :  { %11131 = vmatprep.mubr.msk.f32.mxu0 %vm12009_vm5, %v12008_v55  ;;  %11139 = vmatprep.subr.mxu0 %v12008_v55 }
0x1b83   :  { %11136 = vmatprep.mubr.msk.f32.mxu1 %vm12009_vm5, %v12008_v55  ;;  %11144 = vmatprep.subr.mxu1 %v12008_v55 }
0x1b84   :  { %11132 = vmatmul.mubr.msk.f32.vlgmr.msra.gmra.mrb[80].mxu0 %vm532_vm6, %v5894_v6  ;;  %v6828_v6 = vld [vmem:[%s13506_s3 + $0x2d8] sm:$0xff] }
0x1b85   :  { %11140 = vmatpush3.msra.mxu0 %v6062_v7  ;;  %11141 = vmatprep.mubr.msk.f32.mxu0 %vm12009_vm5, %v12008_v55  ;;  %v6715_v7 = vld [vmem:[%s13505_s2 + $0xa8] sm:$0xff] }
0x1b86   :  { %11149 = vmatprep.subr.mxu0 %v12008_v55 }
0x1c4f   :  { %v6147_v8 = vpop.f32.mrb[76].mxu0 }
0x1c50   :  { %v11118_v10 = vpop.f32.mrb[77].mxu0  ;;  %v6379_v12 = vsel %vm532_vm6, %v6147_v8, -inf }
0x1c51   :  { %6380 = vmax.xlane.f32.xlu1 %v6379_v12  ;;  %v6822_v10 = vld [vmem:[%s13506_s3 + $0x248] sm:$0xff] }
0x1c53   :  { %v6223_v13 = vpop.f32.mrb[78].mxu0  ;;  %v6299_v14 = vpop.f32.mrb[96].mxu1 }
0x1c54   :  { %v11123_v15 = vpop.f32.mrb[79].mxu0  ;;  %v11128_v16 = vpop.f32.mrb[97].mxu1  ;;  %v6385_v5 = vsel %vm532_vm6, %v6299_v14, -inf  ;;  %v6382_v11 = vsel %vm532_vm6, %v6223_v13, -inf }
0x1c55   :  { %6386 = vmax.xlane.f32.xlu1 %v6385_v5  ;;  %6383 = vmax.xlane.f32.xlu0 %v6382_v11  ;;  %v6823_v15 = vld [vmem:[%s13506_s3 + $0x250] sm:$0xff]  ;;  %v6824_v16 = vld [vmem:[%s13506_s3 + $0x258] sm:$0xff] }
0x1c56   :  { %v11656_v11 = vpack.c.bf16 %v6824_v16, %v6823_v15 }
0x1c57   :  { %v6375_v17 = vpop.f32.mrb[80].mxu0 }
0x1c58   :  { %v11133_v18 = vpop.f32.mrb[81].mxu0  ;;  %v6388_v2 = vsel %vm532_vm6, %v6375_v17, -inf }
0x1c59   :  { %6389 = vmax.xlane.f32.xlu0 %v6388_v2 }
0x1cde   :  { %v6381_v19 = vpop.xlane.xlu1 %6380 }
0x1cdf   :  { %v6391_v20 = vsub.f32 %v6147_v8, %v6381_v19  ;;  %v6821_v8 = vld [vmem:[%s13506_s3 + $0x240] sm:$0xff] }
0x1ce0   :  { %v11652_v12 = vpack.c.bf16 %v6822_v10, %v6821_v8 }
0x1ce1   :  { %v6395_v21 = vmul.f32 1.442695, %v6391_v20 }
0x1ce2   :  { %v6387_v9 = vpop.xlane.xlu1 %6386  ;;  %v6384_v22 = vpop.xlane.xlu0 %6383 }
0x1ce3   :  { %11904 = vpow2.f32 %v6395_v21  ;;  %v6393_v23 = vsub.f32 %v6299_v14, %v6387_v9  ;;  %v6392_v24 = vsub.f32 %v6223_v13, %v6384_v22 }
0x1ce5   :  { %v6399_v26 = vmul.f32 1.442695, %v6393_v23  ;;  %v6397_v28 = vmul.f32 1.442695, %v6392_v24 }
0x1ce6   :  { %v6390_v31 = vpop.xlane.xlu0 %6389 }
0x1ce7   :  { %11906 = vpow2.f32 %v6399_v26  ;;  %v6394_v32 = vsub.f32 %v6375_v17, %v6390_v31 }
0x1ce8   :  { %11908 = vpow2.f32 %v6397_v28  ;;  %v10018_v28 = vld [vmem:[%s13506_s3 + $0x316] ss:$0 sm:$0xff] }
0x1ce9   :  { %v6401_v34 = vmul.f32 1.442695, %v6394_v32 }
0x1ceb   :  { %11910 = vpow2.f32 %v6401_v34 }
0x1ced   :  { %v11905_v36 = vpop.eup %11904 }
0x1cee   :  { %v6403_v37 = vsel %vm532_vm6, %v11905_v36, 0.0 }
0x1cef   :  { %6404 = vadd.xlane.f32.xlu1 %v6403_v37  ;;  %v10013_v37 = vld [vmem:[%s13506_s3 + $0x312] ss:$0 sm:$0xff] }
0x1cf1   :  { %v11907_v42 = vpop.eup %11906 }
0x1cf2   :  { %v11909_v43 = vpop.eup %11908  ;;  %v6409_v25 = vsel %vm532_vm6, %v11907_v42, 0.0 }
0x1cf3   :  { %6410 = vadd.xlane.f32.xlu1 %v6409_v25  ;;  %v6406_v27 = vsel %vm532_vm6, %v11909_v43, 0.0 }
0x1cf4   :  { %6407 = vadd.xlane.f32.xlu0 %v6406_v27 }
0x1cf5   :  { %v11911_v41 = vpop.eup %11910 }
0x1cf6   :  { %v6412_v39 = vsel %vm532_vm6, %v11911_v41, 0.0 }
0x1cf8   :  { %6413 = vadd.xlane.f32.xlu0 %v6412_v39 }
0x1d7c   :  { %v6405_v44 = vpop.xlane.xlu1 %6404 }
0x1d7d   :  { %11912 = vrcp.f32 %v6405_v44 }
0x1d80   :  { %v6411_v46 = vpop.xlane.xlu1 %6410 }
0x1d81   :  { %11914 = vrcp.f32 %v6411_v46  ;;  %v6408_v49 = vpop.xlane.xlu0 %6407 }
0x1d82   :  { %11916 = vrcp.f32 %v6408_v49 }
0x1d85   :  { %v6414_v50 = vpop.xlane.xlu0 %6413 }
0x1d86   :  { %11918 = vrcp.f32 %v6414_v50 }
0x1d87   :  { %v11913_v56 = vpop.eup %11912 }
0x1d88   :  { %v6419_v58 = vmul.f32 %v11913_v56, %v11905_v36 }
0x1d8a   :  { %11137 = vmatmul.mubr.msk.f32.vlgmr.msra.gmra.mrb[98].mxu1 %vm532_vm6, %v6419_v58 }
0x1d8b   :  { %v11915_v60 = vpop.eup %11914  ;;  %11145 = vmatpush3.msra.mxu1 %v12969_v57  ;;  %11146 = vmatprep.mubr.msk.f32.mxu1 %vm12009_vm5, %v12008_v55 }
0x1d8c   :  { %v11917_v62 = vpop.eup %11916  ;;  %v6421_v63 = vmul.f32 %v11915_v60, %v11907_v42  ;;  %11645 = vmatprep.subr.bf16.mxu1 %v11644_v33 }
0x1d8d   :  { %v6420_v38 = vmul.f32 %v11917_v62, %v11909_v43  ;;  %v10008_v43 = vld [vmem:[%s13506_s3 + $0x30e] ss:$0 sm:$0xff] }
0x1d8e   :  { %11147 = vmatmul.mubr.msk.f32.vlgmr.msra.gmra.mrb[100].mxu1 %vm532_vm6, %v6421_v63 }
0x1d8f   :  { %11142 = vmatmul.mubr.msk.f32.vlgmr.msra.gmra.mrb[82].mxu0 %vm532_vm6, %v6420_v38  ;;  %11647 = vmatpush3.bf16.msra.mxu1 %v11644_v33 }
0x1d90   :  { %v11919_v57 = vpop.eup %11918  ;;  %11150 = vmatpush3.msra.mxu0 %v12967_v54  ;;  %11170 = vmatprep.mubr.msk.f32.mxu1 %vm162_vm4, %v12800_v35  ;;  %v11664_v54 = vpack.c.bf16 %v6828_v6, %v6827_v4 }
0x1d91   :  { %v6422_v3 = vmul.f32 %v11919_v57, %v11911_v41  ;;  %11151 = vmatprep.mubr.msk.f32.mxu0 %vm12009_vm5, %v12008_v55  ;;  %11649 = vmatprep.subr.bf16.mxu1 %v11648_v40 }
0x1d92   :  { %11154 = vmatprep.subr.mxu0 %v6715_v7 }
0x1d93   :  { %11152 = vmatmul.mubr.msk.f32.vlgmr.msra.gmra.mrb[84].mxu0 %vm532_vm6, %v6422_v3  ;;  %11651 = vmatpush3.bf16.msra.mxu1 %v11648_v40 }
0x1d94   :  { %11661 = vmatprep.subr.bf16.mxu1 %v11660_v45  ;;  %11155 = vmatpush3.msra.mxu0 %v6715_v7 }
0x1d95   :  { %11653 = vmatprep.subr.bf16.mxu0 %v11652_v12 }
0x1d96   :  { %11171 = vmatmul.mubr.msk.f32.vlgmr.msra.gmra.mrb[102].mxu1 %vm162_vm4, %v12803_v51 }
0x1d97   :  { %11173 = vmatprep.mubr.msk.f32.mxu1 %vm162_vm4, %v12813_v61  ;;  %11663 = vmatpush3.bf16.msra.mxu1 %v11660_v45 }
0x1d98   :  { %11665 = vmatprep.subr.bf16.mxu1 %v11664_v54 }
0x1d9a   :  { %11174 = vmatmul.mubr.msk.f32.gmra.mrb[104].mxu1 %vm162_vm4, %v12815_v48 }
0x1d9b   :  { %11667 = vmatpush3.bf16.msra.mxu1 %v11664_v54  ;;  %11198 = vmatprep.mubr.msk.f32.mxu1 %vm162_vm4, %v12800_v35 }
0x1d9c   :  { %11209 = vmatprep.subr.mxu1 %v12008_v55 }
0x1d9e   :  { %11199 = vmatmul.mubr.msk.f32.vlgmr.msra.gmra.mrb[106].mxu1 %vm162_vm4, %v12803_v51 }
0x1d9f   :  { %11201 = vmatprep.mubr.msk.f32.mxu1 %vm162_vm4, %v12813_v61 }
0x1da2   :  { %11202 = vmatmul.mubr.msk.f32.gmra.mrb[108].mxu1 %vm162_vm4, %v12815_v48 }
0x1da3   :  { %11211 = vmatprep.mubr.msk.f32.mxu1 %vm12009_vm5, %v12008_v55 }
0x1e5d   :  { %v6492_v13 = vpop.f32.mrb[98].mxu1 }
0x1e5e   :  { %v11138_v14 = vpop.f32.mrb[99].mxu1  ;;  %11156 = vmatprep.mubr.msk.f32.mxu0 %vm532_vm6, %v6492_v13 }
0x1e61   :  { %v6638_v5 = vpop.f32.mrb[100].mxu1 }
0x1e62   :  { %v6565_v17 = vpop.f32.mrb[82].mxu0  ;;  %v11148_v18 = vpop.f32.mrb[101].mxu1 }
0x1e63   :  { %v11143_v2 = vpop.f32.mrb[83].mxu0  ;;  %11157 = vmatmul.mubr.msk.f32.vlgmr.msra.gmra.mrb[68].mxu0 %vm532_vm6, %v6565_v17 }
0x1e64   :  { %11159 = vmatprep.mubr.msk.f32.mxu0 %vm532_vm6, %v6638_v5  ;;  %11655 = vmatpush3.bf16.msra.mxu0 %v11652_v12 }
0x1e65   :  { %11657 = vmatprep.subr.bf16.mxu0 %v11656_v11 }
0x1e66   :  { %v6711_v19 = vpop.f32.mrb[84].mxu0 }
0x1e67   :  { %v11153_v20 = vpop.f32.mrb[85].mxu0  ;;  %11160 = vmatmul.mubr.msk.f32.gmra.mrb[70].mxu0 %vm532_vm6, %v6711_v19 }
0x1e68   :  { %11659 = vmatpush3.bf16.msra.mxu0 %v11656_v11  ;;  %11184 = vmatprep.mubr.msk.f32.mxu0 %vm162_vm4, %v12800_v35 }
0x1e69   :  { %v11172_v21 = vpop.f32.mrb[102].mxu1  ;;  %11204 = vmatprep.subr.mxu0 %v12008_v55 }
0x1e6a   :  { %v6902_v9 = vpop.f32.mrb[103].mxu1  ;;  %v6908_v39 = vadd.f32 %v11172_v21, %v10008_v43 }
0x1e6b   :  { %11185 = vmatmul.mubr.msk.f32.vlgmr.msra.gmra.mrb[86].mxu0 %vm162_vm4, %v12803_v51  ;;  %v6903_v46 = vadd.f32 %v10008_v43, %v6902_v9 }
0x1e6c   :  { %11187 = vmatprep.mubr.msk.f32.mxu0 %vm162_vm4, %v12813_v61 }
0x1e6d   :  { %v11175_v22 = vpop.f32.mrb[104].mxu1 }
0x1e6e   :  { %v6912_v23 = vpop.f32.mrb[105].mxu1  ;;  %v6918_v53 = vadd.f32 %v11175_v22, %v10008_v43 }
0x1e6f   :  { %11188 = vmatmul.mubr.msk.f32.gmra.mrb[88].mxu0 %vm162_vm4, %v12815_v48  ;;  %v6913_v56 = vadd.f32 %v10008_v43, %v6912_v23 }
0x1e70   :  { %11206 = vmatprep.mubr.msk.f32.mxu0 %vm12009_vm5, %v12008_v55 }
0x1e71   :  { %v11200_v24 = vpop.f32.mrb[106].mxu1 }
0x1e72   :  { %v7080_v26 = vpop.f32.mrb[107].mxu1  ;;  %v7086_v58 = vadd.f32 %v11200_v24, %v10018_v28 }
0x1e73   :  { %v7081_v33 = vadd.f32 %v10018_v28, %v7080_v26 }
0x1e75   :  { %v11203_v31 = vpop.f32.mrb[108].mxu1 }
0x1e76   :  { %v13093_v32 = vadd.f32 %v11203_v31, %v10018_v28  ;;  %v7090_v34 = vpop.f32.mrb[109].mxu1  ;;  %v7842_v31 = vld [vmem:[%s13506_s3 + $0x1e8] sm:$0xff] }
0x1e77   :  { %v13095_v36 = vadd.f32 %v10018_v28, %v7090_v34  ;;  %v7841_v28 = vld [vmem:[%s13506_s3 + $0x1e0] sm:$0xff] }
0x1f3e   :  { %v11186_v42 = vpop.f32.mrb[86].mxu0 }
0x1f3f   :  { %v6997_v25 = vadd.f32 %v11186_v42, %v10013_v37  ;;  %v6991_v27 = vpop.f32.mrb[87].mxu0 }
0x1f40   :  { %v6992_v41 = vadd.f32 %v10013_v37, %v6991_v27  ;;  %v7843_v27 = vld [vmem:[%s13506_s3 + $0x1f0] sm:$0xff] }
0x1f41   :  { %11210 = vmatpush3.xpose.msk.msra.mxu1 %vm532_vm6, %v6997_v25  ;;  %v11668_v25 = vpack.c.bf16 %v7842_v31, %v7841_v28 }
0x1f42   :  { %v11189_v44 = vpop.f32.mrb[88].mxu0  ;;  %11205 = vmatpush3.xpose.msk.msra.mxu0 %vm532_vm6, %v6992_v41  ;;  %11219 = vmatprep.subr.mxu1 %v12008_v55  ;;  %v7844_v41 = vld [vmem:[%s13506_s3 + $0x1f8] sm:$0xff] }
0x1f43   :  { %v7007_v49 = vadd.f32 %v11189_v44, %v10013_v37  ;;  %v7001_v50 = vpop.f32.mrb[89].mxu0  ;;  %11214 = vmatprep.subr.mxu0 %v12008_v55 }
0x1f44   :  { %v7002_v52 = vadd.f32 %v10013_v37, %v7001_v50  ;;  %11212 = vmatmul.mubr.msk.f32.vlgmr.msra.gmra.mrb[110].mxu1 %vm532_vm6, %v6908_v39 }
0x1f45   :  { %11207 = vmatmul.mubr.msk.f32.vlgmr.msra.gmra.mrb[90].mxu0 %vm532_vm6, %v6903_v46  ;;  %11220 = vmatpush3.xpose.msk.msra.mxu1 %vm532_vm6, %v7007_v49  ;;  %v11672_v49 = vpack.c.bf16 %v7844_v41, %v7843_v27 }
0x1f46   :  { %11215 = vmatpush3.xpose.msk.msra.mxu0 %vm532_vm6, %v7002_v52  ;;  %11221 = vmatprep.mubr.msk.f32.mxu1 %vm12009_vm5, %v12008_v55  ;;  %v7849_v52 = vld [vmem:[%s13506_s3 + $0x2e0] sm:$0xff] }
0x1f47   :  { %11216 = vmatprep.mubr.msk.f32.mxu0 %vm12009_vm5, %v12008_v55  ;;  %11229 = vmatprep.subr.mxu1 %v12008_v55 }
0x1f48   :  { %11222 = vmatmul.mubr.msk.f32.vlgmr.msra.gmra.mrb[112].mxu1 %vm532_vm6, %v6918_v53  ;;  %11224 = vmatprep.subr.mxu0 %v12008_v55  ;;  %v7851_v53 = vld [vmem:[%s13506_s3 + $0x2f0] sm:$0xff] }
0x1f49   :  { %11217 = vmatmul.mubr.msk.f32.vlgmr.msra.gmra.mrb[92].mxu0 %vm532_vm6, %v6913_v56  ;;  %11230 = vmatpush3.msra.mxu1 %v7086_v58  ;;  %v7852_v56 = vld [vmem:[%s13506_s3 + $0x2f8] sm:$0xff] }
0x1f4a   :  { %11225 = vmatpush3.msra.mxu0 %v7081_v33  ;;  %11231 = vmatprep.mubr.msk.f32.mxu1 %vm12009_vm5, %v12008_v55  ;;  %v11688_v58 = vpack.c.bf16 %v7852_v56, %v7851_v53  ;;  %v7739_v33 = vld [vmem:[%s13505_s2 + $0xb0] sm:$0xff] }
0x1f4b   :  { %11239 = vmatprep.subr.mxu1 %v12008_v55  ;;  %11226 = vmatprep.mubr.msk.f32.mxu0 %vm12009_vm5, %v12008_v55 }
0x1f4c   :  { %11234 = vmatprep.subr.mxu0 %v12008_v55 }
0x2017   :  { %v7247_v59 = vpop.f32.mrb[110].mxu1 }
0x2018   :  { %v7171_v47 = vpop.f32.mrb[90].mxu0  ;;  %v11213_v60 = vpop.f32.mrb[111].mxu1  ;;  %v7406_v62 = vsel %vm532_vm6, %v7247_v59, -inf }
0x2019   :  { %7407 = vmax.xlane.f32.xlu0 %v7406_v62  ;;  %v11208_v63 = vpop.f32.mrb[91].mxu0  ;;  %v7403_v38 = vsel %vm532_vm6, %v7171_v47, -inf  ;;  %v7847_v62 = vld [vmem:[%s13506_s3 + $0x270] sm:$0xff] }
0x201a   :  { %7404 = vmax.xlane.f32.xlu1 %v7403_v38  ;;  %v7848_v63 = vld [vmem:[%s13506_s3 + $0x278] sm:$0xff] }
0x201b   :  { %v7399_v40 = vpop.f32.mrb[112].mxu1 }
0x201c   :  { %v7323_v0 = vpop.f32.mrb[92].mxu0  ;;  %v11223_v1 = vpop.f32.mrb[113].mxu1  ;;  %v7412_v57 = vsel %vm532_vm6, %v7399_v40, -inf }
0x201d   :  { %7413 = vmax.xlane.f32.xlu0 %v7412_v57  ;;  %v11218_v45 = vpop.f32.mrb[93].mxu0  ;;  %v7409_v3 = vsel %vm532_vm6, %v7323_v0, -inf  ;;  %v11680_v1 = vpack.c.bf16 %v7848_v63, %v7847_v62 }
0x201e   :  { %7410 = vmax.xlane.f32.xlu1 %v7409_v3 }
0x20a6   :  { %v7408_v4 = vpop.xlane.xlu0 %7407 }
0x20a7   :  { %v7416_v6 = vsub.f32 %v7247_v59, %v7408_v4  ;;  %v7405_v54 = vpop.xlane.xlu1 %7404  ;;  %v7845_v59 = vld [vmem:[%s13506_s3 + $0x260] sm:$0xff] }
0x20a8   :  { %v7415_v7 = vsub.f32 %v7171_v47, %v7405_v54  ;;  %v7846_v47 = vld [vmem:[%s13506_s3 + $0x268] sm:$0xff] }
0x20a9   :  { %v7421_v8 = vmul.f32 1.442695, %v7416_v6  ;;  %v11676_v60 = vpack.c.bf16 %v7846_v47, %v7845_v59 }
0x20aa   :  { %v7419_v10 = vmul.f32 1.442695, %v7415_v7  ;;  %v7414_v12 = vpop.xlane.xlu0 %7413 }
0x20ab   :  { %11920 = vpow2.f32 %v7421_v8  ;;  %v7418_v13 = vsub.f32 %v7399_v40, %v7414_v12  ;;  %v7411_v14 = vpop.xlane.xlu1 %7410 }
0x20ac   :  { %11922 = vpow2.f32 %v7419_v10  ;;  %v7417_v15 = vsub.f32 %v7323_v0, %v7411_v14  ;;  %v10049_v14 = vld [vmem:[%s13506_s3 + $0x317] ss:$0 sm:$0xff] }
0x20ad   :  { %v7425_v16 = vmul.f32 1.442695, %v7418_v13 }
0x20ae   :  { %v7423_v5 = vmul.f32 1.442695, %v7417_v15 }
0x20af   :  { %11924 = vpow2.f32 %v7425_v16 }
0x20b0   :  { %11926 = vpow2.f32 %v7423_v5 }
0x20b5   :  { %v11921_v11 = vpop.eup %11920 }
0x20b6   :  { %v11923_v17 = vpop.eup %11922  ;;  %v7430_v18 = vsel %vm532_vm6, %v11921_v11, 0.0 }
0x20b7   :  { %7431 = vadd.xlane.f32.xlu0 %v7430_v18  ;;  %v7427_v2 = vsel %vm532_vm6, %v11923_v17, 0.0 }
0x20b8   :  { %7428 = vadd.xlane.f32.xlu1 %v7427_v2 }
0x20b9   :  { %v11925_v19 = vpop.eup %11924 }
0x20ba   :  { %v11927_v20 = vpop.eup %11926  ;;  %v7436_v21 = vsel %vm532_vm6, %v11925_v19, 0.0 }
0x20bb   :  { %7437 = vadd.xlane.f32.xlu0 %v7436_v21  ;;  %v7433_v9 = vsel %vm532_vm6, %v11927_v20, 0.0 }
0x20bc   :  { %7434 = vadd.xlane.f32.xlu1 %v7433_v9 }
0x2144   :  { %v7432_v22 = vpop.xlane.xlu0 %7431 }
0x2145   :  { %11928 = vrcp.f32 %v7432_v22  ;;  %v7429_v23 = vpop.xlane.xlu1 %7428 }
0x2146   :  { %11930 = vrcp.f32 %v7429_v23 }
0x2148   :  { %v7438_v24 = vpop.xlane.xlu0 %7437 }
0x2149   :  { %11932 = vrcp.f32 %v7438_v24  ;;  %v7435_v26 = vpop.xlane.xlu1 %7434 }
0x214a   :  { %11934 = vrcp.f32 %v7435_v26 }
0x214f   :  { %v11929_v34 = vpop.eup %11928 }
0x2150   :  { %v11931_v37 = vpop.eup %11930  ;;  %v7444_v42 = vmul.f32 %v11929_v34, %v11921_v11 }
0x2151   :  { %v7443_v43 = vmul.f32 %v11931_v37, %v11923_v17  ;;  %v10044_v17 = vld [vmem:[%s13506_s3 + $0x313] ss:$0 sm:$0xff] }
0x2152   :  { %11232 = vmatmul.mubr.msk.f32.vlgmr.msra.gmra.mrb[114].mxu1 %vm532_vm6, %v7444_v42 }
0x2153   :  { %v11933_v39 = vpop.eup %11932  ;;  %11240 = vmatpush3.msra.mxu1 %v13093_v32  ;;  %11227 = vmatmul.mubr.msk.f32.vlgmr.msra.gmra.mrb[94].mxu0 %vm532_vm6, %v7443_v43  ;;  %v7850_v32 = vld [vmem:[%s13506_s3 + $0x2e8] sm:$0xff] }
0x2154   :  { %v11935_v44 = vpop.eup %11934  ;;  %v7446_v46 = vmul.f32 %v11933_v39, %v11925_v19  ;;  %11235 = vmatpush3.msra.mxu0 %v13095_v36  ;;  %11241 = vmatprep.mubr.msk.f32.mxu1 %vm12009_vm5, %v12008_v55  ;;  %v11684_v36 = vpack.c.bf16 %v7850_v32, %v7849_v52  ;;  %v10039_v19 = vld [vmem:[%s13506_s3 + $0x30f] ss:$0 sm:$0xff] }
0x2155   :  { %v7445_v50 = vmul.f32 %v11935_v44, %v11927_v20  ;;  %11669 = vmatprep.subr.bf16.mxu1 %v11668_v25  ;;  %11236 = vmatprep.mubr.msk.f32.mxu0 %vm12009_vm5, %v12008_v55 }
0x2156   :  { %11242 = vmatmul.mubr.msk.f32.vlgmr.msra.gmra.mrb[116].mxu1 %vm532_vm6, %v7446_v46  ;;  %11244 = vmatprep.subr.mxu0 %v7739_v33 }
0x2157   :  { %11671 = vmatpush3.bf16.msra.mxu1 %v11668_v25  ;;  %11237 = vmatmul.mubr.msk.f32.vlgmr.msra.gmra.mrb[96].mxu0 %vm532_vm6, %v7445_v50 }
0x2158   :  { %11260 = vmatprep.mubr.msk.f32.mxu1 %vm162_vm4, %v12800_v35  ;;  %11673 = vmatprep.subr.bf16.mxu1 %v11672_v49 }
0x2159   :  { %11245 = vmatpush3.msra.mxu0 %v7739_v33 }
0x215a   :  { %11677 = vmatprep.subr.bf16.mxu0 %v11676_v60 }
0x215b   :  { %11675 = vmatpush3.bf16.msra.mxu1 %v11672_v49 }
0x215c   :  { %11685 = vmatprep.subr.bf16.mxu1 %v11684_v36 }
0x215e   :  { %11261 = vmatmul.mubr.msk.f32.vlgmr.msra.gmra.mrb[118].mxu1 %vm162_vm4, %v12803_v51 }
0x215f   :  { %11263 = vmatprep.mubr.msk.f32.mxu1 %vm162_vm4, %v12813_v61  ;;  %11687 = vmatpush3.bf16.msra.mxu1 %v11684_v36 }
0x2160   :  { %11689 = vmatprep.subr.bf16.mxu1 %v11688_v58 }
0x2162   :  { %11264 = vmatmul.mubr.msk.f32.gmra.mrb[120].mxu1 %vm162_vm4, %v12815_v48 }
0x2163   :  { %11691 = vmatpush3.bf16.msra.mxu1 %v11688_v58  ;;  %11288 = vmatprep.mubr.msk.f32.mxu1 %vm162_vm4, %v12800_v35 }
0x2164   :  { %11304 = vmatprep.subr.mxu1 %v12008_v55 }
0x2166   :  { %11289 = vmatmul.mubr.msk.f32.vlgmr.msra.gmra.mrb[122].mxu1 %vm162_vm4, %v12803_v51 }
0x2167   :  { %11291 = vmatprep.mubr.msk.f32.mxu1 %vm162_vm4, %v12813_v61 }
0x216a   :  { %11292 = vmatmul.mubr.msk.f32.gmra.mrb[124].mxu1 %vm162_vm4, %v12815_v48 }
0x216b   :  { %11306 = vmatprep.mubr.msk.f32.mxu1 %vm12009_vm5, %v12008_v55 }
0x2225   :  { %v7589_v38 = vpop.f32.mrb[114].mxu1 }
0x2226   :  { %v7516_v40 = vpop.f32.mrb[94].mxu0  ;;  %v11233_v0 = vpop.f32.mrb[115].mxu1 }
0x2227   :  { %v11228_v57 = vpop.f32.mrb[95].mxu0  ;;  %11246 = vmatprep.mubr.msk.f32.mxu0 %vm532_vm6, %v7516_v40 }
0x2228   :  { %11247 = vmatmul.mubr.msk.f32.vlgmr.msra.gmra.mrb[68].mxu0 %vm532_vm6, %v7589_v38 }
0x2229   :  { %v7735_v45 = vpop.f32.mrb[116].mxu1  ;;  %11679 = vmatpush3.bf16.msra.mxu0 %v11676_v60 }
0x222a   :  { %v7662_v3 = vpop.f32.mrb[96].mxu0  ;;  %v11243_v4 = vpop.f32.mrb[117].mxu1  ;;  %11681 = vmatprep.subr.bf16.mxu0 %v11680_v1 }
0x222b   :  { %v11238_v6 = vpop.f32.mrb[97].mxu0  ;;  %11249 = vmatprep.mubr.msk.f32.mxu0 %vm532_vm6, %v7662_v3 }
0x222c   :  { %11250 = vmatmul.mubr.msk.f32.gmra.mrb[70].mxu0 %vm532_vm6, %v7735_v45 }
0x222d   :  { %11683 = vmatpush3.bf16.msra.mxu0 %v11680_v1  ;;  %11274 = vmatprep.mubr.msk.f32.mxu0 %vm162_vm4, %v12800_v35 }
0x222e   :  { %11294 = vmatprep.subr.mxu0 %v12008_v55 }
0x2230   :  { %11275 = vmatmul.mubr.msk.f32.vlgmr.msra.gmra.mrb[98].mxu0 %vm162_vm4, %v12803_v51 }
0x2231   :  { %v11262_v54 = vpop.f32.mrb[118].mxu1  ;;  %11277 = vmatprep.mubr.msk.f32.mxu0 %vm162_vm4, %v12813_v61 }
0x2232   :  { %v7926_v7 = vpop.f32.mrb[119].mxu1  ;;  %v7932_v26 = vadd.f32 %v11262_v54, %v10039_v19 }
0x2233   :  { %v7927_v9 = vadd.f32 %v10039_v19, %v7926_v7 }
0x2234   :  { %11278 = vmatmul.mubr.msk.f32.gmra.mrb[100].mxu0 %vm162_vm4, %v12815_v48 }
0x2235   :  { %v11265_v8 = vpop.f32.mrb[120].mxu1  ;;  %11296 = vmatprep.mubr.msk.f32.mxu0 %vm12009_vm5, %v12008_v55 }
0x2236   :  { %v7936_v10 = vpop.f32.mrb[121].mxu1  ;;  %v7942_v37 = vadd.f32 %v11265_v8, %v10039_v19 }
0x2237   :  { %v7937_v28 = vadd.f32 %v10039_v19, %v7936_v10 }
0x2239   :  { %v11290_v12 = vpop.f32.mrb[122].mxu1 }
0x223a   :  { %v8104_v13 = vpop.f32.mrb[123].mxu1  ;;  %v8110_v42 = vadd.f32 %v11290_v12, %v10049_v14 }
0x223b   :  { %v8105_v31 = vadd.f32 %v10049_v14, %v8104_v13 }
0x223d   :  { %v11293_v15 = vpop.f32.mrb[124].mxu1 }
0x223e   :  { %v13219_v16 = vadd.f32 %v11293_v15, %v10049_v14  ;;  %v8114_v5 = vpop.f32.mrb[125].mxu1 }
0x223f   :  { %v13221_v11 = vadd.f32 %v10049_v14, %v8114_v5 }
0x2303   :  { %v11276_v18 = vpop.f32.mrb[98].mxu0 }
0x2304   :  { %v8015_v2 = vpop.f32.mrb[99].mxu0  ;;  %v8021_v23 = vadd.f32 %v11276_v18, %v10044_v17 }
0x2305   :  { %v8016_v20 = vadd.f32 %v10044_v17, %v8015_v2 }
0x2307   :  { %v11279_v21 = vpop.f32.mrb[100].mxu0  ;;  %11295 = vmatpush3.xpose.msk.msra.mxu0 %vm532_vm6, %v8016_v20 }
0x2308   :  { %v8025_v22 = vpop.f32.mrb[101].mxu0  ;;  %11299 = vmatprep.subr.mxu0 %v12008_v55  ;;  %v8031_v34 = vadd.f32 %v11279_v21, %v10044_v17 }
0x2309   :  { %v8026_v24 = vadd.f32 %v10044_v17, %v8025_v22 }
0x230a   :  { %11297 = vmatmul.mubr.msk.f32.vlgmr.msra.gmra.mrb[102].mxu0 %vm532_vm6, %v7927_v9 }
0x230b   :  { %11300 = vmatpush3.xpose.msk.msra.mxu0 %vm532_vm6, %v8021_v23  ;;  %11305 = vmatpush3.xpose.msk.msra.mxu1 %vm532_vm6, %v8026_v24 }
0x230c   :  { %11301 = vmatprep.mubr.msk.f32.mxu0 %vm12009_vm5, %v12008_v55  ;;  %11309 = vmatprep.subr.mxu0 %v12008_v55 }
0x230d   :  { %11314 = vmatprep.subr.mxu1 %v12008_v55 }
0x230e   :  { %11302 = vmatmul.mubr.msk.f32.vlgmr.msra.gmra.mrb[104].mxu0 %vm532_vm6, %v7932_v26  ;;  %11307 = vmatmul.mubr.msk.f32.vlgmr.msra.gmra.mrb[126].mxu1 %vm532_vm6, %v7937_v28 }
0x230f   :  { %11310 = vmatpush3.xpose.msk.msra.mxu0 %vm532_vm6, %v8031_v34  ;;  %11315 = vmatpush3.msra.mxu1 %v8105_v31  ;;  %v9976_v31 = vld [vmem:[%s13505_s2 + $0x194] ss:$0 sm:$0xff] }
0x2310   :  { %11311 = vmatprep.mubr.msk.f32.mxu0 %vm12009_vm5, %v12008_v55  ;;  %11319 = vmatprep.subr.mxu0 %v12008_v55 }
0x2311   :  { %11316 = vmatprep.mubr.msk.f32.mxu1 %vm12009_vm5, %v12008_v55  ;;  %11324 = vmatprep.subr.mxu1 %v12008_v55 }
0x2312   :  { %11312 = vmatmul.mubr.msk.f32.vlgmr.msra.gmra.mrb[106].mxu0 %vm532_vm6, %v7942_v37 }
0x2313   :  { %11320 = vmatpush3.msra.mxu0 %v8110_v42  ;;  %11321 = vmatprep.mubr.msk.f32.mxu0 %vm12009_vm5, %v12008_v55 }
0x2314   :  { %11329 = vmatprep.subr.mxu0 %v12008_v55 }
0x23dd   :  { %v8195_v43 = vpop.f32.mrb[102].mxu0 }
0x23de   :  { %v11298_v25 = vpop.f32.mrb[103].mxu0  ;;  %v8427_v27 = vsel %vm532_vm6, %v8195_v43, -inf }
0x23df   :  { %8428 = vmax.xlane.f32.xlu1 %v8427_v27 }
0x23e1   :  { %v8271_v41 = vpop.f32.mrb[104].mxu0  ;;  %v8347_v39 = vpop.f32.mrb[126].mxu1 }
0x23e2   :  { %v11303_v44 = vpop.f32.mrb[105].mxu0  ;;  %v11308_v46 = vpop.f32.mrb[127].mxu1  ;;  %v8433_v49 = vsel %vm532_vm6, %v8347_v39, -inf  ;;  %v8430_v50 = vsel %vm532_vm6, %v8271_v41, -inf }
0x23e3   :  { %8434 = vmax.xlane.f32.xlu1 %v8433_v49  ;;  %8431 = vmax.xlane.f32.xlu0 %v8430_v50 }
0x23e5   :  { %v8423_v52 = vpop.f32.mrb[106].mxu0 }
0x23e6   :  { %v11313_v32 = vpop.f32.mrb[107].mxu0  ;;  %v8436_v36 = vsel %vm532_vm6, %v8423_v52, -inf }
0x23e7   :  { %8437 = vmax.xlane.f32.xlu0 %v8436_v36 }
0x246c   :  { %v8429_v53 = vpop.xlane.xlu1 %8428 }
0x246d   :  { %v8439_v56 = vsub.f32 %v8195_v43, %v8429_v53 }
0x246f   :  { %v8443_v58 = vmul.f32 1.442695, %v8439_v56 }
0x2470   :  { %v8435_v33 = vpop.xlane.xlu1 %8434  ;;  %v8432_v59 = vpop.xlane.xlu0 %8431 }
0x2471   :  { %11936 = vpow2.f32 %v8443_v58  ;;  %v8441_v47 = vsub.f32 %v8347_v39, %v8435_v33  ;;  %v8440_v60 = vsub.f32 %v8271_v41, %v8432_v59 }
0x2473   :  { %v8447_v62 = vmul.f32 1.442695, %v8441_v47  ;;  %v8445_v63 = vmul.f32 1.442695, %v8440_v60 }
0x2474   :  { %v8438_v38 = vpop.xlane.xlu0 %8437 }
0x2475   :  { %11938 = vpow2.f32 %v8447_v62  ;;  %v8442_v40 = vsub.f32 %v8423_v52, %v8438_v38 }
0x2476   :  { %11940 = vpow2.f32 %v8445_v63 }
0x2477   :  { %v8449_v0 = vmul.f32 1.442695, %v8442_v40 }
0x2479   :  { %11942 = vpow2.f32 %v8449_v0 }
0x247b   :  { %v11937_v1 = vpop.eup %11936 }
0x247c   :  { %v8451_v57 = vsel %vm532_vm6, %v11937_v1, 0.0 }
0x247d   :  { %8452 = vadd.xlane.f32.xlu1 %v8451_v57 }
0x247f   :  { %v11939_v45 = vpop.eup %11938 }
0x2480   :  { %v11941_v3 = vpop.eup %11940  ;;  %v8457_v4 = vsel %vm532_vm6, %v11939_v45, 0.0 }
0x2481   :  { %8458 = vadd.xlane.f32.xlu1 %v8457_v4  ;;  %v8454_v6 = vsel %vm532_vm6, %v11941_v3, 0.0 }
0x2482   :  { %8455 = vadd.xlane.f32.xlu0 %v8454_v6  ;;  %v8937_v6 = vld [vmem:[%s13507_s4 + $0x20] sm:$0xff] }
0x2483   :  { %v11943_v54 = vpop.eup %11942 }
0x2484   :  { %v8460_v7 = vsel %vm532_vm6, %v11943_v54, 0.0 }
0x2486   :  { %8461 = vadd.xlane.f32.xlu0 %v8460_v7 }
0x250a   :  { %v8453_v8 = vpop.xlane.xlu1 %8452 }
0x250b   :  { %11944 = vrcp.f32 %v8453_v8  ;;  %v8939_v8 = vld [vmem:[%s13507_s4 + $0x30] sm:$0xff] }
0x250e   :  { %v8459_v10 = vpop.xlane.xlu1 %8458 }
0x250f   :  { %11946 = vrcp.f32 %v8459_v10  ;;  %v8456_v12 = vpop.xlane.xlu0 %8455  ;;  %v8940_v10 = vld [vmem:[%s13507_s4 + $0x38] sm:$0xff] }
0x2510   :  { %11948 = vrcp.f32 %v8456_v12  ;;  %v11696_v12 = vpack.c.bf16 %v8940_v10, %v8939_v8 }
0x2513   :  { %v8462_v13 = vpop.xlane.xlu0 %8461 }
0x2514   :  { %11950 = vrcp.f32 %v8462_v13 }
0x2515   :  { %v11945_v14 = vpop.eup %11944 }
0x2516   :  { %v8467_v15 = vmul.f32 %v11945_v14, %v11937_v1 }
0x2518   :  { %11317 = vmatmul.mubr.msk.f32.vlgmr.msra.gmra.mrb[128].mxu1 %vm532_vm6, %v8467_v15 }
0x2519   :  { %v11947_v5 = vpop.eup %11946  ;;  %11325 = vmatpush3.msra.mxu1 %v13221_v11  ;;  %11326 = vmatprep.mubr.msk.f32.mxu1 %vm12009_vm5, %v12008_v55  ;;  %v8763_v11 = vld [vmem:[%s13505_s2 + $0xb8] sm:$0xff] }
0x251a   :  { %v11949_v17 = vpop.eup %11948  ;;  %v8469_v18 = vmul.f32 %v11947_v5, %v11939_v45 }
0x251b   :  { %v8468_v2 = vmul.f32 %v11949_v17, %v11941_v3 }
0x251c   :  { %11327 = vmatmul.mubr.msk.f32.vlgmr.msra.gmra.mrb[130].mxu1 %vm532_vm6, %v8469_v18 }
0x251d   :  { %11322 = vmatmul.mubr.msk.f32.vlgmr.msra.gmra.mrb[108].mxu0 %vm532_vm6, %v8468_v2 }
0x251e   :  { %v11951_v19 = vpop.eup %11950  ;;  %11330 = vmatpush3.msra.mxu0 %v13219_v16  ;;  %11331 = vmatprep.mubr.msk.f32.mxu0 %vm12009_vm5, %v12008_v55 }
0x251f   :  { %v8470_v20 = vmul.f32 %v11951_v19, %v11943_v54  ;;  %11334 = vmatprep.subr.mxu0 %v8763_v11  ;;  %v8938_v54 = vld [vmem:[%s13507_s4 + $0x28] sm:$0xff] }
0x2520   :  { %v11692_v7 = vpack.c.bf16 %v8938_v54, %v8937_v6 }
0x2521   :  { %11332 = vmatmul.mubr.msk.f32.vlgmr.msra.gmra.mrb[110].mxu0 %vm532_vm6, %v8470_v20 }
0x2522   :  { %11335 = vmatpush3.msra.mxu0 %v8763_v11  ;;  %11693 = vmatprep.subr.bf16.mxu1 %v11692_v7 }
0x2523   :  { %11695 = vmatpush3.bf16.msra.mxu1 %v11692_v7 }
0x2524   :  { %11697 = vmatprep.subr.bf16.mxu1 %v11696_v12 }
0x2527   :  { %11699 = vmatpush3.bf16.msra.mxu1 %v11696_v12 }
0x25eb   :  { %v8540_v21 = vpop.f32.mrb[128].mxu1 }
0x25ec   :  { %v11318_v9 = vpop.f32.mrb[129].mxu1  ;;  %11336 = vmatprep.mubr.msk.f32.mxu0 %vm532_vm6, %v8540_v21 }
0x25ef   :  { %v8686_v22 = vpop.f32.mrb[130].mxu1 }
0x25f0   :  { %v8613_v23 = vpop.f32.mrb[108].mxu0  ;;  %v11328_v24 = vpop.f32.mrb[131].mxu1 }
0x25f1   :  { %v11323_v16 = vpop.f32.mrb[109].mxu0  ;;  %11337 = vmatmul.mubr.msk.f32.vlgmr.msra.gmra.mrb[68].mxu0 %vm532_vm6, %v8613_v23  ;;  %v10070_v23 = vld [vmem:[%s13505_s2 + $0x195] ss:$0 sm:$0xff] }
0x25f2   :  { %11339 = vmatprep.mubr.msk.f32.mxu0 %vm532_vm6, %v8686_v22 }
0x25f4   :  { %v8759_v26 = vpop.f32.mrb[110].mxu0 }
0x25f5   :  { %v11333_v28 = vpop.f32.mrb[111].mxu0  ;;  %11340 = vmatmul.mubr.msk.f32.gmra.mrb[70].mxu0 %vm532_vm6, %v8759_v26 }
0x25f6   :  { %v10071_v28 = vld [vmem:[%s13505_s2 + $0x196] ss:$0 sm:$0xff] }
0x26c4   :  { %v11338_v34 = vpop.f32.mrb[68].mxu0 }
0x26c5   :  { %v11756_v37 = vadd.f32 %v11338_v34, %v9976_v31  ;;  %v8842_v42 = vpop.f32.mrb[69].mxu0 }
0x26c6   :  { %v11757_v43 = vadd.f32 %v9976_v31, %v8842_v42 }
0x26c7   :  { %v8866_v25 = vadd.f32 %v11756_v37, %v12803_v51 }
0x26c8   :  { %v11341_v27 = vpop.f32.mrb[70].mxu0  ;;  %v8865_v41 = vadd.f32 %v11757_v43, %v12800_v35 }
0x26c9   :  { %v11758_v39 = vadd.f32 %v11341_v27, %v9976_v31  ;;  %v8852_v44 = vpop.f32.mrb[71].mxu0  ;;  %v8872_v46 = vsel %vm162_vm4, %v8866_v25, 0.0 }
0x26ca   :  { %v11759_v49 = vadd.f32 %v9976_v31, %v8852_v44  ;;  %8873 = vadd.xlane.f32.xlu0 %v8872_v46  ;;  %v8869_v50 = vsel %vm162_vm4, %v8865_v41, 0.0 }
0x26cb   :  { %8870 = vadd.xlane.f32.xlu1 %v8869_v50  ;;  %v8868_v52 = vadd.f32 %v11758_v39, %v12815_v48  ;;  %v8942_v50 = vld [vmem:[%s13505_s2 + $0x100] sm:$0xff] }
0x26cc   :  { %v8867_v32 = vadd.f32 %v11759_v49, %v12813_v61 }
0x26cd   :  { %v8878_v36 = vsel %vm162_vm4, %v8868_v52, 0.0 }
0x26ce   :  { %8879 = vadd.xlane.f32.xlu0 %v8878_v36  ;;  %v8875_v51 = vsel %vm162_vm4, %v8867_v32, 0.0  ;;  %v8944_v36 = vld [vmem:[%s13505_s2 + $0x110] sm:$0xff] }
0x26cf   :  { %8876 = vadd.xlane.f32.xlu1 %v8875_v51  ;;  %v8945_v51 = vld [vmem:[%s13505_s2 + $0x118] sm:$0xff] }
0x2757   :  { %v8874_v35 = vpop.xlane.xlu0 %8873 }
0x2758   :  { %v8882_v53 = vmul.f32 0.03125, %v8874_v35  ;;  %v8871_v56 = vpop.xlane.xlu1 %8870  ;;  %v11704_v35 = vpack.c.bf16 %v8945_v51, %v8944_v36 }
0x2759   :  { %v8881_v58 = vmul.f32 0.03125, %v8871_v56  ;;  %v8947_v56 = vld [vmem:[%s13505_s2 + $0x128] sm:$0xff] }
0x275a   :  { %v8886_v33 = vsub.f32 %v8866_v25, %v8882_v53  ;;  %v8946_v53 = vld [vmem:[%s13505_s2 + $0x120] sm:$0xff] }
0x275b   :  { %v8885_v59 = vsub.f32 %v8865_v41, %v8881_v58  ;;  %v8880_v47 = vpop.xlane.xlu0 %8879  ;;  %v11708_v58 = vpack.c.bf16 %v8947_v56, %v8946_v53 }
0x275c   :  { %v8884_v60 = vmul.f32 0.03125, %v8880_v47  ;;  %v8877_v62 = vpop.xlane.xlu1 %8876  ;;  %v8890_v63 = vmul.f32 %v8886_v33, %v8886_v33 }
0x275d   :  { %v8883_v38 = vmul.f32 0.03125, %v8877_v62  ;;  %v8889_v48 = vmul.f32 %v8885_v59, %v8885_v59 }
0x275e   :  { %v8888_v40 = vsub.f32 %v8868_v52, %v8884_v60  ;;  %v8896_v61 = vsel %vm162_vm4, %v8890_v63, 0.0  ;;  %v8943_v52 = vld [vmem:[%s13505_s2 + $0x108] sm:$0xff]  ;;  %v10072_v60 = vld [vmem:[%s13507_s4 + $0x41] ss:$0 sm:$0xff] }
0x275f   :  { %v8887_v0 = vsub.f32 %v8867_v32, %v8883_v38  ;;  %8897 = vadd.xlane.f32.xlu0 %v8896_v61  ;;  %v8893_v1 = vsel %vm162_vm4, %v8889_v48, 0.0  ;;  %v11700_v32 = vpack.c.bf16 %v8943_v52, %v8942_v50  ;;  %v10077_v50 = vld [vmem:[%s13505_s2 + $0x197] ss:$0 sm:$0xff] }
0x2760   :  { %8894 = vadd.xlane.f32.xlu1 %v8893_v1  ;;  %v8892_v57 = vmul.f32 %v8888_v40, %v8888_v40 }
0x2761   :  { %v8891_v45 = vmul.f32 %v8887_v0, %v8887_v0  ;;  %11701 = vmatprep.subr.bf16.mxu0 %v11700_v32 }
0x2762   :  { %v8902_v3 = vsel %vm162_vm4, %v8892_v57, 0.0  ;;  %11703 = vmatpush3.bf16.msra.mxu0 %v11700_v32 }
0x2763   :  { %8903 = vadd.xlane.f32.xlu0 %v8902_v3  ;;  %v8899_v4 = vsel %vm162_vm4, %v8891_v45, 0.0  ;;  %11705 = vmatprep.subr.bf16.mxu0 %v11704_v35 }
0x2764   :  { %8900 = vadd.xlane.f32.xlu1 %v8899_v4 }
0x2766   :  { %11707 = vmatpush3.bf16.msra.mxu0 %v11704_v35 }
0x2767   :  { %11709 = vmatprep.subr.bf16.mxu0 %v11708_v58 }
0x276a   :  { %11711 = vmatpush3.bf16.msra.mxu0 %v11708_v58 }
0x27ec   :  { %v8898_v13 = vpop.xlane.xlu0 %8897 }
0x27ed   :  { %v8906_v14 = vmul.f32 0.03125, %v8898_v13  ;;  %v8895_v15 = vpop.xlane.xlu1 %8894 }
0x27ee   :  { %v8905_v5 = vmul.f32 0.03125, %v8895_v15 }
0x27ef   :  { %v8910_v17 = vadd.f32 1e-12, %v8906_v14 }
0x27f0   :  { %v8909_v18 = vadd.f32 1e-12, %v8905_v5  ;;  %v8904_v2 = vpop.xlane.xlu0 %8903 }
0x27f1   :  { %11952 = vrsqrt.f32 %v8910_v17  ;;  %v8908_v19 = vmul.f32 0.03125, %v8904_v2  ;;  %v8901_v20 = vpop.xlane.xlu1 %8900 }
0x27f2   :  { %11954 = vrsqrt.f32 %v8909_v18  ;;  %v8907_v11 = vmul.f32 0.03125, %v8901_v20 }
0x27f3   :  { %v8912_v21 = vadd.f32 1e-12, %v8908_v19 }
0x27f4   :  { %v8911_v9 = vadd.f32 1e-12, %v8907_v11 }
0x27f5   :  { %11956 = vrsqrt.f32 %v8912_v21 }
0x27f6   :  { %11958 = vrsqrt.f32 %v8911_v9 }
0x27fb   :  { %v11953_v22 = vpop.eup %11952 }
0x27fc   :  { %v11955_v24 = vpop.eup %11954  ;;  %v8918_v16 = vmul.f32 %v11953_v22, %v8886_v33  ;;  %v8948_v33 = vld [vmem:[%s13505_s2 + $0x130] sm:$0xff] }
0x27fd   :  { %v8917_v26 = vmul.f32 %v11955_v24, %v8885_v59  ;;  %v8949_v59 = vld [vmem:[%s13505_s2 + $0x138] sm:$0xff] }
0x27fe   :  { %v8926_v31 = vmul.f32 %v10070_v23, %v8918_v16  ;;  %v11712_v47 = vpack.c.bf16 %v8949_v59, %v8948_v33 }
0x27ff   :  { %v11957_v34 = vpop.eup %11956  ;;  %v8925_v37 = vmul.f32 %v10070_v23, %v8917_v26 }
0x2800   :  { %v11959_v42 = vpop.eup %11958  ;;  %v8920_v43 = vmul.f32 %v11957_v34, %v8888_v40  ;;  %v13311_v41 = vadd.f32 %v10071_v28, %v8926_v31  ;;  %11713 = vmatprep.subr.bf16.mxu0 %v11712_v47 }
0x2801   :  { %v13309_v25 = vadd.f32 %v10071_v28, %v8925_v37  ;;  %v8919_v27 = vmul.f32 %v11959_v42, %v8887_v0  ;;  %11715 = vmatpush3.bf16.msra.mxu0 %v11712_v47 }
0x2802   :  { %v8928_v39 = vmul.f32 %v10070_v23, %v8920_v43 }
0x2803   :  { %11350 = vmatprep.mubr.msk.f32.mxu1 %vm162_vm4, %v13309_v25  ;;  %v8927_v44 = vmul.f32 %v10070_v23, %v8919_v27 }
0x2804   :  { %11351 = vmatmul.mubr.msk.f32.vlgmr.msra.gmra.mrb[132].mxu1 %vm162_vm4, %v13311_v41  ;;  %v13319_v49 = vadd.f32 %v10071_v28, %v8928_v39 }
0x2805   :  { %v13317_v46 = vadd.f32 %v10071_v28, %v8927_v44 }
0x2807   :  { %11353 = vmatprep.mubr.msk.f32.mxu1 %vm162_vm4, %v13317_v46 }
0x2808   :  { %11354 = vmatmul.mubr.msk.f32.gmra.mrb[134].mxu1 %vm162_vm4, %v13319_v49 }
0x2809   :  { %11386 = vmatprep.mubr.msk.f32.mxu1 %vm12009_vm5, %v12008_v55 }
0x28d7   :  { %v11352_v62 = vpop.f32.mrb[132].mxu1 }
0x28d8   :  { %v9038_v63 = vadd.f32 %v11352_v62, %v10072_v60  ;;  %v9032_v38 = vpop.f32.mrb[133].mxu1 }
0x28d9   :  { %v9033_v48 = vadd.f32 %v10072_v60, %v9032_v38 }
0x28da   :  { %v9056_v40 = vmul.f32 0.044715, %v9038_v63  ;;  %v9052_v16 = vmul.f32 0.5, %v9038_v63 }
0x28db   :  { %v9055_v61 = vmul.f32 0.044715, %v9033_v48  ;;  %v11355_v0 = vpop.f32.mrb[134].mxu1  ;;  %v9051_v23 = vmul.f32 0.5, %v9033_v48 }
0x28dc   :  { %v9060_v1 = vmul.f32 %v9056_v40, %v9038_v63  ;;  %v9048_v57 = vadd.f32 %v11355_v0, %v10072_v60  ;;  %v9042_v45 = vpop.f32.mrb[135].mxu1 }
0x28dd   :  { %v9059_v3 = vmul.f32 %v9055_v61, %v9033_v48  ;;  %v9043_v4 = vadd.f32 %v10072_v60, %v9042_v45 }
0x28de   :  { %v9064_v6 = vmul.f32 %v9060_v1, %v9038_v63  ;;  %v9058_v54 = vmul.f32 0.044715, %v9048_v57  ;;  %v9054_v27 = vmul.f32 0.5, %v9048_v57 }
0x28df   :  { %v9063_v7 = vmul.f32 %v9059_v3, %v9033_v48  ;;  %v9057_v8 = vmul.f32 0.044715, %v9043_v4  ;;  %v9053_v42 = vmul.f32 0.5, %v9043_v4 }
0x28e0   :  { %v9068_v10 = vadd.f32 %v9064_v6, %v9038_v63  ;;  %v9062_v12 = vmul.f32 %v9058_v54, %v9048_v57 }
0x28e1   :  { %v9067_v13 = vadd.f32 %v9063_v7, %v9033_v48  ;;  %v9061_v14 = vmul.f32 %v9057_v8, %v9043_v4 }
0x28e2   :  { %v9072_v15 = vmul.f32 0.7978846, %v9068_v10  ;;  %v9066_v5 = vmul.f32 %v9062_v12, %v9048_v57 }
0x28e3   :  { %v9065_v17 = vmul.f32 %v9061_v14, %v9043_v4  ;;  %v9071_v18 = vmul.f32 0.7978846, %v9067_v13 }
0x28e4   :  { %11960 = vtanh.f32 %v9072_v15  ;;  %v9070_v2 = vadd.f32 %v9066_v5, %v9048_v57  ;;  %v9422_v15 = vld [vmem:[%s13504_s1] sm:$0x3] }
0x28e5   :  { %v9069_v19 = vadd.f32 %v9065_v17, %v9043_v4  ;;  %11962 = vtanh.f32 %v9071_v18  ;;  %v9426_v5 = vld [vmem:[%s13505_s2 + $0x160] sm:$0xff]  ;;  %v9427_v17 = vld [vmem:[%s13505_s2 + $0x168] sm:$0xff] }
0x28e6   :  { %v9074_v20 = vmul.f32 0.7978846, %v9070_v2  ;;  %v11729_v18 = vpack.c.bf16 %v9427_v17, %v9426_v5  ;;  %v12010_v2 = vmov 0.0|0.0   ;;  %v9537_v17 = vld [vmem:[%s13508_s5 + $0x10] sm:$0xff] }
0x28e7   :  { %v9073_v11 = vmul.f32 0.7978846, %v9069_v19  ;;  %11728 = vmatprep.subr.bf16.mxu0 %v12010_v2  ;;  %11716 = vmatprep.subr.bf16.mxu1 %v12010_v2  ;;  %v9428_v19 = vld [vmem:[%s13505_s2 + $0x170] sm:$0xff] }
0x28e8   :  { %11964 = vtanh.f32 %v9074_v20  ;;  %v9429_v20 = vld [vmem:[%s13505_s2 + $0x178] sm:$0xff] }
0x28e9   :  { %11966 = vtanh.f32 %v9073_v11  ;;  %v11732_v11 = vpack.c.bf16 %v9429_v20, %v9428_v19  ;;  %v9541_v20 = vld [vmem:[%s13508_s5 + $0x30] sm:$0xff] }
0x28ee   :  { %v11961_v21 = vpop.eup %11960 }
0x28ef   :  { %v11963_v9 = vpop.eup %11962  ;;  %v9080_v22 = vadd.f32 1.0, %v11961_v21 }
0x28f0   :  { %v9079_v24 = vadd.f32 1.0, %v11963_v9 }
0x28f1   :  { %v9084_v34 = vmul.f32 %v9080_v22, %v9052_v16 }
0x28f2   :  { %v11965_v26 = vpop.eup %11964  ;;  %v9083_v28 = vmul.f32 %v9079_v24, %v9051_v23 }
0x28f3   :  { %v11967_v31 = vpop.eup %11966  ;;  %v9082_v37 = vadd.f32 1.0, %v11965_v26 }
0x28f4   :  { %11372 = vmatprep.mubr.msk.f32.mxu0 %vm4577_vm7, %v9083_v28  ;;  %v9081_v43 = vadd.f32 1.0, %v11967_v31 }
0x28f5   :  { %11373 = vmatmul.mubr.msk.f32.vlgmr.msra.gmra.mrb[112].mxu0 %vm4577_vm7, %v9084_v34  ;;  %v9086_v44 = vmul.f32 %v9082_v37, %v9054_v27  ;;  %v10089_v27 = vld [vmem:[%s13505_s2 + $0x18c] ss:$0 sm:$0xff] }
0x28f6   :  { %v9085_v39 = vmul.f32 %v9081_v43, %v9053_v42  ;;  %11730 = vmatpush3.bf16.msra.mxu0 %v11729_v18  ;;  %v10088_v42 = vld [vmem:[%s13505_s2 + $0x18b] ss:$0 sm:$0xff]  ;;  %v9538_v18 = vld [vmem:[%s13508_s5 + $0x18] sm:$0xff] }
0x28f7   :  { %11731 = vmatprep.subr.bf16.mxu0 %v12010_v2  ;;  %v11744_v19 = vpack.c.bf16 %v9538_v18, %v9537_v17 }
0x28f8   :  { %11375 = vmatprep.mubr.msk.f32.mxu0 %vm4577_vm7, %v9085_v39 }
0x28f9   :  { %11376 = vmatmul.mubr.msk.f32.gmra.mrb[114].mxu0 %vm4577_vm7, %v9086_v44 }
0x28fa   :  { %11408 = vmatprep.mubr.msk.f32.mxu0 %vm12009_vm5, %v12008_v55  ;;  %11733 = vmatpush3.bf16.msra.mxu0 %v11732_v11  ;;  %v9542_v11 = vld [vmem:[%s13508_s5 + $0x38] sm:$0xff] }
0x28fb   :  { %11740 = vmatprep.subr.bf16.mxu0 %v12010_v2 }
0x29c8   :  { %v11374_v52 = vpop.f32.mrb[112].mxu0 }
0x29c9   :  { %v9175_v32 = vadd.f32 %v11374_v52, %v10077_v50  ;;  %v9169_v36 = vpop.f32.mrb[113].mxu0 }
0x29ca   :  { %v9170_v51 = vadd.f32 %v10077_v50, %v9169_v36  ;;  %v10082_v36 = vld [vmem:[%s13505_s2 + $0x198] ss:$0 sm:$0xff] }
0x29cb   :  { %v9189_v35 = vadd.f32 %v9175_v32, %v13311_v41 }
0x29cc   :  { %v9188_v53 = vadd.f32 %v9170_v51, %v13309_v25  ;;  %v11377_v56 = vpop.f32.mrb[114].mxu0 }
0x29cd   :  { %v9185_v58 = vadd.f32 %v11377_v56, %v10077_v50  ;;  %v9179_v33 = vpop.f32.mrb[115].mxu0  ;;  %v9195_v59 = vsel %vm162_vm4, %v9189_v35, 0.0  ;;  %v10083_v56 = vld [vmem:[%s13505_s2 + $0x199] ss:$0 sm:$0xff] }
0x29ce   :  { %v9180_v47 = vadd.f32 %v10077_v50, %v9179_v33  ;;  %9196 = vadd.xlane.f32.xlu0 %v9195_v59  ;;  %v9192_v60 = vsel %vm162_vm4, %v9188_v53, 0.0  ;;  %v9261_v33 = vshrl.u32 %v28_v29, 7 }
0x29cf   :  { %v9191_v62 = vadd.f32 %v9185_v58, %v13319_v49  ;;  %9193 = vadd.xlane.f32.xlu1 %v9192_v60 }
0x29d0   :  { %v9190_v63 = vadd.f32 %v9180_v47, %v13317_v46 }
0x29d1   :  { %v9201_v38 = vsel %vm162_vm4, %v9191_v62, 0.0 }
0x29d2   :  { %9202 = vadd.xlane.f32.xlu0 %v9201_v38  ;;  %v9198_v41 = vsel %vm162_vm4, %v9190_v63, 0.0 }
0x29d3   :  { %9199 = vadd.xlane.f32.xlu1 %v9198_v41 }
0x2a5b   :  { %v9197_v25 = vpop.xlane.xlu0 %9196 }
0x2a5c   :  { %v9205_v48 = vmul.f32 0.03125, %v9197_v25  ;;  %v9194_v40 = vpop.xlane.xlu1 %9193 }
0x2a5d   :  { %v9204_v61 = vmul.f32 0.03125, %v9194_v40 }
0x2a5e   :  { %v9209_v0 = vsub.f32 %v9189_v35, %v9205_v48  ;;  %v9262_v48 = vmul.u32 8, %v9261_v33 }
0x2a5f   :  { %v9208_v1 = vsub.f32 %v9188_v53, %v9204_v61  ;;  %v9203_v57 = vpop.xlane.xlu0 %9202 }
0x2a60   :  { %v9207_v45 = vmul.f32 0.03125, %v9203_v57  ;;  %v9200_v3 = vpop.xlane.xlu1 %9199  ;;  %v9213_v4 = vmul.f32 %v9209_v0, %v9209_v0  ;;  %vm9263_vm8 = vcmp.eq.s32.totalorder %v12108_v30, %v9262_v48 }
0x2a61   :  { %v9206_v49 = vmul.f32 0.03125, %v9200_v3  ;;  %v9212_v6 = vmul.f32 %v9208_v1, %v9208_v1  ;;  %v10084_v29 = vsel %vm9263_vm8, 1.0, %v12008_v55  ;;  %v9340_v3 = vld [vmem:[%s13505_s2 + $0x148] sm:$0xff] }
0x2a62   :  { %v9211_v54 = vsub.f32 %v9191_v62, %v9207_v45  ;;  %v9219_v46 = vsel %vm162_vm4, %v9213_v4, 0.0  ;;  %v9339_v45 = vld [vmem:[%s13505_s2 + $0x140] sm:$0xff]  ;;  %v9341_v4 = vld [vmem:[%s13505_s2 + $0x150] sm:$0xff] }
0x2a63   :  { %v9210_v7 = vsub.f32 %v9190_v63, %v9206_v49  ;;  %9220 = vadd.xlane.f32.xlu0 %v9219_v46  ;;  %v9216_v8 = vsel %vm162_vm4, %v9212_v6, 0.0  ;;  %v11723_v30 = vpack.c.bf16 %v9340_v3, %v9339_v45  ;;  %v9342_v49 = vld [vmem:[%s13505_s2 + $0x158] sm:$0xff] }
0x2a64   :  { %9217 = vadd.xlane.f32.xlu1 %v9216_v8  ;;  %v9215_v10 = vmul.f32 %v9211_v54, %v9211_v54  ;;  %v11726_v6 = vpack.c.bf16 %v9342_v49, %v9341_v4 }
0x2a65   :  { %v9214_v12 = vmul.f32 %v9210_v7, %v9210_v7 }
0x2a66   :  { %v9225_v13 = vsel %vm162_vm4, %v9215_v10, 0.0  ;;  %v9535_v10 = vld [vmem:[%s13508_s5] sm:$0xff] }
0x2a67   :  { %9226 = vadd.xlane.f32.xlu0 %v9225_v13  ;;  %v9222_v14 = vsel %vm162_vm4, %v9214_v12, 0.0  ;;  %v9536_v12 = vld [vmem:[%s13508_s5 + $0x8] sm:$0xff] }
0x2a68   :  { %9223 = vadd.xlane.f32.xlu1 %v9222_v14  ;;  %v11741_v13 = vpack.c.bf16 %v9536_v12, %v9535_v10  ;;  %v9539_v14 = vld [vmem:[%s13508_s5 + $0x20] sm:$0xff] }
0x2a79   :  { %9432 = vperm.xlu1 %11791, %v9422_v15   ;;  %v9540_v15 = vld [vmem:[%s13508_s5 + $0x28] sm:$0xff] }
0x2a7a   :  { %v11735_v5 = vpack.c.bf16 %v9540_v15, %v9539_v14 }
0x2af0   :  { %v9221_v21 = vpop.xlane.xlu0 %9220 }
0x2af1   :  { %v9229_v9 = vmul.f32 0.03125, %v9221_v21  ;;  %v9218_v22 = vpop.xlane.xlu1 %9217  ;;  %v11738_v21 = vpack.c.bf16 %v9542_v11, %v9541_v20 }
0x2af2   :  { %v9228_v23 = vmul.f32 0.03125, %v9218_v22 }
0x2af3   :  { %v9233_v24 = vadd.f32 1e-12, %v9229_v9  ;;  %v10090_v9 = vld [vmem:[%s13505_s2 + $0x18d] ss:$0 sm:$0xff] }
0x2af4   :  { %v9232_v16 = vadd.f32 1e-12, %v9228_v23  ;;  %v9227_v26 = vpop.xlane.xlu0 %9226 }
0x2af5   :  { %11968 = vrsqrt.f32 %v9233_v24  ;;  %v9231_v28 = vmul.f32 0.03125, %v9227_v26  ;;  %v9224_v31 = vpop.xlane.xlu1 %9223  ;;  %v10086_v26 = vld [vmem:[%s13505_s2 + $0x18a] ss:$0 sm:$0xff] }
0x2af6   :  { %11970 = vrsqrt.f32 %v9232_v16  ;;  %v9230_v34 = vmul.f32 0.03125, %v9224_v31 }
0x2af7   :  { %v9235_v37 = vadd.f32 1e-12, %v9231_v28 }
0x2af8   :  { %v9234_v43 = vadd.f32 1e-12, %v9230_v34 }
0x2af9   :  { %11972 = vrsqrt.f32 %v9235_v37  ;;  %v9433_v39 = vpop.permute.xlu1 %9432 }
0x2afa   :  { %11974 = vrsqrt.f32 %v9234_v43  ;;  %v9439_v44 = vmul.f32 %v10088_v42, %v9433_v39  ;;  %v9543_v43 = vld [vmem:[%s13508_s5 + $0x40] sm:$0xff] }
0x2afc   :  { %v9444_v50 = vadd.f32 %v10089_v27, %v9439_v44  ;;  %v9544_v27 = vld [vmem:[%s13508_s5 + $0x48] sm:$0xff] }
0x2afe   :  { %v9445_v52 = vmax.f32 %v9444_v50, 0.0 }
0x2aff   :  { %v11969_v32 = vpop.eup %11968 }
0x2b00   :  { %v11971_v51 = vpop.eup %11970  ;;  %v9241_v35 = vmul.f32 %v11969_v32, %v9209_v0  ;;  %11409 = vmatmul.mubr.msk.f32.vlgmr.msra.gmra.mrb[116].mxu0 %vm162_vm4, %v9445_v52  ;;  %v11747_v52 = vpack.c.bf16 %v9544_v27, %v9543_v43 }
0x2b01   :  { %v9240_v53 = vmul.f32 %v11971_v51, %v9208_v1  ;;  %11430 = vmatprep.mubr.msk.f32.mxu0 %vm12009_vm5, %v12008_v55  ;;  %11742 = vmatpush3.bf16.msra.mxu0 %v11741_v13  ;;  %v9546_v51 = vld [vmem:[%s13508_s5 + $0x58] sm:$0xff] }
0x2b02   :  { %v9249_v58 = vmul.f32 %v10082_v36, %v9241_v35  ;;  %11743 = vmatprep.subr.bf16.mxu0 %v12010_v2 }
0x2b03   :  { %v11973_v59 = vpop.eup %11972  ;;  %v9248_v47 = vmul.f32 %v10082_v36, %v9240_v53 }
0x2b04   :  { %v11975_v60 = vpop.eup %11974  ;;  %v9243_v62 = vmul.f32 %v11973_v59, %v9211_v54  ;;  %v9257_v63 = vadd.f32 %v10083_v56, %v9249_v58 }
0x2b05   :  { %v9242_v38 = vmul.f32 %v11975_v60, %v9210_v7  ;;  %v9256_v41 = vadd.f32 %v10083_v56, %v9248_v47  ;;  %11745 = vmatpush3.bf16.msra.mxu0 %v11744_v19  ;;  %v10096_v47 = vld [vmem:[%s13508_s5 + $0x61] ss:$0 sm:$0xff]  ;;  %v10095_v60 = vld [vmem:[%s13508_s5 + $0x60] ss:$0 sm:$0xff] }
0x2b06   :  { %v9251_v25 = vmul.f32 %v10082_v36, %v9243_v62 }
0x2b07   :  { %v11717_v40 = vpack.c.bf16 %v9257_v63, %v9256_v41  ;;  %v9250_v61 = vmul.f32 %v10082_v36, %v9242_v38  ;;  %v9545_v36 = vld [vmem:[%s13508_s5 + $0x50] sm:$0xff] }
0x2b08   :  { %v9259_v0 = vadd.f32 %v10083_v56, %v9251_v25  ;;  %v11750_v35 = vpack.c.bf16 %v9546_v51, %v9545_v36 }
0x2b09   :  { %11718 = vmatpush3.bf16.msra.mxu1 %v11717_v40  ;;  %v9258_v1 = vadd.f32 %v10083_v56, %v9250_v61 }
0x2b0a   :  { %11719 = vmatprep.subr.bf16.mxu1 %v12010_v2 }
0x2b0b   :  { %v11720_v57 = vpack.c.bf16 %v9259_v0, %v9258_v1 }
0x2b0d   :  { %11721 = vmatpush3.bf16.msra.mxu1 %v11720_v57 }
0x2b0e   :  { %11722 = vmatprep.subr.bf16.mxu1 %v12010_v2 }
0x2b10   :  { %11387 = vmatmul.mubr.msk.f32.vlgmr.msra.gmra.mrb[136].mxu1 %vm162_vm4, %v10084_v29 }
0x2b11   :  { %11397 = vmatprep.mubr.msk.f32.mxu1 %vm12009_vm5, %v12008_v55  ;;  %11724 = vmatpush3.bf16.msra.mxu1 %v11723_v30 }
0x2b12   :  { %11725 = vmatprep.subr.bf16.mxu1 %v12010_v2 }
0x2b15   :  { %11727 = vmatpush3.bf16.msra.mxu1 %v11726_v6 }
0x2b16   :  { %11734 = vmatprep.subr.bf16.mxu1 %v12010_v2 }
0x2bd3   :  { %v9519_v54 = vpop.f32.mrb[116].mxu0 }
0x2bd4   :  { %v11410_v46 = vpop.f32.mrb[117].mxu0  ;;  %v9520_v22 = vadd.f32 %v10090_v9, %v9519_v54 }
0x2bd6   :  { %v10092_v23 = vmul.f32 -1.442695, %v9520_v22 }
0x2bd8   :  { %11976 = vpow2.f32 %v10092_v23 }
0x2be2   :  { %v11977_v24 = vpop.eup %11976 }
0x2be3   :  { %v9335_v7 = vpop.f32.mrb[136].mxu1  ;;  %v9526_v16 = vadd.f32 1.0, %v11977_v24 }
0x2be4   :  { %11398 = vmatmul.mubr.msk.f32.vlgmr.msra.gmra.mrb[138].mxu1 %vm162_vm4, %v9335_v7  ;;  %v11388_v8 = vpop.f32.mrb[137].mxu1 }
0x2be5   :  { %11419 = vmatprep.mubr.msk.f32.mxu1 %vm12009_vm5, %v12008_v55  ;;  %11736 = vmatpush3.bf16.msra.mxu1 %v11735_v5  ;;  %11978 = vrcp.f32 %v9526_v16 }
0x2be6   :  { %11737 = vmatprep.subr.bf16.mxu1 %v12010_v2 }
0x2be9   :  { %11739 = vmatpush3.bf16.msra.mxu1 %v11738_v21 }
0x2bea   :  { %11746 = vmatprep.subr.bf16.mxu1 %v12010_v2 }
0x2bef   :  { %v11979_v37 = vpop.eup %11978 }
0x2bf0   :  { %v9529_v42 = vmul.f32 2.0, %v11979_v37 }
0x2cb7   :  { %v9417_v28 = vpop.f32.mrb[138].mxu1 }
0x2cb8   :  { %v9418_v31 = vadd.f32 %v10086_v26, %v9417_v28  ;;  %v11399_v34 = vpop.f32.mrb[139].mxu1 }
0x2cba   :  { %11980 = vtanh.f32 %v9418_v31 }
0x2cc4   :  { %v11981_v39 = vpop.eup %11980 }
0x2cc5   :  { %v9532_v44 = vrot.slane %v11981_v39, 2  ;;  %v9530_v50 = vmul.f32 %v11981_v39, %v9529_v42 }
0x2cc7   :  { %11431 = vmatmul.mubr.msk.f32.vlgmr.msra.gmra.mrb[118].mxu0 %vm162_vm4, %v9530_v50  ;;  %v9534_v32 = vmul.f32 %v9532_v44, %v9529_v42 }
0x2cc9   :  { %11420 = vmatmul.mubr.msk.f32.vlgmr.msra.gmra.mrb[140].mxu1 %vm162_vm4, %v9534_v32 }
0x2cca   :  { %11748 = vmatpush3.bf16.msra.mxu1 %v11747_v52  ;;  %11441 = vmatprep.mubr.msk.f32.mxu1 %vm12009_vm5, %v12008_v55 }
0x2ccb   :  { %11749 = vmatprep.subr.bf16.mxu1 %v12010_v2 }
0x2cce   :  { %11751 = vmatpush3.bf16.msra.mxu1 %v11750_v35 }
0x2cd1   :  { %11442 = vmatmul.mubr.msk.f32.vlgmr.msra.gmra.mrb[142].mxu1 %vm162_vm4, %v9530_v50 }
0x2d9a   :  { %v9691_v53 = vpop.f32.mrb[118].mxu0 }
0x2d9b   :  { %v11432_v56 = vpop.f32.mrb[119].mxu0 }
0x2d9c   :  { %v9618_v58 = vpop.f32.mrb[140].mxu1 }
0x2d9d   :  { %v9692_v33 = vadd.f32 %v9691_v53, %v9618_v58  ;;  %v11421_v59 = vpop.f32.mrb[141].mxu1 }
0x2d9f   :  { %v9699_v2 = vadd.f32 %v10095_v60, %v9692_v33 }
0x2da4   :  { %v9770_v62 = vpop.f32.mrb[142].mxu1 }
0x2da5   :  { %v9771_v55 = vadd.f32 %v10096_v47, %v9770_v62  ;;  %v11443_v63 = vpop.f32.mrb[143].mxu1 }
0x2da7   :  { %v9775_v38 = vrot.slane %v9771_v55, 6 }
0x2da9   :  { %v9778_v41 = vsel %vm9777_vm9, %v9699_v2, %v9775_v38 }
0x2daa   :  { %v9780_v25 = vsel %vm9779_vm10, %v9778_v41, 0.0 }
0x2dab   :  { %9781 = vst [vmem:[#allocation2] sm:$0xff] %v9780_v25 }
0x2dac   :  { %11993 = shalt.err (!%p11990_p4)
}
0x2dad   :  { %s11994_s22 = scalar_lea.hbm %s13509_s6, 128 }
0x2dae   :  { %p11995_p5 = scmp.ne.s32.totalorder %s13509_s6, %s11994_s22  ;;  %p11998_p6 = scmp.lt.u32.totalorder %s11994_s22, %s13509_s6 }
0x2db0   :  { %p12000_p7 = pnand %p11998_p6, %p11995_p5 }
0x2db2   :  { %12003 = shalt.err (!%p12000_p7)
}
0x2db3   :  { %9791 = dma.vmem_to_hbm [thread:$0]  %s9789_s19, 128, %s13509_s6, [#allocation3]  }
0x2db4   :  { %12004 = dma.done.wait [#allocation3], 128  }
0x2db5   :  { %12005 = vsyncadd [#allocation3], 4294967168 }
0x2db6   :  { %9795 = vsyncpa [#allocation3], 1 }

</bundles_post_ra>
